<compile_context>
chip_gen: v6e
topology: v6e:2x2x1
jax: 0.10.0
libtpu: 0.0.40
codegen_flags: <defaults>
</compile_context>

<pallas_src>
import math
import functools

import jax
import jax.numpy as jnp
from jax.experimental import pallas as pl
from jax.experimental.pallas import tpu as pltpu

# ---------------- small test configuration (num_points = sectors * npoint) ----------------
B = 2
SECTORS = 8
NPOINT = 16
NUM_POINTS = SECTORS * NPOINT      # 128
DIVIDE = 2                         # combine_params['pplnet']['divide']
KNN = 4                            # combine_params['pplnet']['knn']
BN_EPS = 1e-5

assert SECTORS % DIVIDE == 0 and 64 % DIVIDE == 0


def _pick_tile(m, cap=512):
    """Largest multiple-of-8 tile <= cap that divides m (else m itself)."""
    for t in (512, 256, 128, 64, 32, 16, 8):
        if t <= cap and m % t == 0:
            return t
    return m


# ======================== kernel 1a: STN3d point-MLP + max over points ========================

def _stn_max_kernel(x_ref, w1, b1, w2, b2, w3, b3, o_ref):
    j = pl.program_id(1)
    x = x_ref[0]                                             # (tp, 3) f32
    # conv1 has a (1,3) kernel == per-point 3->64 matmul; K=3 -> VPU.
    h = (x[:, 0:1] * w1[0:1, :] + x[:, 1:2] * w1[1:2, :]
         + x[:, 2:3] * w1[2:3, :] + b1[...])
    h = jnp.maximum(h, 0.0)
    h = jnp.dot(h.astype(jnp.bfloat16), w2[...],
                preferred_element_type=jnp.float32) + b2[...]
    h = jnp.maximum(h, 0.0)
    h = jnp.dot(h.astype(jnp.bfloat16), w3[...],
                preferred_element_type=jnp.float32) + b3[...]
    h = jnp.maximum(h, 0.0)                                  # (tp, 1024)
    tmax = jnp.max(h, axis=0, keepdims=True)[None]           # (1, 1, 1024)

    @pl.when(j == 0)
    def _():
        o_ref[...] = tmax

    @pl.when(j > 0)
    def _():
        o_ref[...] = jnp.maximum(o_ref[...], tmax)


def stn_max(pts, pp):
    """pts: (B, N, 3) -> per-batch global max features (B, 1, 1024)."""
    Bz, N, _ = pts.shape
    tp = _pick_tile(N)
    ws = [pp['stn_w1'], pp['stn_b1'], pp['stn_w2'], pp['stn_b2'],
          pp['stn_w3'], pp['stn_b3']]
    w_specs = [pl.BlockSpec(w.shape, lambda b, j: (0, 0)) for w in ws]
    return pl.pallas_call(
        _stn_max_kernel,
        out_shape=jax.ShapeDtypeStruct((Bz, 1, 1024), jnp.float32),
        grid=(Bz, N // tp),
        in_specs=[pl.BlockSpec((1, tp, 3), lambda b, j: (b, j, 0))] + w_specs,
        out_specs=pl.BlockSpec((1, 1, 1024), lambda b, j: (b, 0, 0)),
        compiler_params=pltpu.CompilerParams(
            dimension_semantics=("parallel", "arbitrary")),
    )(pts, *ws)


# ======================== kernel 1b: batched STN fc1/fc2/fc3 ========================

def _stn_fc_kernel(g_ref, f1w, f1b, f2w, f2b, f3w, f3b, o_ref):
    g = g_ref[:, 0, :]                                       # (B, 1024) f32
    h = jnp.maximum(jnp.dot(g.astype(jnp.bfloat16), f1w[...],
                            preferred_element_type=jnp.float32) + f1b[...], 0.0)
    h = jnp.maximum(jnp.dot(h.astype(jnp.bfloat16), f2w[...],
                            preferred_element_type=jnp.float32) + f2b[...], 0.0)
    o_ref[...] = (jnp.dot(h.astype(jnp.bfloat16), f3w[...],
                          preferred_element_type=jnp.float32) + f3b[...]).astype(o_ref.dtype)


def stn_fc(gmax, pp):
    """gmax: (B, 1, 1024) -> trans (B, 3, 3) (fc chain + identity), batched over B."""
    Bz = gmax.shape[0]
    ws = [pp['stn_fc1_w'], pp['stn_fc1_b'], pp['stn_fc2_w'], pp['stn_fc2_b'],
          pp['stn_fc3_w'], pp['stn_fc3_b']]
    w_specs = [pl.BlockSpec(w.shape, lambda i: (0, 0)) for w in ws]
    out = pl.pallas_call(
        _stn_fc_kernel,
        out_shape=jax.ShapeDtypeStruct((Bz, 9), jnp.float32),
        grid=(1,),
        in_specs=[pl.BlockSpec((Bz, 1, 1024), lambda i: (0, 0, 0))] + w_specs,
        out_specs=pl.BlockSpec((Bz, 9), lambda i: (0, 0)),
        compiler_params=pltpu.CompilerParams(dimension_semantics=("arbitrary",)),
    )(gmax, *ws)
    return out.reshape(Bz, 3, 3) + jnp.eye(3, dtype=jnp.float32)[None]


# ======================== kernel 2: x@trans -> (r,z) -> PE -> conv0, grouped layout ========================

def _rz_pe_conv0_kernel(xyz_ref, trans_ref, pew_ref, pec_ref, c0w_ref, c0b_ref,
                        o_ref, *, d, tpp, cpg):
    t_mat = trans_ref[0]                                     # (3, 3)
    x = xyz_ref[0, 0]                                        # (d, tpp, 3)
    x = x.reshape(d * tpp, 3)
    xt = (x[:, 0:1] * t_mat[0:1, :] + x[:, 1:2] * t_mat[1:2, :]
          + x[:, 2:3] * t_mat[2:3, :])
    r = jnp.sqrt(xt[:, 0:1] * xt[:, 0:1] + xt[:, 1:2] * xt[:, 1:2])
    z = xt[:, 2:3]
    pe = pec_ref[...]
    pe = pe.reshape(d * tpp, pe.shape[-1])
    h48 = jnp.maximum(r * pew_ref[0:1, :] + z * pew_ref[1:2, :] + pe, 0.0)
    h64 = jnp.dot(h48.astype(jnp.bfloat16), c0w_ref[...],
                  preferred_element_type=jnp.float32) + c0b_ref[...]
    h64 = jnp.maximum(h64, 0.0)                              # (d*tpp, 64), cols grouped by c%d
    # Write the channel-interleaved layout torch's permute/view algebra produces:
    # out[g, tt'=c%d, p, t*cpg + c//d] = h64[point(t, p), channel c].
    for t in range(d):
        rows = h64[t * tpp:(t + 1) * tpp]                    # points of sector g*d + t
        for rres in range(d):
            o_ref[0, rres, :, t * cpg:(t + 1) * cpg] = (
                rows[:, rres * cpg:(rres + 1) * cpg].astype(o_ref.dtype))


def rz_pe_conv0(xyz5, trans, pe_w_rz, pe_const3, c0w, c0b, *, sectors, npoint, divide):
    """xyz5: (B, S/d, d, P, 3), trans: (B,3,3) -> feat (B*S/d, P*d, 64) bf16 (graph layout)."""
    Bz = xyz5.shape[0]
    d, P = divide, npoint
    gpb = sectors // d
    c48 = pe_const3.shape[-1]
    c64 = c0w.shape[1]
    cpg = c64 // d
    tpp = _pick_tile(P)
    out4 = pl.pallas_call(
        functools.partial(_rz_pe_conv0_kernel, d=d, tpp=tpp, cpg=cpg),
        out_shape=jax.ShapeDtypeStruct((Bz * gpb, d, P, c64), jnp.bfloat16),
        grid=(Bz, gpb, P // tpp),
        in_specs=[
            pl.BlockSpec((1, 1, d, tpp, 3), lambda b, g, i: (b, g, 0, i, 0)),
            pl.BlockSpec((1, 3, 3), lambda b, g, i: (b, 0, 0)),
            pl.BlockSpec((2, c48), lambda b, g, i: (0, 0)),
            pl.BlockSpec((d, tpp, c48), lambda b, g, i: (0, i, 0)),
            pl.BlockSpec((c48, c64), lambda b, g, i: (0, 0)),
            pl.BlockSpec((1, c64), lambda b, g, i: (0, 0)),
        ],
        out_specs=pl.BlockSpec((1, d, tpp, c64),
                               lambda b, g, i: (b * gpb + g, 0, i, 0)),
        compiler_params=pltpu.CompilerParams(
            dimension_semantics=("parallel", "parallel", "parallel")),
    )(xyz5, trans, pe_w_rz, pe_const3, c0w, c0b)
    # Row-major merge (d, P) -> P*d: free reshape, gives the "feat" tensor directly.
    return out4.reshape(Bz * gpb, P * d, c64)


# ======================== kernel 3: convDG1+max(k) + conv2_add ========================

def _dg_conv2add_kernel(ctr_ref, nbr_ref, wtop_ref, wdel_ref, dgb_ref,
                        c2w_ref, c2b_ref, o_ref, *, knn, tm):
    """convDG1(edge)=nbr@W_top + ctr@(W_bot-W_top)+b; relu/max commute with the constant
    ctr term, so: relu(max_k(nbr_k @ W_top) + ctr_term), then conv2_add+relu.
    All knn neighbor rows go through one stacked MXU matmul."""
    nbr = nbr_ref[0]                                         # (k, tm, 64) bf16
    nbr = nbr.reshape(knn * tm, nbr.shape[-1])               # (k*tm, 64)
    proj = jnp.dot(nbr, wtop_ref[...],
                   preferred_element_type=jnp.float32)       # (k*tm, 128)
    mx = proj[0:tm]
    for j in range(1, knn):                                  # aligned sublane slices
        mx = jnp.maximum(mx, proj[j * tm:(j + 1) * tm])
    ctr_term = jnp.dot(ctr_ref[0], wdel_ref[...],
                       preferred_element_type=jnp.float32) + dgb_ref[...]
    h = jnp.maximum(mx + ctr_term, 0.0)                      # (tm, 128)
    y = jnp.dot(h.astype(jnp.bfloat16), c2w_ref[...],
                preferred_element_type=jnp.float32) + c2b_ref[...]
    o_ref[0] = jnp.maximum(y, 0.0).astype(o_ref.dtype)


def dg_conv2add(feat, nbr, wtop, wdelta, dgb, c2w, c2b, *, knn):
    """feat: (G, N', 64) bf16, nbr: (G, k, N', 64) bf16 -> (G, N', 32) f32."""
    G, Np, C = feat.shape
    Cmid = wtop.shape[1]
    Cout = c2w.shape[1]
    tm = _pick_tile(Np)
    return pl.pallas_call(
        functools.partial(_dg_conv2add_kernel, knn=knn, tm=tm),
        out_shape=jax.ShapeDtypeStruct((G, Np, Cout), jnp.float32),
        grid=(G, Np // tm),
        in_specs=[
            pl.BlockSpec((1, tm, C), lambda g, i: (g, i, 0)),
            pl.BlockSpec((1, knn, tm, C), lambda g, i: (g, 0, i, 0)),
            pl.BlockSpec((C, Cmid), lambda g, i: (0, 0)),
            pl.BlockSpec((C, Cmid), lambda g, i: (0, 0)),
            pl.BlockSpec((1, Cmid), lambda g, i: (0, 0)),
            pl.BlockSpec((Cmid, Cout), lambda g, i: (0, 0)),
            pl.BlockSpec((1, Cout), lambda g, i: (0, 0)),
        ],
        out_specs=pl.BlockSpec((1, tm, Cout), lambda g, i: (g, i, 0)),
        compiler_params=pltpu.CompilerParams(
            dimension_semantics=("parallel", "parallel")),
    )(feat, nbr, wtop, wdelta, dgb, c2w, c2b)


# ======================== params (torch-like init, BN folded) ========================

def fold_bn(w, b, bn):
    gamma, beta, mean, var = bn
    scale = gamma / jnp.sqrt(var + BN_EPS)
    return w * scale[None, :], (b - mean) * scale + beta


def make_pe_table(n, dim=16):
    # TODO(synk): PositionalEncodingLocal was not provided; stand-in = 16-dim sinusoidal PE
    # of the within-window point index + learned 1x1 projection to the 48 channels conv0 expects.
    pos = jnp.arange(n, dtype=jnp.float32)
    half = dim // 2
    freq = 1.0 / (10000.0 ** (jnp.arange(half, dtype=jnp.float32) / half))
    ang = freq[:, None] * pos[None, :]
    return jnp.concatenate([jnp.sin(ang), jnp.cos(ang)], axis=0)   # (dim, n)


def init_params(key):
    ks = iter(jax.random.split(key, 32))

    def lin(fi, fo):
        s = 1.0 / math.sqrt(fi)
        w = jax.random.uniform(next(ks), (fi, fo), jnp.float32, -s, s)
        b = jax.random.uniform(next(ks), (fo,), jnp.float32, -s, s)
        return w, b

    def bn(c):
        g = 1.0 + 0.1 * jax.random.normal(next(ks), (c,), jnp.float32)
        be = 0.1 * jax.random.normal(next(ks), (c,), jnp.float32)
        return g, be, jnp.zeros((c,), jnp.float32), jnp.ones((c,), jnp.float32)

    p = {}
    # STN3d (num_points=NUM_POINTS, k=3, use_bn=False)
    p['stn_w1'], p['stn_b1'] = lin(3, 64)       # Conv2d(1, 64, (1, 3))
    p['stn_w2'], p['stn_b2'] = lin(64, 128)     # Conv2d(64, 128, (1, 1))
    p['stn_w3'], p['stn_b3'] = lin(128, 1024)   # Conv2d(128, 1024, (1, 1))
    p['stn_fc1_w'], p['stn_fc1_b'] = lin(1024, 512)
    p['stn_fc2_w'], p['stn_fc2_b'] = lin(512, 256)
    p['stn_fc3_w'] = jnp.zeros((256, 9), jnp.float32)   # zero-init as in STN3d.__init__
    p['stn_fc3_b'] = jnp.zeros((9,), jnp.float32)
    # PositionalEncodingLocal stand-in
    p['pe_w'], p['pe_b'] = lin(2 + 16, 48)
    p['pe_table'] = make_pe_table(NPOINT * DIVIDE, 16)
    # conv0/bn0, convDG1/bnDG1, conv2_add/bn2_add (BN folded, inference mode)
    w, b = lin(48, 64);   p['conv0_w'], p['conv0_b'] = fold_bn(w, b, bn(64))
    w, b = lin(128, 128); p['dg_w'],    p['dg_b']    = fold_bn(w, b, bn(128))
    w, b = lin(128, 32);  p['c2a_w'],   p['c2a_b']   = fold_bn(w, b, bn(32))
    return p


def prepare_params(p):
    """Pre-pack for the fused kernels: bf16 matmul weights, row biases, hoisted constant
    PE contribution, convDG1 linearity split, conv0 columns permuted so the grouped
    ("feat") layout can be emitted with contiguous lane slices."""
    bf = lambda a: a.astype(jnp.bfloat16)
    row = lambda a: a.reshape(1, -1)
    d = DIVIDE
    c64 = p['conv0_w'].shape[1]
    # column j of permuted conv0 = original channel d*(j % (64/d)) + j // (64/d)
    perm = jnp.array([d * j + r for r in range(d) for j in range(c64 // d)], dtype=jnp.int32)
    pe_const = jnp.dot(p['pe_table'].T, p['pe_w'][2:, :]) + p['pe_b'][None, :]   # (P*d, 48)
    wtop = p['dg_w'][:64, :]
    return {
        'stn_w1': p['stn_w1'], 'stn_b1': row(p['stn_b1']),
        'stn_w2': bf(p['stn_w2']), 'stn_b2': row(p['stn_b2']),
        'stn_w3': bf(p['stn_w3']), 'stn_b3': row(p['stn_b3']),
        'stn_fc1_w': bf(p['stn_fc1_w']), 'stn_fc1_b': row(p['stn_fc1_b']),
        'stn_fc2_w': bf(p['stn_fc2_w']), 'stn_fc2_b': row(p['stn_fc2_b']),
        'stn_fc3_w': bf(p['stn_fc3_w']), 'stn_fc3_b': row(p['stn_fc3_b']),
        'pe_w_rz': p['pe_w'][:2, :],
        'pe_const3': pe_const.reshape(d, NPOINT, -1),          # (d, P, 48), q = t*P + p
        'conv0_w': bf(p['conv0_w'][:, perm]), 'conv0_b': row(p['conv0_b'][perm]),
        'dg_wtop': bf(wtop), 'dg_wdelta': bf(p['dg_w'][64:, :] - wtop),
        'dg_b': row(p['dg_b']),
        'c2a_w': bf(p['c2a_w']), 'c2a_b': row(p['c2a_b']),
    }


# ======================== forward ========================

def pploc3d_forward(x, pp):
    """PPLoc3D.forward, t_net=True branch.  x: (B, 1, num_points, 3) NCHW."""
    Bz = x.shape[0]
    S, P, d, k = SECTORS, NPOINT, DIVIDE, KNN
    N = S * P
    pts = x.reshape(Bz, N, 3)

    # ---- trans = self.stn(x): point MLP + max (Pallas) then batched fc chain (Pallas) ----
    gmax = stn_max(pts, pp)                                    # (B, 1, 1024)
    trans = stn_fc(gmax, pp)                                   # (B, 3, 3)

    # ---- fused: x@trans -> (r,z) -> pos_ecoding_l (stand-in) -> relu(bn0(conv0)),
    #      emitted directly in the grouped/channel-interleaved graph layout (bf16) ----
    xyz5 = pts.reshape(Bz, S // d, d, P, 3)                    # free reshape
    feat = rz_pe_conv0(xyz5, trans, pp['pe_w_rz'], pp['pe_const3'],
                       pp['conv0_w'], pp['conv0_b'],
                       sectors=S, npoint=P, divide=d)          # (B*S/d, P*d, 64) bf16

    # ---- kNN (get_graph_feature_per_sector stand-in); edge tensor itself never built ----
    # TODO(synk): fuse this gather into dg_conv2add (in-kernel dynamic gather / DMA gather
    # over per-group VMEM-resident feat) once gather lowering is confirmed on the target chip.
    sq = jnp.einsum('gnc,gnc->gn', feat, feat, preferred_element_type=jnp.float32)
    inner = jnp.einsum('gnc,gmc->gnm', feat, feat, preferred_element_type=jnp.float32)
    neg_dist = 2.0 * inner - sq[:, :, None] - sq[:, None, :]
    _, idx = jax.lax.top_k(neg_dist, k)                        # (B*S/d, P*d, k)
    idx_t = jnp.swapaxes(idx, 1, 2)                            # (B*S/d, k, P*d) - tiny
    nbr = jnp.take_along_axis(feat[:, None, :, :], idx_t[:, :, :, None],
                              axis=2)                          # (B*S/d, k, P*d, 64) bf16

    # ---- fused: relu(bnDG1(convDG1)).max(k) + relu(bn2_add(conv2_add)) ----
    out = dg_conv2add(feat, nbr, pp['dg_wtop'], pp['dg_wdelta'], pp['dg_b'],
                      pp['c2a_w'], pp['c2a_b'], knn=k)         # (B*S/d, P*d, 32) f32

    out = jnp.transpose(out.reshape(Bz, S * P, 32), (0, 2, 1))
    return out.reshape(Bz, 32, S * P, 1)


if __name__ == "__main__":
    key = jax.random.PRNGKey(0)
    pkey, xkey = jax.random.split(key)
    params = prepare_params(init_params(pkey))
    x = jax.random.normal(xkey, (B, 1, NUM_POINTS, 3), dtype=jnp.float32)

    out = jax.jit(pploc3d_forward)(x, params)
    out = jax.block_until_ready(out)
    assert out.shape == (B, 32, SECTORS * NPOINT, 1), out.shape
    assert bool(jnp.all(jnp.isfinite(out)))
    print("KERNEL_OK")
</pallas_src>

<mosaic_0001>
module attributes {stable_mosaic.version = 11 : i64} {
  func.func @_stn_max_kernel(%arg0: i32, %arg1: i32, %arg2: memref<1x128x3xf32, #tpu.memory_space<vmem>>, %arg3: memref<3x64xf32, #tpu.memory_space<vmem>>, %arg4: memref<1x64xf32, #tpu.memory_space<vmem>>, %arg5: memref<64x128xbf16, #tpu.memory_space<vmem>>, %arg6: memref<1x128xf32, #tpu.memory_space<vmem>>, %arg7: memref<128x1024xbf16, #tpu.memory_space<vmem>>, %arg8: memref<1x1024xf32, #tpu.memory_space<vmem>>, %arg9: memref<1x1x1024xf32, #tpu.memory_space<vmem>>) attributes {dimension_semantics = [#tpu.dimension_semantics<parallel>, #tpu.dimension_semantics<arbitrary>], iteration_bounds = array<i64: 2, 1>, scalar_prefetch = 0 : i64, scratch_operands = 0 : i64, tpu.core_type = #tpu.core_type<tc>, window_params = [{transform_indices = @transform_0, window_bounds = array<i64: 1, 128, 3>}, {pipeline_mode = #tpu.pipeline_mode<synchronous>, transform_indices = @transform_1, window_bounds = array<i64: 3, 64>}, {pipeline_mode = #tpu.pipeline_mode<synchronous>, transform_indices = @transform_2, window_bounds = array<i64: 1, 64>}, {pipeline_mode = #tpu.pipeline_mode<synchronous>, transform_indices = @transform_3, window_bounds = array<i64: 64, 128>}, {pipeline_mode = #tpu.pipeline_mode<synchronous>, transform_indices = @transform_4, window_bounds = array<i64: 1, 128>}, {pipeline_mode = #tpu.pipeline_mode<synchronous>, transform_indices = @transform_5, window_bounds = array<i64: 128, 1024>}, {pipeline_mode = #tpu.pipeline_mode<synchronous>, transform_indices = @transform_6, window_bounds = array<i64: 1, 1024>}, {transform_indices = @transform_7, window_bounds = array<i64: 1, 1, 1024>}]} {
    %c0 = arith.constant 0 : index
    %c0_0 = arith.constant 0 : index
    %c0_1 = arith.constant 0 : index
    %0 = vector.load %arg2[%c0, %c0_0, %c0_1] : memref<1x128x3xf32, #tpu.memory_space<vmem>>, vector<1x128x3xf32>
    %1 = vector.shape_cast %0 : vector<1x128x3xf32> to vector<128x3xf32>
    %2 = vector.extract_strided_slice %1 {offsets = [0, 0], sizes = [128, 1], strides = [1, 1]} : vector<128x3xf32> to vector<128x1xf32>
    %c0_2 = arith.constant 0 : index
    %c0_3 = arith.constant 0 : index
    %3 = vector.load %arg3[%c0_2, %c0_3] : memref<3x64xf32, #tpu.memory_space<vmem>>, vector<1x64xf32>
    %4 = vector.broadcast %2 : vector<128x1xf32> to vector<128x64xf32>
    %5 = vector.broadcast %3 : vector<1x64xf32> to vector<128x64xf32>
    %6 = arith.mulf %4, %5 : vector<128x64xf32>
    %7 = vector.extract_strided_slice %1 {offsets = [0, 1], sizes = [128, 1], strides = [1, 1]} : vector<128x3xf32> to vector<128x1xf32>
    %c1 = arith.constant 1 : index
    %c0_4 = arith.constant 0 : index
    %8 = vector.load %arg3[%c1, %c0_4] : memref<3x64xf32, #tpu.memory_space<vmem>>, vector<1x64xf32>
    %9 = vector.broadcast %7 : vector<128x1xf32> to vector<128x64xf32>
    %10 = vector.broadcast %8 : vector<1x64xf32> to vector<128x64xf32>
    %11 = arith.mulf %9, %10 : vector<128x64xf32>
    %12 = arith.addf %6, %11 : vector<128x64xf32>
    %13 = vector.extract_strided_slice %1 {offsets = [0, 2], sizes = [128, 1], strides = [1, 1]} : vector<128x3xf32> to vector<128x1xf32>
    %c2 = arith.constant 2 : index
    %c0_5 = arith.constant 0 : index
    %14 = vector.load %arg3[%c2, %c0_5] : memref<3x64xf32, #tpu.memory_space<vmem>>, vector<1x64xf32>
    %15 = vector.broadcast %13 : vector<128x1xf32> to vector<128x64xf32>
    %16 = vector.broadcast %14 : vector<1x64xf32> to vector<128x64xf32>
    %17 = arith.mulf %15, %16 : vector<128x64xf32>
    %18 = arith.addf %12, %17 : vector<128x64xf32>
    %c0_6 = arith.constant 0 : index
    %c0_7 = arith.constant 0 : index
    %19 = vector.load %arg4[%c0_6, %c0_7] : memref<1x64xf32, #tpu.memory_space<vmem>>, vector<1x64xf32>
    %20 = vector.broadcast %19 : vector<1x64xf32> to vector<128x64xf32>
    %21 = arith.addf %18, %20 : vector<128x64xf32>
    %cst = arith.constant 0.000000e+00 : f32
    %22 = vector.broadcast %cst : f32 to vector<128x64xf32>
    %23 = arith.maximumf %21, %22 : vector<128x64xf32>
    %24 = arith.truncf %23 : vector<128x64xf32> to vector<128x64xbf16>
    %c0_8 = arith.constant 0 : index
    %c0_9 = arith.constant 0 : index
    %25 = vector.load %arg5[%c0_8, %c0_9] : memref<64x128xbf16, #tpu.memory_space<vmem>>, vector<64x128xbf16>
    %cst_10 = arith.constant dense<0.000000e+00> : vector<128x128xf32>
    %26 = tpu.matmul %24, %25, %cst_10 {dimension_numbers = #tpu.dot_dimension_numbers<[1], [0], [0], [1], [0, 0, 1, 1], [], []>} : vector<128x64xbf16>, vector<64x128xbf16>, vector<128x128xf32> -> vector<128x128xf32>
    %c0_11 = arith.constant 0 : index
    %c0_12 = arith.constant 0 : index
    %27 = vector.load %arg6[%c0_11, %c0_12] : memref<1x128xf32, #tpu.memory_space<vmem>>, vector<1x128xf32>
    %28 = vector.broadcast %27 : vector<1x128xf32> to vector<128x128xf32>
    %29 = arith.addf %26, %28 : vector<128x128xf32>
    %cst_13 = arith.constant 0.000000e+00 : f32
    %30 = vector.broadcast %cst_13 : f32 to vector<128x128xf32>
    %31 = arith.maximumf %29, %30 : vector<128x128xf32>
    %32 = arith.truncf %31 : vector<128x128xf32> to vector<128x128xbf16>
    %c0_14 = arith.constant 0 : index
    %c0_15 = arith.constant 0 : index
    %33 = vector.load %arg7[%c0_14, %c0_15] : memref<128x1024xbf16, #tpu.memory_space<vmem>>, vector<128x1024xbf16>
    %cst_16 = arith.constant dense<0.000000e+00> : vector<128x1024xf32>
    %34 = tpu.matmul %32, %33, %cst_16 {dimension_numbers = #tpu.dot_dimension_numbers<[1], [0], [0], [1], [0, 0, 1, 1], [], []>} : vector<128x128xbf16>, vector<128x1024xbf16>, vector<128x1024xf32> -> vector<128x1024xf32>
    %c0_17 = arith.constant 0 : index
    %c0_18 = arith.constant 0 : index
    %35 = vector.load %arg8[%c0_17, %c0_18] : memref<1x1024xf32, #tpu.memory_space<vmem>>, vector<1x1024xf32>
    %36 = vector.broadcast %35 : vector<1x1024xf32> to vector<128x1024xf32>
    %37 = arith.addf %34, %36 : vector<128x1024xf32>
    %cst_19 = arith.constant 0.000000e+00 : f32
    %38 = vector.broadcast %cst_19 : f32 to vector<128x1024xf32>
    %39 = arith.maximumf %37, %38 : vector<128x1024xf32>
    %cst_20 = arith.constant dense<0xFF800000> : vector<1024xf32>
    %40 = vector.multi_reduction <maximumf>, %39, %cst_20 [0] : vector<128x1024xf32> to vector<1024xf32>
    %41 = vector.shape_cast %40 : vector<1024xf32> to vector<1x1024xf32>
    %42 = vector.shape_cast %41 : vector<1x1024xf32> to vector<1x1x1024xf32>
    %c0_i32 = arith.constant 0 : i32
    %43 = arith.cmpi eq, %arg1, %c0_i32 : i32
    %44 = arith.extui %43 : i1 to i32
    %c0_i32_21 = arith.constant 0 : i32
    %45 = arith.cmpi ne, %44, %c0_i32_21 : i32
    scf.if %45 {
      %c0_24 = arith.constant 0 : index
      %c0_25 = arith.constant 0 : index
      %c0_26 = arith.constant 0 : index
      %49 = vector.load %arg9[%c0_24, %c0_25, %c0_26] : memref<1x1x1024xf32, #tpu.memory_space<vmem>>, vector<1x1x1024xf32>
      tpu.vector_store %arg9[%c0_24, %c0_25, %c0_26], %42 {strides = array<i32>} : memref<1x1x1024xf32, #tpu.memory_space<vmem>>, vector<1x1x1024xf32>,
    } else {
    }
    %c0_i32_22 = arith.constant 0 : i32
    %46 = arith.cmpi sgt, %arg1, %c0_i32_22 : i32
    %47 = arith.extui %46 : i1 to i32
    %c0_i32_23 = arith.constant 0 : i32
    %48 = arith.cmpi ne, %47, %c0_i32_23 : i32
    scf.if %48 {
      %c0_24 = arith.constant 0 : index
      %c0_25 = arith.constant 0 : index
      %c0_26 = arith.constant 0 : index
      %49 = vector.load %arg9[%c0_24, %c0_25, %c0_26] : memref<1x1x1024xf32, #tpu.memory_space<vmem>>, vector<1x1x1024xf32>
      %50 = arith.maximumf %49, %42 : vector<1x1x1024xf32>
      %c0_27 = arith.constant 0 : index
      %c0_28 = arith.constant 0 : index
      %c0_29 = arith.constant 0 : index
      %51 = vector.load %arg9[%c0_27, %c0_28, %c0_29] : memref<1x1x1024xf32, #tpu.memory_space<vmem>>, vector<1x1x1024xf32>
      tpu.vector_store %arg9[%c0_27, %c0_28, %c0_29], %50 {strides = array<i32>} : memref<1x1x1024xf32, #tpu.memory_space<vmem>>, vector<1x1x1024xf32>,
    } else {
    }
    return
  }
  func.func @transform_0(%arg0: i32, %arg1: i32) -> (i32, i32, i32) {
    %c0_i32 = arith.constant 0 : i32
    %c0_i32_0 = arith.constant 0 : i32
    return %arg0, %arg1, %c0_i32 : i32, i32, i32
  }
  func.func @transform_1(%arg0: i32, %arg1: i32) -> (i32, i32) {
    %c0_i32 = arith.constant 0 : i32
    %c0_i32_0 = arith.constant 0 : i32
    %c0_i32_1 = arith.constant 0 : i32
    return %c0_i32, %c0_i32_0 : i32, i32
  }
  func.func @transform_2(%arg0: i32, %arg1: i32) -> (i32, i32) {
    %c0_i32 = arith.constant 0 : i32
    %c0_i32_0 = arith.constant 0 : i32
    %c0_i32_1 = arith.constant 0 : i32
    return %c0_i32, %c0_i32_0 : i32, i32
  }
  func.func @transform_3(%arg0: i32, %arg1: i32) -> (i32, i32) {
    %c0_i32 = arith.constant 0 : i32
    %c0_i32_0 = arith.constant 0 : i32
    %c0_i32_1 = arith.constant 0 : i32
    return %c0_i32, %c0_i32_0 : i32, i32
  }
  func.func @transform_4(%arg0: i32, %arg1: i32) -> (i32, i32) {
    %c0_i32 = arith.constant 0 : i32
    %c0_i32_0 = arith.constant 0 : i32
    %c0_i32_1 = arith.constant 0 : i32
    return %c0_i32, %c0_i32_0 : i32, i32
  }
  func.func @transform_5(%arg0: i32, %arg1: i32) -> (i32, i32) {
    %c0_i32 = arith.constant 0 : i32
    %c0_i32_0 = arith.constant 0 : i32
    %c0_i32_1 = arith.constant 0 : i32
    return %c0_i32, %c0_i32_0 : i32, i32
  }
  func.func @transform_6(%arg0: i32, %arg1: i32) -> (i32, i32) {
    %c0_i32 = arith.constant 0 : i32
    %c0_i32_0 = arith.constant 0 : i32
    %c0_i32_1 = arith.constant 0 : i32
    return %c0_i32, %c0_i32_0 : i32, i32
  }
  func.func @transform_7(%arg0: i32, %arg1: i32) -> (i32, i32, i32) {
    %c0_i32 = arith.constant 0 : i32
    %c0_i32_0 = arith.constant 0 : i32
    %c0_i32_1 = arith.constant 0 : i32
    return %arg0, %c0_i32, %c0_i32_0 : i32, i32, i32
  }
}

module attributes {stable_mosaic.version = 11 : i64} {
  func.func @_stn_fc_kernel(%arg0: i32, %arg1: memref<2x1x1024xf32, #tpu.memory_space<vmem>>, %arg2: memref<1024x512xbf16, #tpu.memory_space<vmem>>, %arg3: memref<1x512xf32, #tpu.memory_space<vmem>>, %arg4: memref<512x256xbf16, #tpu.memory_space<vmem>>, %arg5: memref<1x256xf32, #tpu.memory_space<vmem>>, %arg6: memref<256x9xbf16, #tpu.memory_space<vmem>>, %arg7: memref<1x9xf32, #tpu.memory_space<vmem>>, %arg8: memref<2x9xf32, #tpu.memory_space<vmem>>) attributes {dimension_semantics = [#tpu.dimension_semantics<arbitrary>], iteration_bounds = array<i64: 1>, scalar_prefetch = 0 : i64, scratch_operands = 0 : i64, tpu.core_type = #tpu.core_type<tc>, window_params = [{pipeline_mode = #tpu.pipeline_mode<synchronous>, transform_indices = @transform_0, window_bounds = array<i64: 2, 1, 1024>}, {pipeline_mode = #tpu.pipeline_mode<synchronous>, transform_indices = @transform_1, window_bounds = array<i64: 1024, 512>}, {pipeline_mode = #tpu.pipeline_mode<synchronous>, transform_indices = @transform_2, window_bounds = array<i64: 1, 512>}, {pipeline_mode = #tpu.pipeline_mode<synchronous>, transform_indices = @transform_3, window_bounds = array<i64: 512, 256>}, {pipeline_mode = #tpu.pipeline_mode<synchronous>, transform_indices = @transform_4, window_bounds = array<i64: 1, 256>}, {pipeline_mode = #tpu.pipeline_mode<synchronous>, transform_indices = @transform_5, window_bounds = array<i64: 256, 9>}, {pipeline_mode = #tpu.pipeline_mode<synchronous>, transform_indices = @transform_6, window_bounds = array<i64: 1, 9>}, {pipeline_mode = #tpu.pipeline_mode<synchronous>, transform_indices = @transform_7, window_bounds = array<i64: 2, 9>}]} {
    %c0 = arith.constant 0 : index
    %c0_0 = arith.constant 0 : index
    %c0_1 = arith.constant 0 : index
    %0 = vector.load %arg1[%c0, %c0_0, %c0_1] : memref<2x1x1024xf32, #tpu.memory_space<vmem>>, vector<2x1x1024xf32>
    %1 = vector.shape_cast %0 : vector<2x1x1024xf32> to vector<2x1024xf32>
    %2 = arith.truncf %1 : vector<2x1024xf32> to vector<2x1024xbf16>
    %c0_2 = arith.constant 0 : index
    %c0_3 = arith.constant 0 : index
    %3 = vector.load %arg2[%c0_2, %c0_3] : memref<1024x512xbf16, #tpu.memory_space<vmem>>, vector<1024x512xbf16>
    %cst = arith.constant dense<0.000000e+00> : vector<2x512xf32>
    %4 = tpu.matmul %2, %3, %cst {dimension_numbers = #tpu.dot_dimension_numbers<[1], [0], [0], [1], [0, 0, 1, 1], [], []>} : vector<2x1024xbf16>, vector<1024x512xbf16>, vector<2x512xf32> -> vector<2x512xf32>
    %c0_4 = arith.constant 0 : index
    %c0_5 = arith.constant 0 : index
    %5 = vector.load %arg3[%c0_4, %c0_5] : memref<1x512xf32, #tpu.memory_space<vmem>>, vector<1x512xf32>
    %6 = vector.broadcast %5 : vector<1x512xf32> to vector<2x512xf32>
    %7 = arith.addf %4, %6 : vector<2x512xf32>
    %cst_6 = arith.constant 0.000000e+00 : f32
    %8 = vector.broadcast %cst_6 : f32 to vector<2x512xf32>
    %9 = arith.maximumf %7, %8 : vector<2x512xf32>
    %10 = arith.truncf %9 : vector<2x512xf32> to vector<2x512xbf16>
    %c0_7 = arith.constant 0 : index
    %c0_8 = arith.constant 0 : index
    %11 = vector.load %arg4[%c0_7, %c0_8] : memref<512x256xbf16, #tpu.memory_space<vmem>>, vector<512x256xbf16>
    %cst_9 = arith.constant dense<0.000000e+00> : vector<2x256xf32>
    %12 = tpu.matmul %10, %11, %cst_9 {dimension_numbers = #tpu.dot_dimension_numbers<[1], [0], [0], [1], [0, 0, 1, 1], [], []>} : vector<2x512xbf16>, vector<512x256xbf16>, vector<2x256xf32> -> vector<2x256xf32>
    %c0_10 = arith.constant 0 : index
    %c0_11 = arith.constant 0 : index
    %13 = vector.load %arg5[%c0_10, %c0_11] : memref<1x256xf32, #tpu.memory_space<vmem>>, vector<1x256xf32>
    %14 = vector.broadcast %13 : vector<1x256xf32> to vector<2x256xf32>
    %15 = arith.addf %12, %14 : vector<2x256xf32>
    %cst_12 = arith.constant 0.000000e+00 : f32
    %16 = vector.broadcast %cst_12 : f32 to vector<2x256xf32>
    %17 = arith.maximumf %15, %16 : vector<2x256xf32>
    %18 = arith.truncf %17 : vector<2x256xf32> to vector<2x256xbf16>
    %c0_13 = arith.constant 0 : index
    %c0_14 = arith.constant 0 : index
    %19 = vector.load %arg6[%c0_13, %c0_14] : memref<256x9xbf16, #tpu.memory_space<vmem>>, vector<256x9xbf16>
    %cst_15 = arith.constant dense<0.000000e+00> : vector<2x9xf32>
    %20 = tpu.matmul %18, %19, %cst_15 {dimension_numbers = #tpu.dot_dimension_numbers<[1], [0], [0], [1], [0, 0, 1, 1], [], []>} : vector<2x256xbf16>, vector<256x9xbf16>, vector<2x9xf32> -> vector<2x9xf32>
    %c0_16 = arith.constant 0 : index
    %c0_17 = arith.constant 0 : index
    %21 = vector.load %arg7[%c0_16, %c0_17] : memref<1x9xf32, #tpu.memory_space<vmem>>, vector<1x9xf32>
    %22 = vector.broadcast %21 : vector<1x9xf32> to vector<2x9xf32>
    %23 = arith.addf %20, %22 : vector<2x9xf32>
    %c0_18 = arith.constant 0 : index
    %c0_19 = arith.constant 0 : index
    %24 = vector.load %arg8[%c0_18, %c0_19] : memref<2x9xf32, #tpu.memory_space<vmem>>, vector<2x9xf32>
    tpu.vector_store %arg8[%c0_18, %c0_19], %23 {strides = array<i32>} : memref<2x9xf32, #tpu.memory_space<vmem>>, vector<2x9xf32>,
    return
  }
  func.func @transform_0(%arg0: i32) -> (i32, i32, i32) {
    %c0_i32 = arith.constant 0 : i32
    %c0_i32_0 = arith.constant 0 : i32
    %c0_i32_1 = arith.constant 0 : i32
    %c0_i32_2 = arith.constant 0 : i32
    return %c0_i32, %c0_i32_0, %c0_i32_1 : i32, i32, i32
  }
  func.func @transform_1(%arg0: i32) -> (i32, i32) {
    %c0_i32 = arith.constant 0 : i32
    %c0_i32_0 = arith.constant 0 : i32
    %c0_i32_1 = arith.constant 0 : i32
    return %c0_i32, %c0_i32_0 : i32, i32
  }
  func.func @transform_2(%arg0: i32) -> (i32, i32) {
    %c0_i32 = arith.constant 0 : i32
    %c0_i32_0 = arith.constant 0 : i32
    %c0_i32_1 = arith.constant 0 : i32
    return %c0_i32, %c0_i32_0 : i32, i32
  }
  func.func @transform_3(%arg0: i32) -> (i32, i32) {
    %c0_i32 = arith.constant 0 : i32
    %c0_i32_0 = arith.constant 0 : i32
    %c0_i32_1 = arith.constant 0 : i32
    return %c0_i32, %c0_i32_0 : i32, i32
  }
  func.func @transform_4(%arg0: i32) -> (i32, i32) {
    %c0_i32 = arith.constant 0 : i32
    %c0_i32_0 = arith.constant 0 : i32
    %c0_i32_1 = arith.constant 0 : i32
    return %c0_i32, %c0_i32_0 : i32, i32
  }
  func.func @transform_5(%arg0: i32) -> (i32, i32) {
    %c0_i32 = arith.constant 0 : i32
    %c0_i32_0 = arith.constant 0 : i32
    %c0_i32_1 = arith.constant 0 : i32
    return %c0_i32, %c0_i32_0 : i32, i32
  }
  func.func @transform_6(%arg0: i32) -> (i32, i32) {
    %c0_i32 = arith.constant 0 : i32
    %c0_i32_0 = arith.constant 0 : i32
    %c0_i32_1 = arith.constant 0 : i32
    return %c0_i32, %c0_i32_0 : i32, i32
  }
  func.func @transform_7(%arg0: i32) -> (i32, i32) {
    %c0_i32 = arith.constant 0 : i32
    %c0_i32_0 = arith.constant 0 : i32
    %c0_i32_1 = arith.constant 0 : i32
    return %c0_i32, %c0_i32_0 : i32, i32
  }
}

module attributes {stable_mosaic.version = 11 : i64} {
  func.func @_rz_pe_conv0_kernel(%arg0: i32, %arg1: i32, %arg2: i32, %arg3: memref<1x1x2x16x3xf32, #tpu.memory_space<vmem>>, %arg4: memref<1x3x3xf32, #tpu.memory_space<vmem>>, %arg5: memref<2x48xf32, #tpu.memory_space<vmem>>, %arg6: memref<2x16x48xf32, #tpu.memory_space<vmem>>, %arg7: memref<48x64xbf16, #tpu.memory_space<vmem>>, %arg8: memref<1x64xf32, #tpu.memory_space<vmem>>, %arg9: memref<1x2x16x64xbf16, #tpu.memory_space<vmem>>) attributes {dimension_semantics = [#tpu.dimension_semantics<parallel>, #tpu.dimension_semantics<parallel>, #tpu.dimension_semantics<parallel>], iteration_bounds = array<i64: 2, 4, 1>, scalar_prefetch = 0 : i64, scratch_operands = 0 : i64, tpu.core_type = #tpu.core_type<tc>, window_params = [{transform_indices = @transform_0, window_bounds = array<i64: 1, 1, 2, 16, 3>}, {transform_indices = @transform_1, window_bounds = array<i64: 1, 3, 3>}, {pipeline_mode = #tpu.pipeline_mode<synchronous>, transform_indices = @transform_2, window_bounds = array<i64: 2, 48>}, {transform_indices = @transform_3, window_bounds = array<i64: 2, 16, 48>}, {pipeline_mode = #tpu.pipeline_mode<synchronous>, transform_indices = @transform_4, window_bounds = array<i64: 48, 64>}, {pipeline_mode = #tpu.pipeline_mode<synchronous>, transform_indices = @transform_5, window_bounds = array<i64: 1, 64>}, {transform_indices = @transform_6, window_bounds = array<i64: 1, 2, 16, 64>}]} {
    %c0 = arith.constant 0 : index
    %c0_0 = arith.constant 0 : index
    %c0_1 = arith.constant 0 : index
    %0 = vector.load %arg4[%c0, %c0_0, %c0_1] : memref<1x3x3xf32, #tpu.memory_space<vmem>>, vector<1x3x3xf32>
    %1 = vector.shape_cast %0 : vector<1x3x3xf32> to vector<3x3xf32>
    %c0_2 = arith.constant 0 : index
    %c0_3 = arith.constant 0 : index
    %c0_4 = arith.constant 0 : index
    %c0_5 = arith.constant 0 : index
    %c0_6 = arith.constant 0 : index
    %2 = vector.load %arg3[%c0_2, %c0_3, %c0_4, %c0_5, %c0_6] : memref<1x1x2x16x3xf32, #tpu.memory_space<vmem>>, vector<1x1x2x16x3xf32>
    %3 = vector.shape_cast %2 : vector<1x1x2x16x3xf32> to vector<2x16x3xf32>
    %4 = vector.shape_cast %3 : vector<2x16x3xf32> to vector<32x3xf32>
    %5 = vector.extract_strided_slice %4 {offsets = [0, 0], sizes = [32, 1], strides = [1, 1]} : vector<32x3xf32> to vector<32x1xf32>
    %6 = vector.extract_strided_slice %1 {offsets = [0, 0], sizes = [1, 3], strides = [1, 1]} : vector<3x3xf32> to vector<1x3xf32>
    %7 = vector.broadcast %5 : vector<32x1xf32> to vector<32x3xf32>
    %8 = vector.broadcast %6 : vector<1x3xf32> to vector<32x3xf32>
    %9 = arith.mulf %7, %8 : vector<32x3xf32>
    %10 = vector.extract_strided_slice %4 {offsets = [0, 1], sizes = [32, 1], strides = [1, 1]} : vector<32x3xf32> to vector<32x1xf32>
    %11 = vector.extract_strided_slice %1 {offsets = [1, 0], sizes = [1, 3], strides = [1, 1]} : vector<3x3xf32> to vector<1x3xf32>
    %12 = vector.broadcast %10 : vector<32x1xf32> to vector<32x3xf32>
    %13 = vector.broadcast %11 : vector<1x3xf32> to vector<32x3xf32>
    %14 = arith.mulf %12, %13 : vector<32x3xf32>
    %15 = arith.addf %9, %14 : vector<32x3xf32>
    %16 = vector.extract_strided_slice %4 {offsets = [0, 2], sizes = [32, 1], strides = [1, 1]} : vector<32x3xf32> to vector<32x1xf32>
    %17 = vector.extract_strided_slice %1 {offsets = [2, 0], sizes = [1, 3], strides = [1, 1]} : vector<3x3xf32> to vector<1x3xf32>
    %18 = vector.broadcast %16 : vector<32x1xf32> to vector<32x3xf32>
    %19 = vector.broadcast %17 : vector<1x3xf32> to vector<32x3xf32>
    %20 = arith.mulf %18, %19 : vector<32x3xf32>
    %21 = arith.addf %15, %20 : vector<32x3xf32>
    %22 = vector.extract_strided_slice %21 {offsets = [0, 0], sizes = [32, 1], strides = [1, 1]} : vector<32x3xf32> to vector<32x1xf32>
    %23 = vector.extract_strided_slice %21 {offsets = [0, 0], sizes = [32, 1], strides = [1, 1]} : vector<32x3xf32> to vector<32x1xf32>
    %24 = arith.mulf %22, %23 : vector<32x1xf32>
    %25 = vector.extract_strided_slice %21 {offsets = [0, 1], sizes = [32, 1], strides = [1, 1]} : vector<32x3xf32> to vector<32x1xf32>
    %26 = vector.extract_strided_slice %21 {offsets = [0, 1], sizes = [32, 1], strides = [1, 1]} : vector<32x3xf32> to vector<32x1xf32>
    %27 = arith.mulf %25, %26 : vector<32x1xf32>
    %28 = arith.addf %24, %27 : vector<32x1xf32>
    %29 = math.sqrt %28 : vector<32x1xf32>
    %30 = vector.extract_strided_slice %21 {offsets = [0, 2], sizes = [32, 1], strides = [1, 1]} : vector<32x3xf32> to vector<32x1xf32>
    %c0_7 = arith.constant 0 : index
    %c0_8 = arith.constant 0 : index
    %c0_9 = arith.constant 0 : index
    %31 = vector.load %arg6[%c0_7, %c0_8, %c0_9] : memref<2x16x48xf32, #tpu.memory_space<vmem>>, vector<2x16x48xf32>
    %32 = vector.shape_cast %31 : vector<2x16x48xf32> to vector<32x48xf32>
    %c0_10 = arith.constant 0 : index
    %c0_11 = arith.constant 0 : index
    %33 = vector.load %arg5[%c0_10, %c0_11] : memref<2x48xf32, #tpu.memory_space<vmem>>, vector<1x48xf32>
    %34 = vector.broadcast %29 : vector<32x1xf32> to vector<32x48xf32>
    %35 = vector.broadcast %33 : vector<1x48xf32> to vector<32x48xf32>
    %36 = arith.mulf %34, %35 : vector<32x48xf32>
    %c1 = arith.constant 1 : index
    %c0_12 = arith.constant 0 : index
    %37 = vector.load %arg5[%c1, %c0_12] : memref<2x48xf32, #tpu.memory_space<vmem>>, vector<1x48xf32>
    %38 = vector.broadcast %30 : vector<32x1xf32> to vector<32x48xf32>
    %39 = vector.broadcast %37 : vector<1x48xf32> to vector<32x48xf32>
    %40 = arith.mulf %38, %39 : vector<32x48xf32>
    %41 = arith.addf %36, %40 : vector<32x48xf32>
    %42 = arith.addf %41, %32 : vector<32x48xf32>
    %cst = arith.constant 0.000000e+00 : f32
    %43 = vector.broadcast %cst : f32 to vector<32x48xf32>
    %44 = arith.maximumf %42, %43 : vector<32x48xf32>
    %45 = arith.truncf %44 : vector<32x48xf32> to vector<32x48xbf16>
    %c0_13 = arith.constant 0 : index
    %c0_14 = arith.constant 0 : index
    %46 = vector.load %arg7[%c0_13, %c0_14] : memref<48x64xbf16, #tpu.memory_space<vmem>>, vector<48x64xbf16>
    %cst_15 = arith.constant dense<0.000000e+00> : vector<32x64xf32>
    %47 = tpu.matmul %45, %46, %cst_15 {dimension_numbers = #tpu.dot_dimension_numbers<[1], [0], [0], [1], [0, 0, 1, 1], [], []>} : vector<32x48xbf16>, vector<48x64xbf16>, vector<32x64xf32> -> vector<32x64xf32>
    %c0_16 = arith.constant 0 : index
    %c0_17 = arith.constant 0 : index
    %48 = vector.load %arg8[%c0_16, %c0_17] : memref<1x64xf32, #tpu.memory_space<vmem>>, vector<1x64xf32>
    %49 = vector.broadcast %48 : vector<1x64xf32> to vector<32x64xf32>
    %50 = arith.addf %47, %49 : vector<32x64xf32>
    %cst_18 = arith.constant 0.000000e+00 : f32
    %51 = vector.broadcast %cst_18 : f32 to vector<32x64xf32>
    %52 = arith.maximumf %50, %51 : vector<32x64xf32>
    %53 = vector.extract_strided_slice %52 {offsets = [0, 0], sizes = [16, 64], strides = [1, 1]} : vector<32x64xf32> to vector<16x64xf32>
    %54 = vector.extract_strided_slice %53 {offsets = [0, 0], sizes = [16, 32], strides = [1, 1]} : vector<16x64xf32> to vector<16x32xf32>
    %55 = arith.truncf %54 : vector<16x32xf32> to vector<16x32xbf16>
    %c0_19 = arith.constant 0 : index
    %c0_20 = arith.constant 0 : index
    %c0_21 = arith.constant 0 : index
    %c0_22 = arith.constant 0 : index
    %56 = vector.load %arg9[%c0_19, %c0_20, %c0_21, %c0_22] : memref<1x2x16x64xbf16, #tpu.memory_space<vmem>>, vector<1x1x16x32xbf16>
    %57 = vector.shape_cast %56 : vector<1x1x16x32xbf16> to vector<16x32xbf16>
    %58 = vector.shape_cast %55 : vector<16x32xbf16> to vector<1x1x16x32xbf16>
    tpu.vector_store %arg9[%c0_19, %c0_20, %c0_21, %c0_22], %58 {strides = array<i32>} : memref<1x2x16x64xbf16, #tpu.memory_space<vmem>>, vector<1x1x16x32xbf16>,
    %59 = vector.extract_strided_slice %53 {offsets = [0, 32], sizes = [16, 32], strides = [1, 1]} : vector<16x64xf32> to vector<16x32xf32>
    %60 = arith.truncf %59 : vector<16x32xf32> to vector<16x32xbf16>
    %c0_23 = arith.constant 0 : index
    %c1_24 = arith.constant 1 : index
    %c0_25 = arith.constant 0 : index
    %c0_26 = arith.constant 0 : index
    %61 = vector.load %arg9[%c0_23, %c1_24, %c0_25, %c0_26] : memref<1x2x16x64xbf16, #tpu.memory_space<vmem>>, vector<1x1x16x32xbf16>
    %62 = vector.shape_cast %61 : vector<1x1x16x32xbf16> to vector<16x32xbf16>
    %63 = vector.shape_cast %60 : vector<16x32xbf16> to vector<1x1x16x32xbf16>
    tpu.vector_store %arg9[%c0_23, %c1_24, %c0_25, %c0_26], %63 {strides = array<i32>} : memref<1x2x16x64xbf16, #tpu.memory_space<vmem>>, vector<1x1x16x32xbf16>,
    %64 = vector.extract_strided_slice %52 {offsets = [16, 0], sizes = [16, 64], strides = [1, 1]} : vector<32x64xf32> to vector<16x64xf32>
    %65 = vector.extract_strided_slice %64 {offsets = [0, 0], sizes = [16, 32], strides = [1, 1]} : vector<16x64xf32> to vector<16x32xf32>
    %66 = arith.truncf %65 : vector<16x32xf32> to vector<16x32xbf16>
    %c0_27 = arith.constant 0 : index
    %c0_28 = arith.constant 0 : index
    %c0_29 = arith.constant 0 : index
    %c32 = arith.constant 32 : index
    %67 = vector.load %arg9[%c0_27, %c0_28, %c0_29, %c32] : memref<1x2x16x64xbf16, #tpu.memory_space<vmem>>, vector<1x1x16x32xbf16>
    %68 = vector.shape_cast %67 : vector<1x1x16x32xbf16> to vector<16x32xbf16>
    %69 = vector.shape_cast %66 : vector<16x32xbf16> to vector<1x1x16x32xbf16>
    tpu.vector_store %arg9[%c0_27, %c0_28, %c0_29, %c32], %69 {strides = array<i32>} : memref<1x2x16x64xbf16, #tpu.memory_space<vmem>>, vector<1x1x16x32xbf16>,
    %70 = vector.extract_strided_slice %64 {offsets = [0, 32], sizes = [16, 32], strides = [1, 1]} : vector<16x64xf32> to vector<16x32xf32>
    %71 = arith.truncf %70 : vector<16x32xf32> to vector<16x32xbf16>
    %c0_30 = arith.constant 0 : index
    %c1_31 = arith.constant 1 : index
    %c0_32 = arith.constant 0 : index
    %c32_33 = arith.constant 32 : index
    %72 = vector.load %arg9[%c0_30, %c1_31, %c0_32, %c32_33] : memref<1x2x16x64xbf16, #tpu.memory_space<vmem>>, vector<1x1x16x32xbf16>
    %73 = vector.shape_cast %72 : vector<1x1x16x32xbf16> to vector<16x32xbf16>
    %74 = vector.shape_cast %71 : vector<16x32xbf16> to vector<1x1x16x32xbf16>
    tpu.vector_store %arg9[%c0_30, %c1_31, %c0_32, %c32_33], %74 {strides = array<i32>} : memref<1x2x16x64xbf16, #tpu.memory_space<vmem>>, vector<1x1x16x32xbf16>,
    return
  }
  func.func @transform_0(%arg0: i32, %arg1: i32, %arg2: i32) -> (i32, i32, i32, i32, i32) {
    %c0_i32 = arith.constant 0 : i32
    %c0_i32_0 = arith.constant 0 : i32
    %c0_i32_1 = arith.constant 0 : i32
    return %arg0, %arg1, %c0_i32, %arg2, %c0_i32_0 : i32, i32, i32, i32, i32
  }
  func.func @transform_1(%arg0: i32, %arg1: i32, %arg2: i32) -> (i32, i32, i32) {
    %c0_i32 = arith.constant 0 : i32
    %c0_i32_0 = arith.constant 0 : i32
    %c0_i32_1 = arith.constant 0 : i32
    return %arg0, %c0_i32, %c0_i32_0 : i32, i32, i32
  }
  func.func @transform_2(%arg0: i32, %arg1: i32, %arg2: i32) -> (i32, i32) {
    %c0_i32 = arith.constant 0 : i32
    %c0_i32_0 = arith.constant 0 : i32
    %c0_i32_1 = arith.constant 0 : i32
    return %c0_i32, %c0_i32_0 : i32, i32
  }
  func.func @transform_3(%arg0: i32, %arg1: i32, %arg2: i32) -> (i32, i32, i32) {
    %c0_i32 = arith.constant 0 : i32
    %c0_i32_0 = arith.constant 0 : i32
    %c0_i32_1 = arith.constant 0 : i32
    return %c0_i32, %arg2, %c0_i32_0 : i32, i32, i32
  }
  func.func @transform_4(%arg0: i32, %arg1: i32, %arg2: i32) -> (i32, i32) {
    %c0_i32 = arith.constant 0 : i32
    %c0_i32_0 = arith.constant 0 : i32
    %c0_i32_1 = arith.constant 0 : i32
    return %c0_i32, %c0_i32_0 : i32, i32
  }
  func.func @transform_5(%arg0: i32, %arg1: i32, %arg2: i32) -> (i32, i32) {
    %c0_i32 = arith.constant 0 : i32
    %c0_i32_0 = arith.constant 0 : i32
    %c0_i32_1 = arith.constant 0 : i32
    return %c0_i32, %c0_i32_0 : i32, i32
  }
  func.func @transform_6(%arg0: i32, %arg1: i32, %arg2: i32) -> (i32, i32, i32, i32) {
    %c4_i32 = arith.constant 4 : i32
    %0 = arith.muli %arg0, %c4_i32 : i32
    %1 = arith.addi %0, %arg1 : i32
    %c0_i32 = arith.constant 0 : i32
    %c0_i32_0 = arith.constant 0 : i32
    %c0_i32_1 = arith.constant 0 : i32
    return %1, %c0_i32, %arg2, %c0_i32_0 : i32, i32, i32, i32
  }
}

module attributes {stable_mosaic.version = 11 : i64} {
  func.func @_dg_conv2add_kernel(%arg0: i32, %arg1: i32, %arg2: memref<1x32x64xbf16, #tpu.memory_space<vmem>>, %arg3: memref<1x4x32x64xbf16, #tpu.memory_space<vmem>>, %arg4: memref<64x128xbf16, #tpu.memory_space<vmem>>, %arg5: memref<64x128xbf16, #tpu.memory_space<vmem>>, %arg6: memref<1x128xf32, #tpu.memory_space<vmem>>, %arg7: memref<128x32xbf16, #tpu.memory_space<vmem>>, %arg8: memref<1x32xf32, #tpu.memory_space<vmem>>, %arg9: memref<1x32x32xf32, #tpu.memory_space<vmem>>) attributes {dimension_semantics = [#tpu.dimension_semantics<parallel>, #tpu.dimension_semantics<parallel>], iteration_bounds = array<i64: 8, 1>, scalar_prefetch = 0 : i64, scratch_operands = 0 : i64, tpu.core_type = #tpu.core_type<tc>, window_params = [{transform_indices = @transform_0, window_bounds = array<i64: 1, 32, 64>}, {transform_indices = @transform_1, window_bounds = array<i64: 1, 4, 32, 64>}, {pipeline_mode = #tpu.pipeline_mode<synchronous>, transform_indices = @transform_2, window_bounds = array<i64: 64, 128>}, {pipeline_mode = #tpu.pipeline_mode<synchronous>, transform_indices = @transform_3, window_bounds = array<i64: 64, 128>}, {pipeline_mode = #tpu.pipeline_mode<synchronous>, transform_indices = @transform_4, window_bounds = array<i64: 1, 128>}, {pipeline_mode = #tpu.pipeline_mode<synchronous>, transform_indices = @transform_5, window_bounds = array<i64: 128, 32>}, {pipeline_mode = #tpu.pipeline_mode<synchronous>, transform_indices = @transform_6, window_bounds = array<i64: 1, 32>}, {transform_indices = @transform_7, window_bounds = array<i64: 1, 32, 32>}]} {
    %c0 = arith.constant 0 : index
    %c0_0 = arith.constant 0 : index
    %c0_1 = arith.constant 0 : index
    %c0_2 = arith.constant 0 : index
    %0 = vector.load %arg3[%c0, %c0_0, %c0_1, %c0_2] : memref<1x4x32x64xbf16, #tpu.memory_space<vmem>>, vector<1x4x32x64xbf16>
    %1 = vector.shape_cast %0 : vector<1x4x32x64xbf16> to vector<4x32x64xbf16>
    %2 = vector.shape_cast %1 : vector<4x32x64xbf16> to vector<128x64xbf16>
    %c0_3 = arith.constant 0 : index
    %c0_4 = arith.constant 0 : index
    %3 = vector.load %arg4[%c0_3, %c0_4] : memref<64x128xbf16, #tpu.memory_space<vmem>>, vector<64x128xbf16>
    %cst = arith.constant dense<0.000000e+00> : vector<128x128xf32>
    %4 = tpu.matmul %2, %3, %cst {dimension_numbers = #tpu.dot_dimension_numbers<[1], [0], [0], [1], [0, 0, 1, 1], [], []>} : vector<128x64xbf16>, vector<64x128xbf16>, vector<128x128xf32> -> vector<128x128xf32>
    %5 = vector.extract_strided_slice %4 {offsets = [0, 0], sizes = [32, 128], strides = [1, 1]} : vector<128x128xf32> to vector<32x128xf32>
    %6 = vector.extract_strided_slice %4 {offsets = [32, 0], sizes = [32, 128], strides = [1, 1]} : vector<128x128xf32> to vector<32x128xf32>
    %7 = arith.maximumf %5, %6 : vector<32x128xf32>
    %8 = vector.extract_strided_slice %4 {offsets = [64, 0], sizes = [32, 128], strides = [1, 1]} : vector<128x128xf32> to vector<32x128xf32>
    %9 = arith.maximumf %7, %8 : vector<32x128xf32>
    %10 = vector.extract_strided_slice %4 {offsets = [96, 0], sizes = [32, 128], strides = [1, 1]} : vector<128x128xf32> to vector<32x128xf32>
    %11 = arith.maximumf %9, %10 : vector<32x128xf32>
    %c0_5 = arith.constant 0 : index
    %c0_6 = arith.constant 0 : index
    %c0_7 = arith.constant 0 : index
    %12 = vector.load %arg2[%c0_5, %c0_6, %c0_7] : memref<1x32x64xbf16, #tpu.memory_space<vmem>>, vector<1x32x64xbf16>
    %13 = vector.shape_cast %12 : vector<1x32x64xbf16> to vector<32x64xbf16>
    %c0_8 = arith.constant 0 : index
    %c0_9 = arith.constant 0 : index
    %14 = vector.load %arg5[%c0_8, %c0_9] : memref<64x128xbf16, #tpu.memory_space<vmem>>, vector<64x128xbf16>
    %cst_10 = arith.constant dense<0.000000e+00> : vector<32x128xf32>
    %15 = tpu.matmul %13, %14, %cst_10 {dimension_numbers = #tpu.dot_dimension_numbers<[1], [0], [0], [1], [0, 0, 1, 1], [], []>} : vector<32x64xbf16>, vector<64x128xbf16>, vector<32x128xf32> -> vector<32x128xf32>
    %c0_11 = arith.constant 0 : index
    %c0_12 = arith.constant 0 : index
    %16 = vector.load %arg6[%c0_11, %c0_12] : memref<1x128xf32, #tpu.memory_space<vmem>>, vector<1x128xf32>
    %17 = vector.broadcast %16 : vector<1x128xf32> to vector<32x128xf32>
    %18 = arith.addf %15, %17 : vector<32x128xf32>
    %19 = arith.addf %11, %18 : vector<32x128xf32>
    %cst_13 = arith.constant 0.000000e+00 : f32
    %20 = vector.broadcast %cst_13 : f32 to vector<32x128xf32>
    %21 = arith.maximumf %19, %20 : vector<32x128xf32>
    %22 = arith.truncf %21 : vector<32x128xf32> to vector<32x128xbf16>
    %c0_14 = arith.constant 0 : index
    %c0_15 = arith.constant 0 : index
    %23 = vector.load %arg7[%c0_14, %c0_15] : memref<128x32xbf16, #tpu.memory_space<vmem>>, vector<128x32xbf16>
    %cst_16 = arith.constant dense<0.000000e+00> : vector<32x32xf32>
    %24 = tpu.matmul %22, %23, %cst_16 {dimension_numbers = #tpu.dot_dimension_numbers<[1], [0], [0], [1], [0, 0, 1, 1], [], []>} : vector<32x128xbf16>, vector<128x32xbf16>, vector<32x32xf32> -> vector<32x32xf32>
    %c0_17 = arith.constant 0 : index
    %c0_18 = arith.constant 0 : index
    %25 = vector.load %arg8[%c0_17, %c0_18] : memref<1x32xf32, #tpu.memory_space<vmem>>, vector<1x32xf32>
    %26 = vector.broadcast %25 : vector<1x32xf32> to vector<32x32xf32>
    %27 = arith.addf %24, %26 : vector<32x32xf32>
    %cst_19 = arith.constant 0.000000e+00 : f32
    %28 = vector.broadcast %cst_19 : f32 to vector<32x32xf32>
    %29 = arith.maximumf %27, %28 : vector<32x32xf32>
    %c0_20 = arith.constant 0 : index
    %c0_21 = arith.constant 0 : index
    %c0_22 = arith.constant 0 : index
    %30 = vector.load %arg9[%c0_20, %c0_21, %c0_22] : memref<1x32x32xf32, #tpu.memory_space<vmem>>, vector<1x32x32xf32>
    %31 = vector.shape_cast %30 : vector<1x32x32xf32> to vector<32x32xf32>
    %32 = vector.shape_cast %29 : vector<32x32xf32> to vector<1x32x32xf32>
    tpu.vector_store %arg9[%c0_20, %c0_21, %c0_22], %32 {strides = array<i32>} : memref<1x32x32xf32, #tpu.memory_space<vmem>>, vector<1x32x32xf32>,
    return
  }
  func.func @transform_0(%arg0: i32, %arg1: i32) -> (i32, i32, i32) {
    %c0_i32 = arith.constant 0 : i32
    %c0_i32_0 = arith.constant 0 : i32
    return %arg0, %arg1, %c0_i32 : i32, i32, i32
  }
  func.func @transform_1(%arg0: i32, %arg1: i32) -> (i32, i32, i32, i32) {
    %c0_i32 = arith.constant 0 : i32
    %c0_i32_0 = arith.constant 0 : i32
    %c0_i32_1 = arith.constant 0 : i32
    return %arg0, %c0_i32, %arg1, %c0_i32_0 : i32, i32, i32, i32
  }
  func.func @transform_2(%arg0: i32, %arg1: i32) -> (i32, i32) {
    %c0_i32 = arith.constant 0 : i32
    %c0_i32_0 = arith.constant 0 : i32
    %c0_i32_1 = arith.constant 0 : i32
    return %c0_i32, %c0_i32_0 : i32, i32
  }
  func.func @transform_3(%arg0: i32, %arg1: i32) -> (i32, i32) {
    %c0_i32 = arith.constant 0 : i32
    %c0_i32_0 = arith.constant 0 : i32
    %c0_i32_1 = arith.constant 0 : i32
    return %c0_i32, %c0_i32_0 : i32, i32
  }
  func.func @transform_4(%arg0: i32, %arg1: i32) -> (i32, i32) {
    %c0_i32 = arith.constant 0 : i32
    %c0_i32_0 = arith.constant 0 : i32
    %c0_i32_1 = arith.constant 0 : i32
    return %c0_i32, %c0_i32_0 : i32, i32
  }
  func.func @transform_5(%arg0: i32, %arg1: i32) -> (i32, i32) {
    %c0_i32 = arith.constant 0 : i32
    %c0_i32_0 = arith.constant 0 : i32
    %c0_i32_1 = arith.constant 0 : i32
    return %c0_i32, %c0_i32_0 : i32, i32
  }
  func.func @transform_6(%arg0: i32, %arg1: i32) -> (i32, i32) {
    %c0_i32 = arith.constant 0 : i32
    %c0_i32_0 = arith.constant 0 : i32
    %c0_i32_1 = arith.constant 0 : i32
    return %c0_i32, %c0_i32_0 : i32, i32
  }
  func.func @transform_7(%arg0: i32, %arg1: i32) -> (i32, i32, i32) {
    %c0_i32 = arith.constant 0 : i32
    %c0_i32_0 = arith.constant 0 : i32
    return %arg0, %arg1, %c0_i32 : i32, i32, i32
  }
}

</mosaic_0001>

<bundles_post_ra>
// kernel: sub.9
= control target key start
LH: loop header
LB: loop body
LE: loop exit
PB: predicated region body
PF: predicated region fallthrough
CT: control target
= control target key end

     0   :  { %vm43_vm0 = vcmask 1047556   ;;  %vm45_vm1 = vcmask 130048   ;;  %vm55_vm2 = vcmask 261248   ;;  %s112_s0 = inlined_call_operand.vmem [shape: f32[8,2,16], index: 0, kind: input, shape index: {}]   ;;  %s113_s1 = inlined_call_operand.vmem [shape: f32[8,32], index: 1, kind: output, shape index: {}]  }
   0x1   :  { %v63_v0 = vld [vmem:[%s112_s0 + $0xe] sm:$0x3]  ;;  %v64_v1 = vld [vmem:[%s112_s0 + $0xc] sm:$0x3]  ;;  %v65_v2 = vld [vmem:[%s112_s0 + $0xa] sm:$0x3] }
   0x2   :  { %9 = vst [vmem:[#allocation0 + $0x38] sm:$0x3] %v63_v0  ;;  %14 = vst [vmem:[#allocation0 + $0x30] sm:$0x3] %v64_v1  ;;  %v66_v3 = vld [vmem:[%s112_s0 + $0x8] sm:$0x3] }
   0x3   :  { %19 = vst [vmem:[#allocation0 + $0x28] sm:$0x3] %v65_v2  ;;  %v67_v4 = vld [vmem:[%s112_s0 + $0x6] sm:$0x3]  ;;  %v68_v5 = vld [vmem:[%s112_s0 + $0x4] sm:$0x3] }
   0x4   :  { %24 = vst [vmem:[#allocation0 + $0x20] sm:$0x3] %v66_v3  ;;  %29 = vst [vmem:[#allocation0 + $0x18] sm:$0x3] %v67_v4  ;;  %v69_v6 = vld [vmem:[%s112_s0 + $0x2] sm:$0x3] }
   0x5   :  { %34 = vst [vmem:[#allocation0 + $0x10] sm:$0x3] %v68_v5  ;;  %v39_v7 = vld [vmem:[%s112_s0] sm:$0x3]  ;;  %38 = vst [vmem:[#allocation0 + $0x8] sm:$0x3] %v69_v6 }
   0x6   :  { %40 = vst [vmem:[#allocation0] sm:$0x3] %v39_v7  ;;  %s71_s0 = smov 16  }
   0xb   :  { %v42_v8 = vld [vmem:[#allocation0] ss:$8 sm:$0xf0]   ;;  %v50_v9 = vld [vmem:[#allocation0 + $0x1] ss:$8 sm:$0xf0]  }
   0xd   :  { %v41_v10 = vld [vmem:[#allocation0] ss:$8 sm:$0xf]   ;;  %v48_v11 = vld [vmem:[#allocation0 + $0x1] ss:$8 sm:$0xf]  }
   0xe   :  { %v44_v12 = vsel %vm43_vm0, %v42_v8, %v41_v10  ;;  %v52_v13 = vsel %vm43_vm0, %v50_v9, %v48_v11 }
   0xf   :  { %53 = vrot.lane.b32.xlu0 %v52_v13, %s71_s0  ;;  %46 = vst.msk [vmem:[%s113_s1] sm:$0xff] %vm45_vm1, %v44_v12  }
  0x81   :  { %v54_v14 = vpop.permute.xlu0 %53  }
  0x82   :  { %56 = vst.msk [vmem:[%s113_s1] sm:$0xff] %vm55_vm2, %v54_v14  }

// kernel: pploc3d_forward.6
= control target key start
LH: loop header
LB: loop body
LE: loop exit
PB: predicated region body
PF: predicated region fallthrough
CT: control target
= control target key end

     0   :  { %s1043_s21 = smov 0   ;;  %s1045_s22 = smov 0   ;;  %s1153_s0 = inlined_call_operand.vmem [shape: f32[2,4,2,16,3], index: 0, kind: input, shape index: {}]   ;;  %s1154_s1 = inlined_call_operand.vmem [shape: f32[2,3,3], index: 1, kind: input, shape index: {}]   ;;  %s1155_s2 = inlined_call_operand.vmem [shape: f32[2,48], index: 2, kind: input, shape index: {}]   ;;  %s1156_s3 = inlined_call_operand.vmem [shape: f32[2,16,48], index: 3, kind: input, shape index: {}]   ;;  %s1157_s4 = inlined_call_operand.vmem [shape: bf16[48,64], index: 4, kind: input, shape index: {}]   ;;  %s1158_s5 = inlined_call_operand.vmem [shape: f32[1,64], index: 5, kind: input, shape index: {}]   ;;  %s1159_s6 = inlined_call_operand.vmem [shape: bf16[8,2,16,64], index: 6, kind: output, shape index: {}]  }
   0x1   :  { %s1047_s23 = smov 0   ;;  %s1049_s24 = smov 0  }
   0x2   :  { %s1051_s25 = smov 0  }
   0x3 LB: > { %s31_s26 = sadd.s32 1, %s992_s23  ;;  %s35_s27 = sadd.s32 1, %s996_s24  ;;  %s1000_s25 = sphi %s1051_s25, %s16_s25   ;;  %s996_s24 = sphi %s1049_s24, %s1163_s24   ;;  %s992_s23 = sphi %s1047_s23, %s1162_s23   ;;  %s988_s22 = sphi %s1045_s22, %s1161_s22   ;;  %s984_s21 = sphi %s1043_s21, %s1160_s21  }
   0x4   : > { %p33_p0 = scmp.ge.s32.totalorder %s31_s26, 4  ;;  %p848_p1 = scmp.ge.s32.totalorder %s1000_s25, 1 }
   0x5   : > { %p270_p2 = scmp.lt.s32.totalorder %s1000_s25, 9 }
   0x6   : > { %s1165_s26 = smov (%p33_p0, %s31_s26), 0  ;;  %s1167_s27 = smov (!%p33_p0, %s35_s27), %s996_s24 }
   0x7   : > { %p271_p3 = pnand %p848_p1, %p270_p2  ;;  %p37_p4 = scmp.ge.s32.totalorder %s1167_s27, 2 }
   0x8   : > { %p324_p5 = scmp.lt.s32.totalorder (!%p271_p3), %s988_s22, 1  ;;  %p326_p6 = scmp.lt.s32.totalorder (!%p271_p3), %s984_s21, 3 }
   0x9   : > { %s1169_s27 = smov (%p37_p4, %s1167_s27), 0  ;;  %274 = sbr.rel (%p271_p3) target bundleno = 778 (0x30a), region = 44 }
   0xa   : > { %s1005_s17 = smov (!%p271_p3), 127   ;;  %s853_s19 = sshll.u32 (!%p271_p3), %s988_s22, 2 }
   0xb   : > { %s348_s20 = sadd.s32 (!%p271_p3), %s984_s21, %s853_s19 }
   0xc   : > { %p350_p7 = scmp.lt.s32.totalorder (!%p271_p3), %s348_s20, 7 }
   0xe   : > { %v1002_v0 = vmov 1   ;;  %v1003_v1 = vmov 0   ;;  %s1081_s28 = scalar_select %p324_p5, %s988_s22, 1  ;;  %v1004_v6 = vmov 2   ;;  %v387_v7 = vlaneseq }
   0xf   : > { %941 = vset.pattern.permute.xlu1 %v1002_v0  ;;  %940 = vset.pattern.permute.xlu0 %v1003_v1  ;;  %s327_s29 = scalar_select %p326_p6, %s984_s21, 3  ;;  %vm610_vm8 = vcmask 392192   ;;  %vm678_vm9 = vcmask 257024   ;;  %vm702_vm10 = vcmask 519424  }
  0x10   : > { %s850_s30 = sshll.u32 %s1081_s28, 4  ;;  %s852_s13 = sshll.u32 %s1081_s28, 2  ;;  %v388_v10 = vshrl.u32 %v387_v7, 7 }
  0x11   : > { %s849_s7 = sshll.u32 %s327_s29, 2  ;;  %s340_s16 = scalar_lea.vmem %s1154_s1, %s852_s13 }
  0x12   : > { %s333_s8 = sadd.s32 %s850_s30, %s849_s7  ;;  %v413_v13 = vsub.s32 1, %v388_v10  ;;  %v389_v14 = vsub.s32 0, %v388_v10  ;;  %v362_v16 = vld [vmem:[%s340_s16] sm:$0x7]  ;;  %v441_v18 = vsub.s32 2, %v388_v10  ;;  %s1171_s20 = smov (!%p350_p7, %s348_s20), 7 }
  0x13   : > { %s851_s9 = sshll.u32 %s333_s8, 3  ;;  %s874_s30 = sshll.u32 %s1171_s20, 4 }
  0x14   : > { %s335_s12 = scalar_lea.vmem %s1153_s0, %s851_s9  ;;  %v414_v19 = vrot.slane %v362_v16, %v413_v13  ;;  %v390_v20 = vrot.slane %v362_v16, %v389_v14  ;;  %v442_v25 = vrot.slane %v362_v16, %v441_v18  ;;  %v952_v18 = vld [vmem:[%s1157_s4 + $0x8] sm:$0xff]   ;;  %s357_s9 = scalar_lea.vmem %s1159_s6, %s874_s30 }
  0x15   : > { %v363_v2 = vld [vmem:[%s335_s12] sm:$0xff]  ;;  %v364_v3 = vld [vmem:[%s335_s12 + $0x8] sm:$0xff]  ;;  %v365_v4 = vld [vmem:[%s335_s12 + $0x10] sm:$0xff]  ;;  %s1006_s21 = smov 96   ;;  %s1007_s22 = smov 32  }
  0x16   : > { %396 = vperm.xlu1 %941, %v363_v2   ;;  %369 = vperm.xlu0 %940, %v363_v2   ;;  %v366_v5 = vld [vmem:[%s335_s12 + $0x18] sm:$0xff] }
  0x1a   : > { %400 = vperm.xlu1 %941, %v364_v3   ;;  %374 = vperm.xlu0 %940, %v364_v3  }
  0x1e   : > { %942 = vset.pattern.permute.xlu1 %v1003_v1  ;;  %379 = vperm.xlu0 %940, %v365_v4  }
  0x1f   : > { %384 = vperm.xlu1 %942, %v366_v5  }
  0x22   : > { %943 = vset.pattern.permute.xlu0 %v1002_v0 }
  0x23   : > { %944 = vset.pattern.permute.xlu1 %v1002_v0  ;;  %404 = vperm.xlu0 %943, %v365_v4  }
  0x24   : > { %408 = vperm.xlu1 %944, %v366_v5  }
  0x27   : > { %946 = vset.pattern.permute.xlu0 %v1004_v6 }
  0x28   : > { %945 = vset.pattern.permute.xlu1 %v1004_v6  ;;  %428 = vperm.xlu0 %946, %v364_v3  }
  0x29   : > { %424 = vperm.xlu1 %945, %v363_v2  }
  0x2d   : > { %432 = vperm.xlu1 %945, %v365_v4  }
  0x31   : > { %436 = vperm.xlu1 %945, %v366_v5  }
  0x91   : > { %v397_v8 = vpop.permute.xlu1 %396  ;;  %v370_v9 = vpop.permute.xlu0 %369 }
  0x92   : > { %v415_v26 = vmul.f32 %v414_v19, %v397_v8  ;;  %v391_v27 = vmul.f32 %v390_v20, %v370_v9 }
  0x94   : > { %v419_v32 = vadd.f32 %v415_v26, %v391_v27 }
  0x95   : > { %v401_v11 = vpop.permute.xlu1 %400  ;;  %v375_v12 = vpop.permute.xlu0 %374 }
  0x96   : > { %v416_v23 = vmul.f32 %v414_v19, %v401_v11  ;;  %v392_v24 = vmul.f32 %v390_v20, %v375_v12 }
  0x98   : > { %v420_v29 = vadd.f32 %v416_v23, %v392_v24  ;;  %v856_v23 = vld [vmem:[%s1155_s2] ss:$0 sm:$0xff] }
  0x99   : > { %v380_v15 = vpop.permute.xlu0 %379 }
  0x9a   : > { %v385_v17 = vpop.permute.xlu1 %384  ;;  %v393_v36 = vmul.f32 %v390_v20, %v380_v15  ;;  %v951_v15 = vld [vmem:[%s1157_s4 + $0x10] sm:$0xff]  }
  0x9b   : > { %v394_v44 = vmul.f32 %v390_v20, %v385_v17  ;;  %884 = vmatprep.subr.bf16.mxu0 %v951_v15 }
  0x9c   : > { %885 = vmatpush3.bf16.msra.mxu0 %v951_v15 }
  0x9d   : > { %886 = vmatprep.subr.bf16.mxu0 %v952_v18 }
  0x9e   : > { %v405_v21 = vpop.permute.xlu0 %404 }
  0x9f   : > { %v409_v22 = vpop.permute.xlu1 %408  ;;  %v417_v33 = vmul.f32 %v414_v19, %v405_v21 }
  0xa0   : > { %v418_v41 = vmul.f32 %v414_v19, %v409_v22  ;;  %887 = vmatpush3.bf16.msra.mxu0 %v952_v18  ;;  %v953_v19 = vld [vmem:[%s1157_s4] sm:$0xff]  }
  0xa1   : > { %v421_v40 = vadd.f32 %v417_v33, %v393_v36  ;;  %888 = vmatprep.subr.bf16.mxu0 %v953_v19  ;;  %v857_v22 = vld [vmem:[%s1155_s2 + $0x1] ss:$0 sm:$0xff] }
  0xa2   : > { %v422_v47 = vadd.f32 %v418_v41, %v394_v44  ;;  %v505_v44 = vld [vmem:[%s1156_s3 + $0x10] sm:$0xff] }
  0xa3   : > { %v429_v28 = vpop.permute.xlu0 %428 }
  0xa4   : > { %v444_v30 = vmul.f32 %v442_v25, %v429_v28  ;;  %v425_v31 = vpop.permute.xlu1 %424  ;;  %889 = vmatpush3.bf16.msra.mxu0 %v953_v19 }
  0xa5   : > { %v443_v34 = vmul.f32 %v442_v25, %v425_v31  ;;  %v503_v31 = vld [vmem:[%s1156_s3] sm:$0xff] }
  0xa6   : > { %v448_v35 = vadd.f32 %v444_v30, %v420_v29  ;;  %v504_v29 = vld [vmem:[%s1156_s3 + $0x8] sm:$0xff] }
  0xa7   : > { %v447_v37 = vadd.f32 %v443_v34, %v419_v32 }
  0xa8   : > { %v433_v38 = vpop.permute.xlu1 %432  ;;  %v452_v39 = vmul.f32 %v448_v35, %v448_v35 }
  0xa9   : > { %v445_v42 = vmul.f32 %v442_v25, %v433_v38  ;;  %v451_v43 = vmul.f32 %v447_v37, %v447_v37 }
  0xaa   : > { %461 = vrot.lane.b32.xlu1 %v452_v39, %s1005_s17 }
  0xab   : > { %v449_v45 = vadd.f32 %v445_v42, %v421_v40  ;;  %459 = vrot.lane.b32.xlu0 %v451_v43, %s1005_s17 }
  0xac   : > { %v437_v46 = vpop.permute.xlu1 %436 }
  0xad   : > { %v446_v48 = vmul.f32 %v442_v25, %v437_v46  ;;  %v453_v49 = vmul.f32 %v449_v45, %v449_v45 }
  0xaf   : > { %v450_v50 = vadd.f32 %v446_v48, %v422_v47  ;;  %463 = vrot.lane.b32.xlu0 %v453_v49, %s1005_s17  ;;  %v506_v48 = vld [vmem:[%s1156_s3 + $0x18] sm:$0xff] }
  0xb1   : > { %v454_v51 = vmul.f32 %v450_v50, %v450_v50 }
  0xb3   : > { %544 = vperm.xlu0 %946, %v448_v35   ;;  %465 = vrot.lane.b32.xlu1 %v454_v51, %s1005_s17 }
  0xb7   : > { %539 = vperm.xlu1 %945, %v447_v37   ;;  %947 = vset.pattern.permute.xlu0 %v1003_v1 }
  0xbb   : > { %949 = vset.pattern.permute.xlu1 %v1003_v1 }
 0x11c   : > { %v462_v52 = vpop.permute.xlu1 %461 }
 0x11d   : > { %v472_v53 = vadd.f32 %v462_v52, %v452_v39  ;;  %v460_v54 = vpop.permute.xlu0 %459 }
 0x11e   : > { %v471_v55 = vadd.f32 %v460_v54, %v451_v43 }
 0x11f   : > { %954 = vrsqrt.f32 %v472_v53  ;;  %vm484_vm0 = vcmp.eq.f32.partialorder %v472_v53, inf  ;;  %v487_v63 = vand.u32 2147483648, %v472_v53  ;;  %vm486_vm1 = vcmp.eq.f32.partialorder %v472_v53, 0.0 }
 0x120   : > { %956 = vrsqrt.f32 %v471_v55  ;;  %vm477_vm2 = vcmp.eq.f32.partialorder %v471_v55, inf  ;;  %v480_v1 = vand.u32 2147483648, %v471_v55  ;;  %vm479_vm3 = vcmp.eq.f32.partialorder %v471_v55, 0.0 }
 0x121   : > { %v464_v56 = vpop.permute.xlu0 %463 }
 0x122   : > { %v473_v57 = vadd.f32 %v464_v56, %v453_v49  ;;  %v858_v56 = vld [vmem:[%s1158_s5] ss:$0 sm:$0xff] }
 0x124   : > { %958 = vrsqrt.f32 %v473_v57  ;;  %vm491_vm4 = vcmp.eq.f32.partialorder %v473_v57, inf  ;;  %v494_v9 = vand.u32 2147483648, %v473_v57  ;;  %vm493_vm5 = vcmp.eq.f32.partialorder %v473_v57, 0.0 }
 0x125   : > { %v466_v58 = vpop.permute.xlu1 %465 }
 0x126   : > { %v474_v59 = vadd.f32 %v466_v58, %v454_v51 }
 0x128   : > { %960 = vrsqrt.f32 %v474_v59  ;;  %vm498_vm6 = vcmp.eq.f32.partialorder %v474_v59, inf  ;;  %v501_v14 = vand.u32 2147483648, %v474_v59  ;;  %vm500_vm7 = vcmp.eq.f32.partialorder %v474_v59, 0.0 }
 0x12c   : > { %v955_v60 = vpop.eup %954 }
 0x12d   : > { %v957_v61 = vpop.eup %956  ;;  %v483_v62 = vmul.f32 %v955_v60, %v472_v53 }
 0x12e   : > { %v476_v0 = vmul.f32 %v957_v61, %v471_v55  ;;  %v545_v21 = vpop.permute.xlu0 %544 }
 0x12f   : > { %v485_v2 = vsel %vm484_vm0, %v472_v53, %v483_v62 }
 0x130   : > { %v488_v3 = vsel %vm486_vm1, %v487_v63, %v485_v2  ;;  %v478_v4 = vsel %vm477_vm2, %v471_v55, %v476_v0 }
 0x131   : > { %v959_v5 = vpop.eup %958  ;;  %515 = vperm.xlu1 %949, %v488_v3   ;;  %v481_v7 = vsel %vm479_vm3, %v480_v1, %v478_v4 }
 0x132   : > { %510 = vperm.xlu0 %947, %v481_v7   ;;  %v490_v8 = vmul.f32 %v959_v5, %v473_v57  ;;  %v540_v20 = vpop.permute.xlu1 %539 }
 0x133   : > { %v561_v27 = vmul.f32 %v857_v22, %v540_v20 }
 0x134   : > { %v492_v10 = vsel %vm491_vm4, %v473_v57, %v490_v8 }
 0x135   : > { %v961_v11 = vpop.eup %960  ;;  %v495_v12 = vsel %vm493_vm5, %v494_v9, %v492_v10 }
 0x136   : > { %948 = vset.pattern.permute.xlu0 %v1004_v6  ;;  %520 = vperm.xlu1 %949, %v495_v12   ;;  %v497_v13 = vmul.f32 %v961_v11, %v474_v59 }
 0x137   : > { %549 = vperm.xlu0 %948, %v449_v45  }
 0x138   : > { %v499_v16 = vsel %vm498_vm6, %v474_v59, %v497_v13 }
 0x139   : > { %v502_v17 = vsel %vm500_vm7, %v501_v14, %v499_v16 }
 0x13a   : > { %525 = vperm.xlu1 %949, %v502_v17  }
 0x13e   : > { %950 = vset.pattern.permute.xlu1 %v1004_v6  ;;  %v562_v6 = vmul.f32 %v857_v22, %v545_v21 }
 0x13f   : > { %554 = vperm.xlu1 %950, %v450_v50  }
 0x1ac   : > { %v516_v24 = vpop.permute.xlu1 %515 }
 0x1ad   : > { %v533_v25 = vmul.f32 %v856_v23, %v516_v24  ;;  %v511_v26 = vpop.permute.xlu0 %510 }
 0x1ae   : > { %v532_v28 = vmul.f32 %v856_v23, %v511_v26 }
 0x1af   : > { %v566_v30 = vadd.f32 %v562_v6, %v533_v25 }
 0x1b0   : > { %v565_v32 = vadd.f32 %v561_v27, %v532_v28 }
 0x1b1   : > { %v521_v33 = vpop.permute.xlu1 %520  ;;  %v570_v34 = vadd.f32 %v566_v30, %v504_v29 }
 0x1b2   : > { %v550_v35 = vpop.permute.xlu0 %549  ;;  %v569_v36 = vadd.f32 %v565_v32, %v503_v31  ;;  %v534_v39 = vmul.f32 %v856_v23, %v521_v33 }
 0x1b3   : > { %v574_v37 = vmax.f32 %v570_v34, 0.0  ;;  %v563_v40 = vmul.f32 %v857_v22, %v550_v35 }
 0x1b4   : > { %v573_v38 = vmax.f32 %v569_v36, 0.0 }
 0x1b5   : > { %v526_v41 = vpop.permute.xlu1 %525  ;;  %v567_v43 = vadd.f32 %v563_v40, %v534_v39 }
 0x1b6   : > { %v577_v42 = vpack.c.bf16 %v574_v37, %v573_v38  ;;  %v535_v46 = vmul.f32 %v856_v23, %v526_v41 }
 0x1b7   : > { %v571_v49 = vadd.f32 %v567_v43, %v505_v44 }
 0x1b8   : > { %890 = vmatprep.mubr.msk.bf16.mxu0 %vm610_vm8, %v577_v42 }
 0x1b9   : > { %v575_v52 = vmax.f32 %v571_v49, 0.0 }
 0x1ba   : > { %v555_v45 = vpop.permute.xlu1 %554 }
 0x1bb   : > { %v564_v47 = vmul.f32 %v857_v22, %v555_v45 }
 0x1bd   : > { %v568_v50 = vadd.f32 %v564_v47, %v535_v46 }
 0x1bf   : > { %v572_v51 = vadd.f32 %v568_v50, %v506_v48 }
 0x1c1   : > { %v576_v53 = vmax.f32 %v572_v51, 0.0 }
 0x1c3   : > { %v578_v54 = vpack.c.bf16 %v576_v53, %v575_v52 }
 0x1c5   : > { %891 = vmatmul.mubr.msk.bf16.vlgmr.msra.gmra.mxu0 %vm610_vm8, %v578_v54 }
 0x285   : > { %v892_v55 = vpop.f32.mrf.mxu0 }
 0x286   : > { %v660_v58 = vadd.f32 %v892_v55, %v858_v56 }
 0x287   : > { %v651_v57 = vpop.f32.mrf.mxu0 }
 0x288   : > { %v652_v59 = vadd.f32 %v858_v56, %v651_v57  ;;  %v668_v63 = vmax.f32 %v660_v58, 0.0 }
 0x289   : > { %v893_v60 = vpop.f32.mrf.mxu0 }
 0x28a   : > { %v666_v61 = vmax.f32 %v652_v59, 0.0  ;;  %v663_v2 = vadd.f32 %v893_v60, %v858_v56  ;;  %v877_v4 = vpack.c.bf16 %v668_v63, %v668_v63 }
 0x28b   : > { %v654_v62 = vpop.f32.mrf.mxu0 }
 0x28c   : > { %v875_v0 = vpack.c.bf16 %v666_v61, %v666_v61  ;;  %v655_v1 = vadd.f32 %v858_v56, %v654_v62  ;;  %v669_v5 = vmax.f32 %v663_v2, 0.0 }
 0x28e   : > { %v667_v3 = vmax.f32 %v655_v1, 0.0  ;;  %681 = vrot.lane.b32.xlu0 %v875_v0, %s1006_s21  ;;  %679 = vst.msk [vmem:[%s357_s9] sm:$0xf] %vm678_vm9, %v875_v0  ;;  %v878_v8 = vpack.c.bf16 %v669_v5, %v669_v5 }
 0x290   : > { %v876_v7 = vpack.c.bf16 %v667_v3, %v667_v3 }
 0x292   : > { %683 = vrot.lane.b32.xlu1 %v876_v7, %s1006_s21  ;;  %696 = vrot.lane.b32.xlu0 %v877_v4, %s1007_s22  ;;  %680 = vst.msk [vmem:[%s357_s9 + $0x4] sm:$0xf] %vm678_vm9, %v876_v7 }
 0x296   : > { %698 = vrot.lane.b32.xlu1 %v878_v8, %s1007_s22 }
 0x300   : > { %v682_v9 = vpop.permute.xlu0 %681 }
 0x301   : > { %866 = vst.msk [vmem:[%s357_s9 + $0x8] sm:$0xf] %vm678_vm9, %v682_v9 }
 0x302   : > { %870 = vst.msk [vmem:[%s357_s9 + $0x8] sm:$0xf] %vm702_vm10, %v877_v4 }
 0x304   : > { %v684_v10 = vpop.permute.xlu1 %683  ;;  %v697_v11 = vpop.permute.xlu0 %696 }
 0x305   : > { %867 = vst.msk [vmem:[%s357_s9 + $0xc] sm:$0xf] %vm678_vm9, %v684_v10 }
 0x306   : > { %703 = vst.msk [vmem:[%s357_s9] sm:$0xf] %vm702_vm10, %v697_v11  ;;  %871 = vst.msk [vmem:[%s357_s9 + $0xc] sm:$0xf] %vm702_vm10, %v878_v8 }
 0x308   : > { %v699_v12 = vpop.permute.xlu1 %698 }
 0x309   : > { %704 = vst.msk [vmem:[%s357_s9 + $0x4] sm:$0xf] %vm702_vm10, %v699_v12 }
 0x30a PF: > { %s16_s25 = sadd.s32 1, %s1000_s25   ;;  %s1160_s21 = smov %s992_s23 }
 0x30b   : > { %p13_p8 = scmp.ge.s32.totalorder %s16_s25, 10   ;;  %s1161_s22 = smov %s996_s24 }
 0x30c   : > { %s1162_s23 = smov %s1165_s26  ;;  %s1163_s24 = smov %s1169_s27 }
 0x30d   :  { %15 = sbr.rel (!%p13_p8) target bundleno = 3 (0x3), region = 81 }

// kernel: pploc3d_forward.4
= control target key start
LH: loop header
LB: loop body
LE: loop exit
PB: predicated region body
PF: predicated region fallthrough
CT: control target
= control target key end

     0   :  { %12 = vsyncpa [#allocation3], 0  ;;  %s2571_s24 = smov 0   ;;  %s2573_s25 = smov 0   ;;  %s3172_s0 = inlined_call_operand.vmem [shape: f32[2,128,3], index: 0, kind: input, shape index: {}]   ;;  %s3173_s1 = inlined_call_operand.vmem [shape: f32[3,64], index: 1, kind: input, shape index: {}]   ;;  %s3174_s2 = inlined_call_operand.vmem [shape: f32[1,64], index: 2, kind: input, shape index: {}]   ;;  %s3175_s3 = inlined_call_operand.vmem [shape: bf16[64,128], index: 3, kind: input, shape index: {}]   ;;  %s3176_s4 = inlined_call_operand.vmem [shape: f32[1,128], index: 4, kind: input, shape index: {}]   ;;  %s3177_s5 = inlined_call_operand.hbm [shape: bf16[128,1024], index: 5, kind: input, shape index: {}]   ;;  %s3178_s6 = inlined_call_operand.vmem [shape: f32[1,1024], index: 6, kind: input, shape index: {}]   ;;  %s3179_s7 = inlined_call_operand.vmem [shape: f32[2,1,1024], index: 7, kind: output, shape index: {}]  }
   0x1   :  { %s2575_s26 = smov 0  }
   0x2 LB: > { %s2254_s27 = sadd.s32 4294967295, %s2522_s26   ;;  %s30_s28 = sadd.s32 1, %s2518_s25  ;;  %s2522_s26 = sphi %s2575_s26, %s18_s26   ;;  %s2518_s25 = sphi %s2573_s25, %s3183_s25   ;;  %s2514_s24 = sphi %s2571_s24, %s3182_s24  }
   0x3   : > { %p32_p0 = scmp.ge.s32.totalorder %s30_s28, 2  ;;  %p2256_p1 = scmp.ge.s32.totalorder %s2522_s26, 1 }
   0x4   : > { %p215_p2 = scmp.lt.s32.totalorder %s2522_s26, 3  ;;  %p2596_p4 = scmp.eq.s32.totalorder %s2254_s27, 0 }
   0x5   : > { %s3185_s28 = smov (%p32_p0, %s30_s28), 0  ;;  %s2524_s8 = smov [#allocation2]  }
   0x6   : > { %p2592_p3 = pnand %p2256_p1, %p215_p2  ;;  %s239_s9 = sshll.u32 %s2524_s8, 4  ;;  %s240_s9 = int_to_ptr.vmem [resolvable:$true] %s239_s9 }
   0x7   : > { %s2481_s10 = scalar_lea.vmem %s240_s9, 8192  ;;  %p2489_p11 = scmp.lt.s32.totalorder %s240_s9, %s240_s9 }
   0x8   : > { %p2404_p5 = pneg %p2592_p3  ;;  %p2482_p8 = scmp.ne.s32.totalorder %s240_s9, %s2481_s10 }
   0x9   : > { %p2490_p12 = scmp.lt.s32.totalorder %s2481_s10, %s2481_s10 }
   0xa   : > { %p2405_p6 = pnand %p2596_p4, %p2404_p5 }
   0xb   : > { %p2491_p13 = por %p2490_p12, %p2489_p11 }
   0xc   : > { %p2472_p7 = pneg %p2405_p6 }
   0xe   : > { %p2484_p9 = pnand %p2482_p8, %p2472_p7 }
  0x10   : > { %p2485_p10 = pneg %p2484_p9 }
  0x12   : > { %p2492_p0 = pnand %p2491_p13, %p2485_p10 }
  0x14   : > { %2495 = shalt.err (!%p2492_p0)
}
  0x15   : > { %s2525_s11 = smov 512   ;;  %s2526_s12 = smov 32  }
  0x16   : > { %2407 = dma.hbm_to_vmem [thread:$0]  (!%p2405_p6), %s3177_s5, 8192, %s240_s9, [#allocation3], %s2525_s11, %s2525_s11, %s2526_s12  }
  0x17   : > { %271 = sbr.rel (%p2592_p3) target bundleno = 812 (0x32c), region = 48 }
  0x1c   : > { %2509 = dma.done.wait (%p2596_p4), [#allocation3], 8192  }
  0x1d   : > { %2511 = vsyncadd (%p2596_p4), [#allocation3], 4294959104  ;;  %p307_p1 = scmp.lt.s32.totalorder %s2514_s24, 1  ;;  %v2527_v0 = vmov 1   ;;  %v2528_v1 = vmov 0   ;;  %v2466_v7 = vld [vmem:[%s3175_s3 + $0x18] sm:$0xff]  }
  0x1e   : > { %2442 = vset.pattern.permute.xlu1 %v2527_v0  ;;  %2441 = vset.pattern.permute.xlu0 %v2528_v1  ;;  %v2529_v8 = vmov 2   ;;  %v2467_v10 = vld [vmem:[%s3175_s3 + $0x10] sm:$0xff]   ;;  %v2468_v11 = vld [vmem:[%s3175_s3 + $0x8] sm:$0xff]   ;;  %v2469_v13 = vld [vmem:[%s3175_s3] sm:$0xff]   ;;  %vm726_vm0 = vcmask 523264  }
  0x1f   : > { %s3187_s24 = smov (!%p307_p1, %s2514_s24), 1  ;;  %1330 = vmatprep.mubr.bf16.mxu1 %v2528_v1  ;;  %2360 = vmatprep.subr.bf16.mxu0 %v2466_v7  ;;  %v928_v30 = vld [vmem:[#allocation2 + $0x1c0] sm:$0xff]  ;;  %v2677_v32 = vld [vmem:[#allocation2 + $0x1c8] sm:$0xff] }
  0x20   : > { %s2347_s15 = sshll.u32 %s3187_s24, 7  ;;  %2361 = vmatpush3.bf16.msra.mxu0 %v2466_v7  ;;  %v932_v31 = vld [vmem:[#allocation2 + $0x1e0] sm:$0xff]  ;;  %v2679_v35 = vld [vmem:[#allocation2 + $0x1e8] sm:$0xff]  ;;  %s2263_s20 = sshll.u32 %s3187_s24, 3 }
  0x21   : > { %s2624_s18 = scalar_lea.vmem %s3172_s0, %s2347_s15  ;;  %2362 = vmatprep.subr.bf16.mxu0 %v2467_v10  ;;  %v2338_v34 = vcombine.high %v928_v30, %v932_v31  ;;  %v2337_v36 = vcombine.low %v928_v30, %v932_v31  ;;  %v920_v37 = vld [vmem:[#allocation2 + $0x180] sm:$0xff]  ;;  %v2340_v39 = vcombine.high %v2677_v32, %v2679_v35  ;;  %v925_v30 = vld [vmem:[#allocation2 + $0x1a8] sm:$0xff]  ;;  %s319_s23 = scalar_lea.vmem %s3179_s7, %s2263_s20 }
  0x22   : > { %v321_v2 = vld [vmem:[%s2624_s18] sm:$0xff]  ;;  %v322_v3 = vld [vmem:[%s2624_s18 + $0x8] sm:$0xff]  ;;  %v323_v4 = vld [vmem:[%s2624_s18 + $0x10] sm:$0xff] }
  0x23   : > { %440 = vperm.xlu1 %2442, %v321_v2   ;;  %340 = vperm.xlu0 %2441, %v321_v2   ;;  %v324_v5 = vld [vmem:[%s2624_s18 + $0x18] sm:$0xff]  ;;  %v326_v6 = vld [vmem:[%s2624_s18 + $0x28] sm:$0xff]  ;;  %v327_v9 = vld [vmem:[%s2624_s18 + $0x30] sm:$0xff] }
  0x24   : > { %2363 = vmatpush3.bf16.msra.mxu0 %v2467_v10  ;;  %v325_v12 = vld [vmem:[%s2624_s18 + $0x20] sm:$0xff]  ;;  %v328_v14 = vld [vmem:[%s2624_s18 + $0x38] sm:$0xff]  ;;  %v330_v15 = vld [vmem:[%s2624_s18 + $0x48] sm:$0xff]  ;;  %1298 = vmatprep.subr.bf16.mxu1 %v2338_v34 }
  0x25   : > { %2364 = vmatprep.subr.bf16.mxu0 %v2468_v11  ;;  %v331_v16 = vld [vmem:[%s2624_s18 + $0x50] sm:$0xff]  ;;  %v333_v17 = vld [vmem:[%s2624_s18 + $0x60] sm:$0xff]  ;;  %v334_v18 = vld [vmem:[%s2624_s18 + $0x68] sm:$0xff]  ;;  %1299 = vmatpush1.bf16.msra.mxu1 %v2337_v36 }
  0x26   : > { %v329_v19 = vld [vmem:[%s2624_s18 + $0x40] sm:$0xff]  ;;  %v335_v20 = vld [vmem:[%s2624_s18 + $0x70] sm:$0xff]  ;;  %v332_v21 = vld [vmem:[%s2624_s18 + $0x58] sm:$0xff] }
  0x27   : > { %444 = vperm.xlu1 %2442, %v322_v3   ;;  %345 = vperm.xlu0 %2441, %v322_v3   ;;  %v336_v22 = vld [vmem:[%s2624_s18 + $0x78] sm:$0xff]  ;;  %v924_v38 = vld [vmem:[#allocation2 + $0x1a0] sm:$0xff] }
  0x28   : > { %2365 = vmatpush3.bf16.msra.mxu0 %v2468_v11  ;;  %v2330_v40 = vcombine.high %v920_v37, %v924_v38  ;;  %v912_v41 = vld [vmem:[#allocation2 + $0x140] sm:$0xff]  ;;  %v2329_v46 = vcombine.low %v920_v37, %v924_v38  ;;  %v2339_v37 = vcombine.low %v2677_v32, %v2679_v35 }
  0x29   : > { %2366 = vmatprep.subr.bf16.mxu0 %v2469_v13  ;;  %v2686_v42 = vld [vmem:[%s3173_s1 + $0x1] ss:$0 sm:$0xff]  ;;  %v2691_v43 = vld [vmem:[%s3173_s1] ss:$0 sm:$0xff]  ;;  %v2700_v49 = vld [vmem:[%s3173_s1 + $0x2] ss:$0 sm:$0xff] }
  0x2a   : > { %v916_v44 = vld [vmem:[#allocation2 + $0x160] sm:$0xff]  ;;  %1300 = vmatprep.subr.bf16.mxu1 %v2330_v40 }
  0x2b   : > { %2443 = vset.pattern.permute.xlu1 %v2528_v1  ;;  %350 = vperm.xlu0 %2441, %v323_v4   ;;  %v2322_v50 = vcombine.high %v912_v41, %v916_v44  ;;  %v904_v54 = vld [vmem:[#allocation2 + $0x100] sm:$0xff]  ;;  %v2321_v58 = vcombine.low %v912_v41, %v916_v44  ;;  %v913_v41 = vld [vmem:[#allocation2 + $0x148] sm:$0xff] }
  0x2c   : > { %355 = vperm.xlu1 %2443, %v324_v5   ;;  %2367 = vmatpush3.bf16.msra.mxu0 %v2469_v13  ;;  %v908_v55 = vld [vmem:[#allocation2 + $0x120] sm:$0xff]  ;;  %v917_v44 = vld [vmem:[#allocation2 + $0x168] sm:$0xff] }
  0x2d   : > { %1411 = vmatprep.subr.bf16.mxu0 %v2340_v39  ;;  %1301 = vmatpush1.bf16.msra.mxu1 %v2329_v46  ;;  %v2314_v60 = vcombine.high %v904_v54, %v908_v55  ;;  %v2313_v7 = vcombine.low %v904_v54, %v908_v55  ;;  %v2323_v32 = vcombine.low %v913_v41, %v917_v44  ;;  %v897_v54 = vld [vmem:[#allocation2 + $0xc8] sm:$0xff] }
  0x2e   : > { %1302 = vmatprep.subr.bf16.mxu1 %v2322_v50  ;;  %v905_v50 = vld [vmem:[#allocation2 + $0x108] sm:$0xff] }
  0x2f   : > { %2444 = vset.pattern.permute.xlu0 %v2527_v0  ;;  %v901_v55 = vld [vmem:[#allocation2 + $0xe8] sm:$0xff] }
  0x30   : > { %2445 = vset.pattern.permute.xlu1 %v2527_v0  ;;  %448 = vperm.xlu0 %2444, %v323_v4  }
  0x31   : > { %452 = vperm.xlu1 %2445, %v324_v5   ;;  %1303 = vmatpush1.bf16.msra.mxu1 %v2321_v58 }
  0x32   : > { %1304 = vmatprep.subr.bf16.mxu1 %v2314_v60  ;;  %v2308_v60 = vcombine.high %v897_v54, %v901_v55 }
  0x34   : > { %460 = vperm.xlu0 %2444, %v326_v6  }
  0x35   : > { %2446 = vset.pattern.permute.xlu1 %v2529_v8  ;;  %1305 = vmatpush1.bf16.msra.mxu1 %v2313_v7 }
  0x36   : > { %541 = vperm.xlu1 %2446, %v321_v2   ;;  %v896_v2 = vld [vmem:[#allocation2 + $0xc0] sm:$0xff] }
  0x38   : > { %464 = vperm.xlu0 %2444, %v327_v9  }
  0x3a   : > { %549 = vperm.xlu1 %2446, %v323_v4  }
  0x3c   : > { %2450 = vset.pattern.permute.xlu0 %v2529_v8 }
  0x3d   : > { %545 = vperm.xlu0 %2450, %v322_v3   ;;  %v900_v3 = vld [vmem:[#allocation2 + $0xe0] sm:$0xff] }
  0x3e   : > { %553 = vperm.xlu1 %2446, %v324_v5  }
  0x41   : > { %557 = vperm.xlu0 %2450, %v325_v12  }
  0x42   : > { %2447 = vset.pattern.permute.xlu1 %v2528_v1 }
  0x43   : > { %365 = vperm.xlu1 %2447, %v326_v6  }
  0x45   : > { %569 = vperm.xlu0 %2450, %v328_v14  }
  0x47   : > { %2448 = vset.pattern.permute.xlu1 %v2527_v0 }
  0x48   : > { %456 = vperm.xlu1 %2448, %v325_v12  }
  0x49   : > { %577 = vperm.xlu0 %2450, %v330_v15  }
  0x4c   : > { %2449 = vset.pattern.permute.xlu1 %v2528_v1 }
  0x4d   : > { %370 = vperm.xlu1 %2449, %v327_v9   ;;  %2458 = vset.pattern.permute.xlu0 %v2528_v1 }
  0x4e   : > { %360 = vperm.xlu0 %2458, %v325_v12   ;;  %v2306_v12 = vcombine.high %v896_v2, %v900_v3 }
  0x50   : > { %1306 = vmatprep.subr.bf16.mxu1 %v2306_v12 }
  0x51   : > { %375 = vperm.xlu1 %2449, %v328_v14  }
  0x52   : > { %385 = vperm.xlu0 %2458, %v330_v15  }
  0x55   : > { %2451 = vset.pattern.permute.xlu1 %v2527_v0 }
  0x56   : > { %468 = vperm.xlu1 %2451, %v328_v14   ;;  %390 = vperm.xlu0 %2458, %v331_v16  }
  0x5a   : > { %2452 = vset.pattern.permute.xlu1 %v2529_v8  ;;  %400 = vperm.xlu0 %2458, %v333_v17  }
  0x5b   : > { %561 = vperm.xlu1 %2452, %v326_v6  }
  0x5e   : > { %2459 = vset.pattern.permute.xlu0 %v2527_v0 }
  0x5f   : > { %565 = vperm.xlu1 %2452, %v327_v9   ;;  %480 = vperm.xlu0 %2459, %v331_v16   ;;  %v2715_v9 = vld [vmem:[%s3174_s2] ss:$0 sm:$0xff] }
  0x63   : > { %2453 = vset.pattern.permute.xlu1 %v2528_v1  ;;  %492 = vperm.xlu0 %2459, %v334_v18  }
  0x64   : > { %380 = vperm.xlu1 %2453, %v329_v19  }
  0x67   : > { %496 = vperm.xlu0 %2459, %v335_v20  }
  0x68   : > { %2454 = vset.pattern.permute.xlu1 %v2527_v0 }
  0x69   : > { %472 = vperm.xlu1 %2454, %v329_v19  }
  0x6b   : > { %2464 = vset.pattern.permute.xlu0 %v2529_v8 }
  0x6c   : > { %589 = vperm.xlu0 %2464, %v333_v17  }
  0x6d   : > { %476 = vperm.xlu1 %2454, %v330_v15  }
  0x70   : > { %601 = vperm.xlu0 %2464, %v336_v22  }
  0x71   : > { %2455 = vset.pattern.permute.xlu1 %v2528_v1 }
  0x72   : > { %395 = vperm.xlu1 %2455, %v332_v21  }
  0x76   : > { %2456 = vset.pattern.permute.xlu1 %v2527_v0 }
  0x77   : > { %484 = vperm.xlu1 %2456, %v332_v21  }
  0x7b   : > { %2457 = vset.pattern.permute.xlu1 %v2529_v8 }
  0x7c   : > { %573 = vperm.xlu1 %2457, %v329_v19  }
  0x80   : > { %581 = vperm.xlu1 %2457, %v331_v16  }
  0x84   : > { %585 = vperm.xlu1 %2457, %v332_v21  }
  0x88   : > { %2460 = vset.pattern.permute.xlu1 %v2528_v1 }
  0x89   : > { %405 = vperm.xlu1 %2460, %v334_v18  }
  0x8d   : > { %2461 = vset.pattern.permute.xlu1 %v2527_v0 }
  0x8e   : > { %488 = vperm.xlu1 %2461, %v333_v17  }
  0x92   : > { %2462 = vset.pattern.permute.xlu1 %v2528_v1 }
  0x93   : > { %410 = vperm.xlu1 %2462, %v335_v20  }
  0x97   : > { %415 = vperm.xlu1 %2462, %v336_v22  }
  0x9b   : > { %2463 = vset.pattern.permute.xlu1 %v2527_v0 }
  0x9c   : > { %500 = vperm.xlu1 %2463, %v336_v22  }
  0x9e   : > { %v441_v23 = vpop.permute.xlu1 %440  ;;  %v341_v24 = vpop.permute.xlu0 %340 }
  0x9f   : > { %v507_v51 = vmul.f32 %v2686_v42, %v441_v23  ;;  %v422_v52 = vmul.f32 %v2691_v43, %v341_v24 }
  0xa0   : > { %2465 = vset.pattern.permute.xlu1 %v2529_v8 }
  0xa1   : > { %593 = vperm.xlu1 %2465, %v334_v18   ;;  %v523_v61 = vadd.f32 %v507_v51, %v422_v52  ;;  %v909_v51 = vld [vmem:[#allocation2 + $0x128] sm:$0xff] }
  0xa2   : > { %v445_v25 = vpop.permute.xlu1 %444  ;;  %v346_v26 = vpop.permute.xlu0 %345 }
  0xa3   : > { %v508_v62 = vmul.f32 %v2686_v42, %v445_v25  ;;  %v423_v63 = vmul.f32 %v2691_v43, %v346_v26 }
  0xa5   : > { %597 = vperm.xlu1 %2465, %v335_v20   ;;  %v524_v13 = vadd.f32 %v508_v62, %v423_v63  ;;  %v2305_v20 = vcombine.low %v896_v2, %v900_v3  ;;  %v2307_v2 = vcombine.low %v897_v54, %v901_v55 }
  0xa6   : > { %v351_v27 = vpop.permute.xlu0 %350 }
  0xa7   : > { %v356_v28 = vpop.permute.xlu1 %355  ;;  %v424_v47 = vmul.f32 %v2691_v43, %v351_v27  ;;  %1307 = vmatpush1.bf16.msra.mxu1 %v2305_v20 }
  0xa8   : > { %v425_v8 = vmul.f32 %v2691_v43, %v356_v28 }
  0xab   : > { %v449_v29 = vpop.permute.xlu0 %448 }
  0xac   : > { %v453_v33 = vpop.permute.xlu1 %452  ;;  %v509_v48 = vmul.f32 %v2686_v42, %v449_v29  ;;  %v921_v29 = vld [vmem:[#allocation2 + $0x188] sm:$0xff] }
  0xad   : > { %v510_v4 = vmul.f32 %v2686_v42, %v453_v33  ;;  %v2332_v39 = vcombine.high %v921_v29, %v925_v30 }
  0xae   : > { %v525_v59 = vadd.f32 %v509_v48, %v424_v47  ;;  %v2331_v47 = vcombine.low %v921_v29, %v925_v30  ;;  %v2324_v48 = vcombine.high %v913_v41, %v917_v44 }
  0xaf   : > { %v2693_v45 = vpop.permute.xlu0 %460  ;;  %v526_v16 = vadd.f32 %v510_v4, %v425_v8 }
  0xb0   : > { %v512_v4 = vmul.f32 %v2686_v42, %v2693_v45 }
  0xb1   : > { %v542_v53 = vpop.permute.xlu1 %541 }
  0xb2   : > { %v608_v56 = vmul.f32 %v2700_v49, %v542_v53  ;;  %v2316_v53 = vcombine.high %v905_v50, %v909_v51 }
  0xb3   : > { %v2705_v57 = vpop.permute.xlu0 %464 }
  0xb4   : > { %v624_v6 = vadd.f32 %v608_v56, %v523_v61  ;;  %v513_v12 = vmul.f32 %v2686_v42, %v2705_v57 }
  0xb5   : > { %v550_v0 = vpop.permute.xlu1 %549 }
  0xb6   : > { %v610_v5 = vmul.f32 %v2700_v49, %v550_v0  ;;  %v647_v19 = vadd.f32 %v2715_v9, %v624_v6 }
  0xb8   : > { %v626_v10 = vadd.f32 %v610_v5, %v525_v59  ;;  %v546_v11 = vpop.permute.xlu0 %545  ;;  %v663_v27 = vmax.f32 %v647_v19, 0.0  ;;  %v2315_v59 = vcombine.low %v905_v50, %v909_v51 }
  0xb9   : > { %v609_v14 = vmul.f32 %v2700_v49, %v546_v11  ;;  %v554_v15 = vpop.permute.xlu1 %553 }
  0xba   : > { %v611_v17 = vmul.f32 %v2700_v49, %v554_v15  ;;  %v649_v21 = vadd.f32 %v2715_v9, %v626_v10 }
  0xbb   : > { %v625_v18 = vadd.f32 %v609_v14, %v524_v13 }
  0xbc   : > { %v627_v22 = vadd.f32 %v611_v17, %v526_v16  ;;  %v558_v23 = vpop.permute.xlu0 %557  ;;  %v665_v31 = vmax.f32 %v649_v21, 0.0 }
  0xbd   : > { %v648_v24 = vadd.f32 %v2715_v9, %v625_v18  ;;  %v612_v62 = vmul.f32 %v2700_v49, %v558_v23 }
  0xbe   : > { %v650_v25 = vadd.f32 %v2715_v9, %v627_v22  ;;  %v366_v26 = vpop.permute.xlu1 %365 }
  0xbf   : > { %v664_v28 = vmax.f32 %v648_v24, 0.0  ;;  %v427_v5 = vmul.f32 %v2691_v43, %v366_v26 }
  0xc0   : > { %v666_v33 = vmax.f32 %v650_v25, 0.0  ;;  %v570_v34 = vpop.permute.xlu0 %569 }
  0xc1   : > { %v679_v36 = vpack.c.bf16 %v664_v28, %v663_v27  ;;  %v615_v7 = vmul.f32 %v2700_v49, %v570_v34  ;;  %v528_v13 = vadd.f32 %v512_v4, %v427_v5 }
  0xc2   : > { %v680_v38 = vpack.c.bf16 %v666_v33, %v665_v31 }
  0xc3   : > { %v457_v40 = vpop.permute.xlu1 %456  ;;  %2368 = vmatprep.mubr.msk.bf16.mxu0 %vm726_vm0, %v679_v36 }
  0xc4   : > { %2369 = vmatmul.mubr.msk.bf16.vlgmr.msra.gmra.mxu0 %vm726_vm0, %v680_v38  ;;  %v2727_v46 = vpop.permute.xlu0 %577  ;;  %v511_v61 = vmul.f32 %v2686_v42, %v457_v40 }
  0xc5   : > { %1412 = vmatpush1.bf16.msra.mxu0 %v2339_v37  ;;  %v617_v41 = vmul.f32 %v2700_v49, %v2727_v46 }
  0xc6   : > { %1413 = vmatprep.subr.bf16.mxu0 %v2332_v39 }
  0xc8   : > { %v371_v52 = vpop.permute.xlu1 %370 }
  0xc9   : > { %1414 = vmatpush1.bf16.msra.mxu0 %v2331_v47  ;;  %v361_v35 = vpop.permute.xlu0 %360  ;;  %v428_v14 = vmul.f32 %v2691_v43, %v371_v52 }
  0xca   : > { %1415 = vmatprep.subr.bf16.mxu0 %v2324_v48  ;;  %v426_v58 = vmul.f32 %v2691_v43, %v361_v35 }
  0xcb   : > { %v529_v19 = vadd.f32 %v513_v12, %v428_v14  ;;  %v892_v12 = vld [vmem:[#allocation2 + $0xa0] sm:$0xff] }
  0xcc   : > { %v376_v56 = vpop.permute.xlu1 %375  ;;  %v527_v63 = vadd.f32 %v511_v61, %v426_v58 }
  0xcd   : > { %1416 = vmatpush1.bf16.msra.mxu0 %v2323_v32  ;;  %v429_v6 = vmul.f32 %v2691_v43, %v376_v56  ;;  %v386_v31 = vpop.permute.xlu0 %385 }
  0xce   : > { %1417 = vmatprep.subr.bf16.mxu0 %v2316_v53  ;;  %v628_v8 = vadd.f32 %v612_v62, %v527_v63  ;;  %v431_v40 = vmul.f32 %v2691_v43, %v386_v31 }
  0xd0   : > { %v651_v45 = vadd.f32 %v2715_v9, %v628_v8 }
  0xd1   : > { %v469_v0 = vpop.permute.xlu1 %468  ;;  %1418 = vmatpush1.bf16.msra.mxu0 %v2315_v59  ;;  %v391_v34 = vpop.permute.xlu0 %390 }
  0xd2   : > { %v514_v3 = vmul.f32 %v2686_v42, %v469_v0  ;;  %1419 = vmatprep.subr.bf16.mxu0 %v2308_v60  ;;  %v667_v22 = vmax.f32 %v651_v45, 0.0  ;;  %v432_v32 = vmul.f32 %v2691_v43, %v391_v34  ;;  %v876_v34 = vld [vmem:[#allocation2 + $0x20] sm:$0xff] }
  0xd4   : > { %v530_v10 = vadd.f32 %v514_v3, %v429_v6 }
  0xd5   : > { %1420 = vmatpush1.bf16.msra.mxu0 %v2307_v2  ;;  %v2749_v38 = vpop.permute.xlu0 %400 }
  0xd6   : > { %v562_v11 = vpop.permute.xlu1 %561  ;;  %v631_v16 = vadd.f32 %v615_v7, %v530_v10 }
  0xd7   : > { %v613_v15 = vmul.f32 %v2700_v49, %v562_v11  ;;  %v888_v11 = vld [vmem:[#allocation2 + $0x80] sm:$0xff] }
  0xd8   : > { %v654_v23 = vadd.f32 %v2715_v9, %v631_v16  ;;  %v2298_v14 = vcombine.high %v888_v11, %v892_v12 }
  0xd9   : > { %v629_v17 = vadd.f32 %v613_v15, %v528_v13  ;;  %v889_v13 = vld [vmem:[#allocation2 + $0x88] sm:$0xff] }
  0xda   : > { %v566_v18 = vpop.permute.xlu1 %565  ;;  %v670_v28 = vmax.f32 %v654_v23, 0.0  ;;  %v481_v48 = vpop.permute.xlu0 %480  ;;  %v893_v15 = vld [vmem:[#allocation2 + $0xa8] sm:$0xff]  ;;  %1308 = vmatprep.subr.bf16.mxu1 %v2298_v14  ;;  %v884_v23 = vld [vmem:[#allocation2 + $0x60] sm:$0xff] }
  0xdb   : > { %v652_v20 = vadd.f32 %v2715_v9, %v629_v17  ;;  %v614_v21 = vmul.f32 %v2700_v49, %v566_v18  ;;  %v517_v35 = vmul.f32 %v2686_v42, %v481_v48  ;;  %v2299_v17 = vcombine.low %v889_v13, %v893_v15 }
  0xdc   : > { %v2300_v18 = vcombine.high %v889_v13, %v893_v15 }
  0xdd   : > { %v668_v24 = vmax.f32 %v652_v20, 0.0  ;;  %v630_v57 = vadd.f32 %v614_v21, %v529_v19  ;;  %v533_v46 = vadd.f32 %v517_v35, %v432_v32  ;;  %v2297_v19 = vcombine.low %v888_v11, %v892_v12 }
  0xde   : > { %1421 = vmatprep.subr.bf16.mxu0 %v2300_v18  ;;  %v434_v32 = vmul.f32 %v2691_v43, %v2749_v38  ;;  %v930_v18 = vld [vmem:[#allocation2 + $0x1d0] sm:$0xff] }
  0xdf   : > { %v681_v25 = vpack.c.bf16 %v668_v24, %v667_v22  ;;  %v653_v26 = vadd.f32 %v2715_v9, %v630_v57  ;;  %v381_v27 = vpop.permute.xlu1 %380  ;;  %1309 = vmatpush1.bf16.msra.mxu1 %v2297_v19  ;;  %v880_v22 = vld [vmem:[#allocation2 + $0x40] sm:$0xff]  ;;  %v881_v24 = vld [vmem:[#allocation2 + $0x48] sm:$0xff]  ;;  %1422 = vmatpush1.bf16.msra.mxu0 %v2299_v17  ;;  %v934_v19 = vld [vmem:[#allocation2 + $0x1f0] sm:$0xff] }
  0xe0   : > { %v430_v51 = vmul.f32 %v2691_v43, %v381_v27  ;;  %v2290_v57 = vcombine.high %v880_v22, %v884_v23  ;;  %v493_v27 = vpop.permute.xlu0 %492 }
  0xe1   : > { %v669_v29 = vmax.f32 %v653_v26, 0.0  ;;  %2372 = vmatprep.mubr.msk.bf16.mxu0 %vm726_vm0, %v681_v25  ;;  %v885_v25 = vld [vmem:[#allocation2 + $0x68] sm:$0xff] }
  0xe2   : > { %1310 = vmatprep.subr.bf16.mxu1 %v2290_v57  ;;  %v2796_v57 = vld [vmem:[%s3176_s4] ss:$0 sm:$0xff] }
  0xe3   : > { %v682_v30 = vpack.c.bf16 %v670_v28, %v669_v29  ;;  %v2291_v28 = vcombine.low %v881_v24, %v885_v25  ;;  %v2292_v29 = vcombine.high %v881_v24, %v885_v25 }
  0xe4   : > { %v473_v33 = vpop.permute.xlu1 %472 }
  0xe5   : > { %2373 = vmatmul.mubr.msk.bf16.gmra.mxu0 %vm726_vm0, %v682_v30  ;;  %v515_v50 = vmul.f32 %v2686_v42, %v473_v33  ;;  %v2289_v30 = vcombine.low %v880_v22, %v884_v23  ;;  %1423 = vmatprep.subr.bf16.mxu0 %v2292_v29  ;;  %v872_v33 = vld [vmem:[#allocation2] sm:$0xff]  ;;  %v935_v22 = vld [vmem:[#allocation2 + $0x1f8] sm:$0xff]  ;;  %v922_v29 = vld [vmem:[#allocation2 + $0x190] sm:$0xff] }
  0xe6   : > { %1424 = vmatpush1.bf16.msra.mxu0 %v2291_v28 }
  0xe7   : > { %v531_v54 = vadd.f32 %v515_v50, %v430_v51  ;;  %1311 = vmatpush1.bf16.msra.mxu1 %v2289_v30 }
  0xe8   : > { %v477_v36 = vpop.permute.xlu1 %476 }
  0xe9   : > { %v516_v39 = vmul.f32 %v2686_v42, %v477_v36  ;;  %v873_v36 = vld [vmem:[#allocation2 + $0x8] sm:$0xff] }
  0xeb   : > { %v532_v44 = vadd.f32 %v516_v39, %v431_v40  ;;  %v877_v39 = vld [vmem:[#allocation2 + $0x28] sm:$0xff] }
  0xec   : > { %v2283_v40 = vcombine.low %v873_v36, %v877_v39 }
  0xed   : > { %v396_v37 = vpop.permute.xlu1 %395  ;;  %v633_v52 = vadd.f32 %v617_v41, %v532_v44  ;;  %v2284_v41 = vcombine.high %v873_v36, %v877_v39  ;;  %v2281_v44 = vcombine.low %v872_v33, %v876_v34  ;;  %v927_v36 = vld [vmem:[#allocation2 + $0x1b8] sm:$0xff] }
  0xee   : > { %v433_v0 = vmul.f32 %v2691_v43, %v396_v37  ;;  %v2282_v37 = vcombine.high %v872_v33, %v876_v34  ;;  %v926_v33 = vld [vmem:[#allocation2 + $0x1b0] sm:$0xff]  ;;  %v923_v34 = vld [vmem:[#allocation2 + $0x198] sm:$0xff] }
  0xef   : > { %v656_v56 = vadd.f32 %v2715_v9, %v633_v52  ;;  %1425 = vmatprep.subr.bf16.mxu0 %v2284_v41  ;;  %v2334_v41 = vcombine.high %v922_v29, %v926_v33 }
  0xf0   : > { %1312 = vmatprep.subr.bf16.mxu1 %v2282_v37  ;;  %1426 = vmatpush1.bf16.msra.mxu0 %v2283_v40 }
  0xf1   : > { %v672_v63 = vmax.f32 %v656_v56, 0.0  ;;  %1313 = vmatpush1.bf16.msra.mxu1 %v2281_v44  ;;  %v914_v44 = vld [vmem:[#allocation2 + $0x150] sm:$0xff] }
  0xf2   : > { %v485_v47 = vpop.permute.xlu1 %484 }
  0xf3   : > { %v518_v60 = vmul.f32 %v2686_v42, %v485_v47  ;;  %v497_v47 = vpop.permute.xlu0 %496 }
  0xf4   : > { %v521_v38 = vmul.f32 %v2686_v42, %v497_v47  ;;  %v2805_v47 = vcombine.high %v923_v34, %v927_v36 }
  0xf5   : > { %v534_v5 = vadd.f32 %v518_v60, %v433_v0 }
  0xf7   : > { %v574_v53 = vpop.permute.xlu1 %573  ;;  %v590_v52 = vpop.permute.xlu0 %589 }
  0xf8   : > { %v616_v55 = vmul.f32 %v2700_v49, %v574_v53  ;;  %v620_v53 = vmul.f32 %v2700_v49, %v590_v52  ;;  %v919_v52 = vld [vmem:[#allocation2 + $0x178] sm:$0xff] }
  0xfa   : > { %v632_v58 = vadd.f32 %v616_v55, %v531_v54 }
  0xfb   : > { %v582_v59 = vpop.permute.xlu1 %581  ;;  %v602_v56 = vpop.permute.xlu0 %601 }
  0xfc   : > { %v655_v61 = vadd.f32 %v2715_v9, %v632_v58  ;;  %v618_v62 = vmul.f32 %v2700_v49, %v582_v59  ;;  %v520_v58 = vmul.f32 %v2686_v42, %v493_v27 }
  0xfe   : > { %v671_v2 = vmax.f32 %v655_v61, 0.0  ;;  %v634_v3 = vadd.f32 %v618_v62, %v533_v46  ;;  %v623_v62 = vmul.f32 %v2700_v49, %v602_v56 }
  0xff   : > { %v586_v4 = vpop.permute.xlu1 %585 }
 0x100   : > { %v683_v6 = vpack.c.bf16 %v672_v63, %v671_v2  ;;  %v619_v7 = vmul.f32 %v2700_v49, %v586_v4  ;;  %v657_v8 = vadd.f32 %v2715_v9, %v634_v3 }
 0x102   : > { %v635_v10 = vadd.f32 %v619_v7, %v534_v5  ;;  %2376 = vmatprep.mubr.msk.bf16.mxu0 %vm726_vm0, %v683_v6  ;;  %v673_v20 = vmax.f32 %v657_v8, 0.0 }
 0x104   : > { %v658_v45 = vadd.f32 %v2715_v9, %v635_v10  ;;  %v406_v16 = vpop.permute.xlu1 %405 }
 0x105   : > { %v435_v46 = vmul.f32 %v2691_v43, %v406_v16 }
 0x106   : > { %v674_v21 = vmax.f32 %v658_v45, 0.0 }
 0x107   : > { %v536_v0 = vadd.f32 %v520_v58, %v435_v46  ;;  %v910_v46 = vld [vmem:[#allocation2 + $0x130] sm:$0xff] }
 0x108   : > { %v684_v26 = vpack.c.bf16 %v674_v21, %v673_v20  ;;  %v2342_v20 = vcombine.high %v930_v18, %v934_v19  ;;  %v931_v21 = vld [vmem:[#allocation2 + $0x1d8] sm:$0xff] }
 0x109   : > { %v489_v31 = vpop.permute.xlu1 %488  ;;  %v2790_v23 = vcombine.high %v931_v21, %v935_v22  ;;  %v2803_v40 = vcombine.low %v931_v21, %v935_v22  ;;  %v874_v22 = vld [vmem:[#allocation2 + $0x10] sm:$0xff] }
 0x10a   : > { %2377 = vmatmul.mubr.msk.bf16.gmra.mxu0 %vm726_vm0, %v684_v26  ;;  %v519_v51 = vmul.f32 %v2686_v42, %v489_v31  ;;  %1524 = vmatprep.subr.bf16.mxu1 %v2342_v20 }
 0x10b   : > { %1637 = vmatprep.subr.bf16.mxu0 %v2790_v23 }
 0x10c   : > { %v535_v35 = vadd.f32 %v519_v51, %v434_v32  ;;  %v915_v51 = vld [vmem:[#allocation2 + $0x158] sm:$0xff] }
 0x10d   : > { %v2816_v56 = vcombine.high %v915_v51, %v919_v52 }
 0x10e   : > { %v411_v48 = vpop.permute.xlu1 %410  ;;  %v636_v60 = vadd.f32 %v620_v53, %v535_v35  ;;  %v2333_v35 = vcombine.low %v922_v29, %v926_v33  ;;  %v2813_v53 = vcombine.low %v923_v34, %v927_v36 }
 0x10f   : > { %v436_v2 = vmul.f32 %v2691_v43, %v411_v48 }
 0x110   : > { %v659_v4 = vadd.f32 %v2715_v9, %v636_v60  ;;  %v911_v60 = vld [vmem:[#allocation2 + $0x138] sm:$0xff] }
 0x111   : > { %v537_v8 = vadd.f32 %v521_v38, %v436_v2  ;;  %v898_v38 = vld [vmem:[#allocation2 + $0xd0] sm:$0xff] }
 0x112   : > { %v416_v50 = vpop.permute.xlu1 %415  ;;  %v675_v12 = vmax.f32 %v659_v4, 0.0  ;;  %v899_v4 = vld [vmem:[#allocation2 + $0xd8] sm:$0xff] }
 0x113   : > { %v437_v59 = vmul.f32 %v2691_v43, %v416_v50  ;;  %v918_v50 = vld [vmem:[#allocation2 + $0x170] sm:$0xff] }
 0x117   : > { %v501_v54 = vpop.permute.xlu1 %500 }
 0x118   : > { %v522_v55 = vmul.f32 %v2686_v42, %v501_v54  ;;  %v2326_v54 = vcombine.high %v914_v44, %v918_v50 }
 0x11a   : > { %v538_v61 = vadd.f32 %v522_v55, %v437_v59  ;;  %v906_v55 = vld [vmem:[#allocation2 + $0x110] sm:$0xff]  ;;  %v907_v59 = vld [vmem:[#allocation2 + $0x118] sm:$0xff] }
 0x11b   : > { %v2824_v2 = vcombine.high %v907_v59, %v911_v60 }
 0x11c   : > { %v594_v63 = vpop.permute.xlu1 %593  ;;  %v639_v5 = vadd.f32 %v623_v62, %v538_v61  ;;  %v2325_v62 = vcombine.low %v914_v44, %v918_v50 }
 0x11d   : > { %v621_v3 = vmul.f32 %v2700_v49, %v594_v63  ;;  %v2821_v63 = vcombine.low %v915_v51, %v919_v52 }
 0x11e   : > { %v662_v13 = vadd.f32 %v2715_v9, %v639_v5  ;;  %v903_v5 = vld [vmem:[#allocation2 + $0xf8] sm:$0xff] }
 0x11f   : > { %v637_v6 = vadd.f32 %v621_v3, %v536_v0  ;;  %v2318_v0 = vcombine.high %v906_v55, %v910_v46  ;;  %v902_v3 = vld [vmem:[#allocation2 + $0xf0] sm:$0xff] }
 0x120   : > { %v598_v7 = vpop.permute.xlu1 %597  ;;  %v678_v45 = vmax.f32 %v662_v13, 0.0  ;;  %v891_v13 = vld [vmem:[#allocation2 + $0x98] sm:$0xff] }
 0x121   : > { %v660_v10 = vadd.f32 %v2715_v9, %v637_v6  ;;  %v622_v11 = vmul.f32 %v2700_v49, %v598_v7  ;;  %v2341_v49 = vcombine.low %v930_v18, %v934_v19  ;;  %v2317_v6 = vcombine.low %v906_v55, %v910_v46  ;;  %v883_v18 = vld [vmem:[#allocation2 + $0x58] sm:$0xff] }
 0x122   : > { %v2831_v7 = vcombine.low %v907_v59, %v911_v60  ;;  %v887_v19 = vld [vmem:[#allocation2 + $0x78] sm:$0xff] }
 0x123   : > { %v676_v14 = vmax.f32 %v660_v10, 0.0  ;;  %v638_v15 = vadd.f32 %v622_v11, %v537_v8  ;;  %v2310_v8 = vcombine.high %v898_v38, %v902_v3  ;;  %v890_v10 = vld [vmem:[#allocation2 + $0x90] sm:$0xff]  ;;  %v2834_v11 = vcombine.high %v899_v4, %v903_v5 }
 0x125   : > { %v685_v42 = vpack.c.bf16 %v676_v14, %v675_v12  ;;  %v661_v43 = vadd.f32 %v2715_v9, %v638_v15  ;;  %v894_v12 = vld [vmem:[#allocation2 + $0xb0] sm:$0xff]  ;;  %v895_v14 = vld [vmem:[#allocation2 + $0xb8] sm:$0xff]  ;;  %v2309_v15 = vcombine.low %v898_v38, %v902_v3 }
 0x126   : > { %v2843_v20 = vcombine.low %v891_v13, %v895_v14 }
 0x127   : > { %v677_v16 = vmax.f32 %v661_v43, 0.0  ;;  %2380 = vmatprep.mubr.msk.bf16.mxu0 %vm726_vm0, %v685_v42  ;;  %v2837_v42 = vcombine.low %v899_v4, %v903_v5  ;;  %v2302_v43 = vcombine.high %v890_v10, %v894_v12 }
 0x129   : > { %v686_v17 = vpack.c.bf16 %v678_v45, %v677_v16  ;;  %v882_v45 = vld [vmem:[#allocation2 + $0x50] sm:$0xff]  ;;  %v2840_v16 = vcombine.high %v891_v13, %v895_v14 }
 0x12b   : > { %2381 = vmatmul.mubr.msk.bf16.gmra.mxu0 %vm726_vm0, %v686_v17  ;;  %v886_v17 = vld [vmem:[#allocation2 + $0x70] sm:$0xff] }
 0x12c   : > { %1443 = vmatprep.mubr.bf16.mxu0 %v2528_v1  ;;  %v2294_v21 = vcombine.high %v882_v45, %v886_v17  ;;  %v2293_v29 = vcombine.low %v882_v45, %v886_v17 }
 0x184   : > { %v2370_v9 = vpop.f32.mrf.mxu0 }
 0x185   : > { %v794_v48 = vadd.f32 %v2370_v9, %v2796_v57  ;;  %v2846_v9 = vcombine.high %v883_v18, %v887_v19 }
 0x186   : > { %v785_v24 = vpop.f32.mrf.mxu0 }
 0x187   : > { %v786_v26 = vadd.f32 %v2796_v57, %v785_v24  ;;  %v850_v58 = vmax.f32 %v794_v48, 0.0 }
 0x188   : > { %v2371_v25 = vpop.f32.mrf.mxu0 }
 0x189   : > { %v848_v30 = vmax.f32 %v786_v26, 0.0  ;;  %v797_v37 = vadd.f32 %v2371_v25, %v2796_v57  ;;  %v878_v25 = vld [vmem:[#allocation2 + $0x30] sm:$0xff]  ;;  %v875_v26 = vld [vmem:[#allocation2 + $0x18] sm:$0xff] }
 0x18a   : > { %v788_v27 = vpop.f32.mrf.mxu0 }
 0x18b   : > { %v789_v28 = vadd.f32 %v2796_v57, %v788_v27  ;;  %v851_v32 = vmax.f32 %v797_v37, 0.0  ;;  %v879_v27 = vld [vmem:[#allocation2 + $0x38] sm:$0xff] }
 0x18c   : > { %v2852_v33 = vcombine.high %v875_v26, %v879_v27  ;;  %v2856_v44 = vcombine.low %v875_v26, %v879_v27 }
 0x18d   : > { %v849_v31 = vmax.f32 %v789_v28, 0.0  ;;  %v2818_v61 = vpack.c.bf16 %v851_v32, %v850_v58 }
 0x18f   : > { %v2801_v39 = vpack.c.bf16 %v849_v31, %v848_v30  ;;  %v2849_v30 = vcombine.low %v883_v18, %v887_v19  ;;  %v2286_v31 = vcombine.high %v874_v22, %v878_v25 }
 0x191   : > { %1331 = vmatmul.mubr.bf16.vlgmr.msra.gmra.mxu1 %v2801_v39  ;;  %1444 = vmatmul.mubr.bf16.vlgmr.msra.gmra.mxu0 %v2801_v39 }
 0x192   : > { %1340 = vmatprep.mubr.bf16.mxu1 %v2528_v1  ;;  %1453 = vmatprep.mubr.bf16.mxu0 %v2528_v1 }
 0x193   : > { %1525 = vmatpush1.bf16.msra.mxu1 %v2341_v49  ;;  %1638 = vmatpush1.bf16.msra.mxu0 %v2803_v40  ;;  %v2301_v49 = vcombine.low %v890_v10, %v894_v12 }
 0x194   : > { %1526 = vmatprep.subr.bf16.mxu1 %v2334_v41  ;;  %1639 = vmatprep.subr.bf16.mxu0 %v2805_v47  ;;  %v2285_v41 = vcombine.low %v874_v22, %v878_v25 }
 0x197   : > { %1527 = vmatpush1.bf16.msra.mxu1 %v2333_v35  ;;  %1640 = vmatpush1.bf16.msra.mxu0 %v2813_v53 }
 0x198   : > { %1528 = vmatprep.subr.bf16.mxu1 %v2326_v54  ;;  %1641 = vmatprep.subr.bf16.mxu0 %v2816_v56 }
 0x199   : > { %1341 = vmatmul.mubr.bf16.gmra.mxu1 %v2818_v61  ;;  %1454 = vmatmul.mubr.bf16.gmra.mxu0 %v2818_v61 }
 0x19a   : > { %1350 = vmatprep.mubr.bf16.mxu1 %v2528_v1  ;;  %1463 = vmatprep.mubr.bf16.mxu0 %v2528_v1 }
 0x19b   : > { %1529 = vmatpush1.bf16.msra.mxu1 %v2325_v62  ;;  %1642 = vmatpush1.bf16.msra.mxu0 %v2821_v63 }
 0x19c   : > { %1530 = vmatprep.subr.bf16.mxu1 %v2318_v0  ;;  %1643 = vmatprep.subr.bf16.mxu0 %v2824_v2 }
 0x19f   : > { %1531 = vmatpush1.bf16.msra.mxu1 %v2317_v6  ;;  %1644 = vmatpush1.bf16.msra.mxu0 %v2831_v7 }
 0x1a0   : > { %1532 = vmatprep.subr.bf16.mxu1 %v2310_v8  ;;  %1645 = vmatprep.subr.bf16.mxu0 %v2834_v11 }
 0x1a3   : > { %1533 = vmatpush1.bf16.msra.mxu1 %v2309_v15  ;;  %1646 = vmatpush1.bf16.msra.mxu0 %v2837_v42 }
 0x1a4   : > { %1534 = vmatprep.subr.bf16.mxu1 %v2302_v43  ;;  %1647 = vmatprep.subr.bf16.mxu0 %v2840_v16 }
 0x1a5   : > { %v2374_v24 = vpop.f32.mrf.mxu0 }
 0x1a6   : > { %v810_v35 = vadd.f32 %v2374_v24, %v2796_v57 }
 0x1a7   : > { %v801_v28 = vpop.f32.mrf.mxu0  ;;  %1535 = vmatpush1.bf16.msra.mxu1 %v2301_v49  ;;  %1648 = vmatpush1.bf16.msra.mxu0 %v2843_v20 }
 0x1a8   : > { %1536 = vmatprep.subr.bf16.mxu1 %v2294_v21  ;;  %1649 = vmatprep.subr.bf16.mxu0 %v2846_v9  ;;  %v802_v36 = vadd.f32 %v2796_v57, %v801_v28  ;;  %v854_v55 = vmax.f32 %v810_v35, 0.0 }
 0x1a9   : > { %v2375_v34 = vpop.f32.mrf.mxu0 }
 0x1aa   : > { %v852_v50 = vmax.f32 %v802_v36, 0.0  ;;  %v813_v52 = vadd.f32 %v2375_v34, %v2796_v57 }
 0x1ab   : > { %v804_v37 = vpop.f32.mrf.mxu0  ;;  %1537 = vmatpush1.bf16.msra.mxu1 %v2293_v29  ;;  %1650 = vmatpush1.bf16.msra.mxu0 %v2849_v30 }
 0x1ac   : > { %v805_v48 = vadd.f32 %v2796_v57, %v804_v37  ;;  %1538 = vmatprep.subr.bf16.mxu1 %v2286_v31  ;;  %1651 = vmatprep.subr.bf16.mxu0 %v2852_v33  ;;  %v855_v54 = vmax.f32 %v813_v52, 0.0 }
 0x1ae   : > { %v853_v51 = vmax.f32 %v805_v48, 0.0  ;;  %v2870_v58 = vpack.c.bf16 %v855_v54, %v854_v55 }
 0x1af   : > { %1539 = vmatpush1.bf16.msra.mxu1 %v2285_v41  ;;  %1652 = vmatpush1.bf16.msra.mxu0 %v2856_v44 }
 0x1b0   : > { %v2862_v32 = vpack.c.bf16 %v853_v51, %v852_v50  ;;  %2384 = vmatprep.subr.bf16.mxu1 %v2790_v23 }
 0x1b2   : > { %1351 = vmatmul.mubr.bf16.gmra.mxu1 %v2862_v32  ;;  %1464 = vmatmul.mubr.bf16.gmra.mxu0 %v2862_v32 }
 0x1b3   : > { %1360 = vmatprep.mubr.bf16.mxu1 %v2528_v1  ;;  %1473 = vmatprep.mubr.bf16.mxu0 %v2528_v1 }
 0x1ba   : > { %1361 = vmatmul.mubr.bf16.gmra.mxu1 %v2870_v58  ;;  %1474 = vmatmul.mubr.bf16.gmra.mxu0 %v2870_v58 }
 0x1bb   : > { %1370 = vmatprep.mubr.bf16.mxu1 %v2528_v1  ;;  %1483 = vmatprep.mubr.bf16.mxu0 %v2528_v1 }
 0x1ca   : > { %v2378_v23 = vpop.f32.mrf.mxu0 }
 0x1cb   : > { %v826_v6 = vadd.f32 %v2378_v23, %v2796_v57 }
 0x1cc   : > { %v817_v46 = vpop.f32.mrf.mxu0 }
 0x1cd   : > { %v818_v60 = vadd.f32 %v2796_v57, %v817_v46  ;;  %v858_v10 = vmax.f32 %v826_v6, 0.0 }
 0x1ce   : > { %v2379_v59 = vpop.f32.mrf.mxu0 }
 0x1cf   : > { %v856_v38 = vmax.f32 %v818_v60, 0.0  ;;  %v829_v4 = vadd.f32 %v2379_v59, %v2796_v57 }
 0x1d0   : > { %v820_v62 = vpop.f32.mrf.mxu0 }
 0x1d1   : > { %v821_v0 = vadd.f32 %v2796_v57, %v820_v62  ;;  %v859_v8 = vmax.f32 %v829_v4, 0.0 }
 0x1d3   : > { %v857_v3 = vmax.f32 %v821_v0, 0.0  ;;  %v869_v12 = vpack.c.bf16 %v859_v8, %v858_v10 }
 0x1d5   : > { %v2879_v5 = vpack.c.bf16 %v857_v3, %v856_v38 }
 0x1d7   : > { %1371 = vmatmul.mubr.bf16.gmra.mxu1 %v2879_v5  ;;  %1484 = vmatmul.mubr.bf16.gmra.mxu0 %v2879_v5 }
 0x1d8   : > { %1380 = vmatprep.mubr.bf16.mxu1 %v2528_v1  ;;  %1493 = vmatprep.mubr.bf16.mxu0 %v2528_v1 }
 0x1df   : > { %1381 = vmatmul.mubr.bf16.gmra.mxu1 %v869_v12  ;;  %1494 = vmatmul.mubr.bf16.gmra.mxu0 %v869_v12 }
 0x1e0   : > { %1390 = vmatprep.mubr.bf16.mxu1 %v2528_v1  ;;  %1503 = vmatprep.mubr.bf16.mxu0 %v2528_v1 }
 0x1eb   : > { %v2382_v13 = vpop.f32.mrf.mxu0 }
 0x1ec   : > { %v842_v22 = vadd.f32 %v2382_v13, %v2796_v57 }
 0x1ed   : > { %v833_v14 = vpop.f32.mrf.mxu0 }
 0x1ee   : > { %v834_v43 = vadd.f32 %v2796_v57, %v833_v14  ;;  %v862_v25 = vmax.f32 %v842_v22, 0.0 }
 0x1ef   : > { %v2383_v15 = vpop.f32.mrf.mxu0 }
 0x1f0   : > { %v860_v18 = vmax.f32 %v834_v43, 0.0  ;;  %v845_v49 = vadd.f32 %v2383_v15, %v2796_v57 }
 0x1f1   : > { %v836_v45 = vpop.f32.mrf.mxu0 }
 0x1f2   : > { %v837_v17 = vadd.f32 %v2796_v57, %v836_v45  ;;  %v863_v24 = vmax.f32 %v845_v49, 0.0  ;;  %v938_v57 = vlaneseq }
 0x1f4   : > { %v861_v19 = vmax.f32 %v837_v17, 0.0  ;;  %v871_v26 = vpack.c.bf16 %v863_v24, %v862_v25 }
 0x1f6   : > { %v870_v21 = vpack.c.bf16 %v861_v19, %v860_v18 }
 0x1f8   : > { %1391 = vmatmul.mubr.bf16.gmra.mxu1 %v870_v21  ;;  %1504 = vmatmul.mubr.bf16.gmra.mxu0 %v870_v21 }
 0x1f9   : > { %1400 = vmatprep.mubr.bf16.mxu1 %v2528_v1  ;;  %1513 = vmatprep.mubr.bf16.mxu0 %v2528_v1 }
 0x200   : > { %1401 = vmatmul.mubr.bf16.gmra.mxu1 %v871_v26  ;;  %1514 = vmatmul.mubr.bf16.gmra.mxu0 %v871_v26 }
 0x201   : > { %1556 = vmatprep.mubr.bf16.mxu1 %v2528_v1  ;;  %1669 = vmatprep.mubr.bf16.mxu0 %v2528_v1 }
 0x208   : > { %1557 = vmatmul.mubr.bf16.vlgmr.msra.gmra.mxu1 %v2801_v39  ;;  %1670 = vmatmul.mubr.bf16.vlgmr.msra.gmra.mxu0 %v2801_v39  ;;  %v2935_v39 = vshrl.u32 %v938_v57, 7 }
 0x209   : > { %2392 = vmatpush1.bf16.msra.mxu1 %v2803_v40  ;;  %1566 = vmatprep.mubr.bf16.mxu1 %v2528_v1 }
 0x20a   : > { %2385 = vmatprep.subr.bf16.mxu1 %v2805_v47  ;;  %1679 = vmatprep.mubr.bf16.mxu0 %v2528_v1  ;;  %v940_v40 = vsub.s32 0, %v2935_v39  ;;  %v948_v47 = vsub.s32 2, %v2935_v39 }
 0x20d   : > { %2393 = vmatpush1.bf16.msra.mxu1 %v2813_v53  ;;  %v2942_v53 = vld [vmem:[%s3178_s6] sm:$0xff] }
 0x20e   : > { %2386 = vmatprep.subr.bf16.mxu1 %v2816_v56  ;;  %v944_v56 = vsub.s32 1, %v2935_v39 }
 0x210   : > { %1567 = vmatmul.mubr.bf16.gmra.mxu1 %v2818_v61  ;;  %1680 = vmatmul.mubr.bf16.gmra.mxu0 %v2818_v61  ;;  %v952_v61 = vsub.s32 3, %v2935_v39 }
 0x211   : > { %1576 = vmatprep.mubr.bf16.mxu1 %v2528_v1  ;;  %1689 = vmatprep.mubr.bf16.mxu0 %v2528_v1 }
 0x212   : > { %2394 = vmatpush1.bf16.msra.mxu1 %v2821_v63  ;;  %v2947_v63 = vrot.slane %v2942_v53, %v940_v40 }
 0x213   : > { %2387 = vmatprep.subr.bf16.mxu1 %v2824_v2 }
 0x216   : > { %2395 = vmatpush1.bf16.msra.mxu1 %v2831_v7 }
 0x217   : > { %2388 = vmatprep.subr.bf16.mxu1 %v2834_v11  ;;  %v2953_v11 = vrot.slane %v2942_v53, %v944_v56 }
 0x218   : > { %1577 = vmatmul.mubr.bf16.gmra.mxu1 %v2862_v32  ;;  %1690 = vmatmul.mubr.bf16.gmra.mxu0 %v2862_v32 }
 0x219   : > { %1586 = vmatprep.mubr.bf16.mxu1 %v2528_v1  ;;  %1699 = vmatprep.mubr.bf16.mxu0 %v2528_v1 }
 0x21a   : > { %2396 = vmatpush1.bf16.msra.mxu1 %v2837_v42  ;;  %v2956_v42 = vrot.slane %v2942_v53, %v952_v61 }
 0x21b   : > { %2389 = vmatprep.subr.bf16.mxu1 %v2840_v16 }
 0x21e   : > { %2397 = vmatpush1.bf16.msra.mxu1 %v2843_v20 }
 0x21f   : > { %2390 = vmatprep.subr.bf16.mxu1 %v2846_v9 }
 0x220   : > { %1587 = vmatmul.mubr.bf16.gmra.mxu1 %v2870_v58  ;;  %1700 = vmatmul.mubr.bf16.gmra.mxu0 %v2870_v58 }
 0x221   : > { %1596 = vmatprep.mubr.bf16.mxu1 %v2528_v1  ;;  %1709 = vmatprep.mubr.bf16.mxu0 %v2528_v1 }
 0x222   : > { %2398 = vmatpush1.bf16.msra.mxu1 %v2849_v30 }
 0x223   : > { %2391 = vmatprep.subr.bf16.mxu1 %v2852_v33 }
 0x226   : > { %2399 = vmatpush1.bf16.msra.mxu1 %v2856_v44 }
 0x228   : > { %1597 = vmatmul.mubr.bf16.gmra.mxu1 %v2879_v5  ;;  %1710 = vmatmul.mubr.bf16.gmra.mxu0 %v2879_v5 }
 0x229   : > { %1606 = vmatprep.mubr.bf16.mxu1 %v2528_v1  ;;  %1719 = vmatprep.mubr.bf16.mxu0 %v2528_v1 }
 0x230   : > { %1607 = vmatmul.mubr.bf16.gmra.mxu1 %v869_v12  ;;  %1720 = vmatmul.mubr.bf16.gmra.mxu0 %v869_v12 }
 0x231   : > { %1616 = vmatprep.mubr.bf16.mxu1 %v2528_v1  ;;  %1729 = vmatprep.mubr.bf16.mxu0 %v2528_v1 }
 0x238   : > { %1617 = vmatmul.mubr.bf16.gmra.mxu1 %v870_v21  ;;  %1730 = vmatmul.mubr.bf16.gmra.mxu0 %v870_v21 }
 0x239   : > { %1626 = vmatprep.mubr.bf16.mxu1 %v2528_v1 }
 0x240   : > { %1627 = vmatmul.mubr.bf16.gmra.mxu1 %v871_v26 }
 0x241   : > { %1739 = vmatprep.mubr.bf16.mxu1 %v2528_v1  ;;  %v2950_v1 = vrot.slane %v2942_v53, %v948_v47 }
 0x248   : > { %1740 = vmatmul.mubr.bf16.vlgmr.msra.gmra.mxu1 %v871_v26 }
 0x251   : > { %v1332_v2 = vpop.f32.mrf.mxu1  ;;  %v1445_v7 = vpop.f32.mrf.mxu0 }
 0x252   : > { %v1333_v16 = vadd.f32 %v1332_v2, %v2947_v63  ;;  %v1446_v20 = vadd.f32 %v1445_v7, %v2950_v1 }
 0x253   : > { %v1334_v9 = vpop.f32.mrf.mxu1  ;;  %v1447_v27 = vpop.f32.mrf.mxu0 }
 0x254   : > { %v1335_v28 = vadd.f32 %v1334_v9, %v2953_v11  ;;  %v1448_v29 = vadd.f32 %v1447_v27, %v2956_v42  ;;  %v1750_v36 = vmax.f32 %v1333_v16, 0.0  ;;  %v1752_v37 = vmax.f32 %v1446_v20, 0.0 }
 0x255   : > { %v1336_v30 = vpop.f32.mrf.mxu1  ;;  %v1449_v31 = vpop.f32.mrf.mxu0 }
 0x256   : > { %v1337_v33 = vadd.f32 %v1336_v30, %v2947_v63  ;;  %v1450_v34 = vadd.f32 %v1449_v31, %v2950_v1  ;;  %v1751_v32 = vmax.f32 %v1335_v28, 0.0  ;;  %v1753_v35 = vmax.f32 %v1448_v29, 0.0 }
 0x257   : > { %v1338_v41 = vpop.f32.mrf.mxu1  ;;  %v1451_v44 = vpop.f32.mrf.mxu0 }
 0x258   : > { %v1758_v48 = vmax.f32 %v1337_v33, 0.0  ;;  %v1760_v50 = vmax.f32 %v1450_v34, 0.0  ;;  %v1339_v51 = vadd.f32 %v1338_v41, %v2953_v11  ;;  %v1452_v52 = vadd.f32 %v1451_v44, %v2956_v42 }
 0x259   : > { %v1342_v54 = vpop.f32.mrf.mxu1  ;;  %v1455_v55 = vpop.f32.mrf.mxu0 }
 0x25a   : > { %v1878_v58 = vmax.f32 %v1750_v36, %v1758_v48  ;;  %v1920_v23 = vmax.f32 %v1752_v37, %v1760_v50  ;;  %v1759_v46 = vmax.f32 %v1339_v51, 0.0  ;;  %v1761_v59 = vmax.f32 %v1452_v52, 0.0 }
 0x25b   : > { %v1343_v60 = vadd.f32 %v1342_v54, %v2947_v63  ;;  %v1456_v62 = vadd.f32 %v1455_v55, %v2950_v1  ;;  %v1344_v0 = vpop.f32.mrf.mxu1  ;;  %v1457_v38 = vpop.f32.mrf.mxu0 }
 0x25c   : > { %v1899_v3 = vmax.f32 %v1751_v32, %v1759_v46  ;;  %v1941_v4 = vmax.f32 %v1753_v35, %v1761_v59  ;;  %v1345_v5 = vadd.f32 %v1344_v0, %v2953_v11  ;;  %v1458_v6 = vadd.f32 %v1457_v38, %v2956_v42 }
 0x25d   : > { %v1766_v8 = vmax.f32 %v1343_v60, 0.0  ;;  %v1768_v10 = vmax.f32 %v1456_v62, 0.0  ;;  %v1346_v12 = vpop.f32.mrf.mxu1  ;;  %v1459_v13 = vpop.f32.mrf.mxu0 }
 0x25e   : > { %v1767_v14 = vmax.f32 %v1345_v5, 0.0  ;;  %v1769_v15 = vmax.f32 %v1458_v6, 0.0  ;;  %v1347_v43 = vadd.f32 %v1346_v12, %v2947_v63  ;;  %v1460_v45 = vadd.f32 %v1459_v13, %v2950_v1 }
 0x25f   : > { %v1879_v17 = vmax.f32 %v1878_v58, %v1766_v8  ;;  %v1921_v18 = vmax.f32 %v1920_v23, %v1768_v10  ;;  %v1348_v19 = vpop.f32.mrf.mxu1  ;;  %v1461_v49 = vpop.f32.mrf.mxu0 }
 0x260   : > { %v1900_v21 = vmax.f32 %v1899_v3, %v1767_v14  ;;  %v1942_v22 = vmax.f32 %v1941_v4, %v1769_v15  ;;  %v1774_v24 = vmax.f32 %v1347_v43, 0.0  ;;  %v1776_v25 = vmax.f32 %v1460_v45, 0.0 }
 0x261   : > { %v1349_v26 = vadd.f32 %v1348_v19, %v2953_v11  ;;  %v1462_v57 = vadd.f32 %v1461_v49, %v2956_v42 }
 0x262   : > { %v1880_v40 = vmax.f32 %v1879_v17, %v1774_v24  ;;  %v1922_v47 = vmax.f32 %v1921_v18, %v1776_v25 }
 0x263   : > { %v1775_v56 = vmax.f32 %v1349_v26, 0.0  ;;  %v1777_v61 = vmax.f32 %v1462_v57, 0.0 }
 0x265   : > { %v1901_v2 = vmax.f32 %v1900_v21, %v1775_v56  ;;  %v1943_v7 = vmax.f32 %v1942_v22, %v1777_v61 }
 0x272   : > { %v1352_v16 = vpop.f32.mrf.mxu1  ;;  %v1465_v20 = vpop.f32.mrf.mxu0 }
 0x273   : > { %v1353_v9 = vadd.f32 %v1352_v16, %v2947_v63  ;;  %v1466_v27 = vadd.f32 %v1465_v20, %v2950_v1 }
 0x274   : > { %v1354_v28 = vpop.f32.mrf.mxu1  ;;  %v1467_v29 = vpop.f32.mrf.mxu0 }
 0x275   : > { %v1782_v30 = vmax.f32 %v1353_v9, 0.0  ;;  %v1784_v31 = vmax.f32 %v1466_v27, 0.0  ;;  %v1355_v33 = vadd.f32 %v1354_v28, %v2953_v11  ;;  %v1468_v34 = vadd.f32 %v1467_v29, %v2956_v42 }
 0x276   : > { %v1356_v36 = vpop.f32.mrf.mxu1  ;;  %v1469_v37 = vpop.f32.mrf.mxu0 }
 0x277   : > { %v1881_v41 = vmax.f32 %v1880_v40, %v1782_v30  ;;  %v1923_v44 = vmax.f32 %v1922_v47, %v1784_v31  ;;  %v1783_v48 = vmax.f32 %v1355_v33, 0.0  ;;  %v1785_v50 = vmax.f32 %v1468_v34, 0.0 }
 0x278   : > { %v1357_v51 = vadd.f32 %v1356_v36, %v2947_v63  ;;  %v1470_v52 = vadd.f32 %v1469_v37, %v2950_v1  ;;  %v1358_v32 = vpop.f32.mrf.mxu1  ;;  %v1471_v35 = vpop.f32.mrf.mxu0 }
 0x279   : > { %v1902_v54 = vmax.f32 %v1901_v2, %v1783_v48  ;;  %v1944_v55 = vmax.f32 %v1943_v7, %v1785_v50  ;;  %v1359_v58 = vadd.f32 %v1358_v32, %v2953_v11  ;;  %v1472_v23 = vadd.f32 %v1471_v35, %v2956_v42 }
 0x27a   : > { %v1790_v46 = vmax.f32 %v1357_v51, 0.0  ;;  %v1792_v59 = vmax.f32 %v1470_v52, 0.0  ;;  %v1362_v60 = vpop.f32.mrf.mxu1  ;;  %v1475_v62 = vpop.f32.mrf.mxu0 }
 0x27b   : > { %v1791_v0 = vmax.f32 %v1359_v58, 0.0  ;;  %v1793_v38 = vmax.f32 %v1472_v23, 0.0  ;;  %v1363_v3 = vadd.f32 %v1362_v60, %v2947_v63  ;;  %v1476_v4 = vadd.f32 %v1475_v62, %v2950_v1 }
 0x27c   : > { %v1882_v5 = vmax.f32 %v1881_v41, %v1790_v46  ;;  %v1924_v6 = vmax.f32 %v1923_v44, %v1792_v59  ;;  %v1364_v8 = vpop.f32.mrf.mxu1  ;;  %v1477_v10 = vpop.f32.mrf.mxu0 }
 0x27d   : > { %v1903_v12 = vmax.f32 %v1902_v54, %v1791_v0  ;;  %v1945_v13 = vmax.f32 %v1944_v55, %v1793_v38  ;;  %v1798_v14 = vmax.f32 %v1363_v3, 0.0  ;;  %v1800_v15 = vmax.f32 %v1476_v4, 0.0 }
 0x27e   : > { %v1365_v43 = vadd.f32 %v1364_v8, %v2953_v11  ;;  %v1478_v45 = vadd.f32 %v1477_v10, %v2956_v42  ;;  %v1366_v17 = vpop.f32.mrf.mxu1  ;;  %v1479_v18 = vpop.f32.mrf.mxu0 }
 0x27f   : > { %v1883_v19 = vmax.f32 %v1882_v5, %v1798_v14  ;;  %v1925_v49 = vmax.f32 %v1924_v6, %v1800_v15  ;;  %v1367_v21 = vadd.f32 %v1366_v17, %v2947_v63  ;;  %v1480_v22 = vadd.f32 %v1479_v18, %v2950_v1 }
 0x280   : > { %v1799_v24 = vmax.f32 %v1365_v43, 0.0  ;;  %v1801_v25 = vmax.f32 %v1478_v45, 0.0  ;;  %v1368_v26 = vpop.f32.mrf.mxu1  ;;  %v1481_v57 = vpop.f32.mrf.mxu0 }
 0x281   : > { %v1806_v40 = vmax.f32 %v1367_v21, 0.0  ;;  %v1808_v47 = vmax.f32 %v1480_v22, 0.0  ;;  %v1369_v56 = vadd.f32 %v1368_v26, %v2953_v11  ;;  %v1482_v61 = vadd.f32 %v1481_v57, %v2956_v42 }
 0x282   : > { %v1904_v2 = vmax.f32 %v1903_v12, %v1799_v24  ;;  %v1946_v7 = vmax.f32 %v1945_v13, %v1801_v25 }
 0x283   : > { %v1884_v16 = vmax.f32 %v1883_v19, %v1806_v40  ;;  %v1926_v20 = vmax.f32 %v1925_v49, %v1808_v47  ;;  %v1807_v9 = vmax.f32 %v1369_v56, 0.0  ;;  %v1809_v27 = vmax.f32 %v1482_v61, 0.0 }
 0x285   : > { %v1905_v28 = vmax.f32 %v1904_v2, %v1807_v9  ;;  %v1947_v29 = vmax.f32 %v1946_v7, %v1809_v27 }
 0x297   : > { %v1372_v30 = vpop.f32.mrf.mxu1  ;;  %v1485_v31 = vpop.f32.mrf.mxu0 }
 0x298   : > { %v1373_v33 = vadd.f32 %v1372_v30, %v2947_v63  ;;  %v1486_v34 = vadd.f32 %v1485_v31, %v2950_v1 }
 0x299   : > { %v1374_v36 = vpop.f32.mrf.mxu1  ;;  %v1487_v37 = vpop.f32.mrf.mxu0 }
 0x29a   : > { %v1814_v41 = vmax.f32 %v1373_v33, 0.0  ;;  %v1816_v44 = vmax.f32 %v1486_v34, 0.0  ;;  %v1375_v48 = vadd.f32 %v1374_v36, %v2953_v11  ;;  %v1488_v50 = vadd.f32 %v1487_v37, %v2956_v42 }
 0x29b   : > { %v1376_v51 = vpop.f32.mrf.mxu1  ;;  %v1489_v52 = vpop.f32.mrf.mxu0 }
 0x29c   : > { %v1885_v32 = vmax.f32 %v1884_v16, %v1814_v41  ;;  %v1927_v35 = vmax.f32 %v1926_v20, %v1816_v44  ;;  %v1815_v54 = vmax.f32 %v1375_v48, 0.0  ;;  %v1817_v55 = vmax.f32 %v1488_v50, 0.0 }
 0x29d   : > { %v1377_v58 = vadd.f32 %v1376_v51, %v2947_v63  ;;  %v1490_v23 = vadd.f32 %v1489_v52, %v2950_v1  ;;  %v1378_v46 = vpop.f32.mrf.mxu1  ;;  %v1491_v59 = vpop.f32.mrf.mxu0 }
 0x29e   : > { %v1906_v60 = vmax.f32 %v1905_v28, %v1815_v54  ;;  %v1948_v62 = vmax.f32 %v1947_v29, %v1817_v55  ;;  %v1379_v0 = vadd.f32 %v1378_v46, %v2953_v11  ;;  %v1492_v38 = vadd.f32 %v1491_v59, %v2956_v42 }
 0x29f   : > { %v1822_v3 = vmax.f32 %v1377_v58, 0.0  ;;  %v1824_v4 = vmax.f32 %v1490_v23, 0.0  ;;  %v1382_v5 = vpop.f32.mrf.mxu1  ;;  %v1495_v6 = vpop.f32.mrf.mxu0 }
 0x2a0   : > { %v1823_v8 = vmax.f32 %v1379_v0, 0.0  ;;  %v1825_v10 = vmax.f32 %v1492_v38, 0.0  ;;  %v1383_v12 = vadd.f32 %v1382_v5, %v2947_v63  ;;  %v1496_v13 = vadd.f32 %v1495_v6, %v2950_v1 }
 0x2a1   : > { %v1886_v14 = vmax.f32 %v1885_v32, %v1822_v3  ;;  %v1928_v15 = vmax.f32 %v1927_v35, %v1824_v4  ;;  %v1384_v43 = vpop.f32.mrf.mxu1  ;;  %v1497_v45 = vpop.f32.mrf.mxu0 }
 0x2a2   : > { %v1907_v17 = vmax.f32 %v1906_v60, %v1823_v8  ;;  %v1949_v18 = vmax.f32 %v1948_v62, %v1825_v10  ;;  %v1830_v19 = vmax.f32 %v1383_v12, 0.0  ;;  %v1832_v49 = vmax.f32 %v1496_v13, 0.0 }
 0x2a3   : > { %v1385_v21 = vadd.f32 %v1384_v43, %v2953_v11  ;;  %v1498_v22 = vadd.f32 %v1497_v45, %v2956_v42  ;;  %v1386_v24 = vpop.f32.mrf.mxu1  ;;  %v1499_v25 = vpop.f32.mrf.mxu0 }
 0x2a4   : > { %v1887_v26 = vmax.f32 %v1886_v14, %v1830_v19  ;;  %v1929_v57 = vmax.f32 %v1928_v15, %v1832_v49  ;;  %v1387_v40 = vadd.f32 %v1386_v24, %v2947_v63  ;;  %v1500_v47 = vadd.f32 %v1499_v25, %v2950_v1 }
 0x2a5   : > { %v1831_v56 = vmax.f32 %v1385_v21, 0.0  ;;  %v1833_v61 = vmax.f32 %v1498_v22, 0.0  ;;  %v1388_v2 = vpop.f32.mrf.mxu1  ;;  %v1501_v7 = vpop.f32.mrf.mxu0 }
 0x2a6   : > { %v1838_v16 = vmax.f32 %v1387_v40, 0.0  ;;  %v1840_v20 = vmax.f32 %v1500_v47, 0.0  ;;  %v1389_v9 = vadd.f32 %v1388_v2, %v2953_v11  ;;  %v1502_v27 = vadd.f32 %v1501_v7, %v2956_v42 }
 0x2a7   : > { %v1908_v28 = vmax.f32 %v1907_v17, %v1831_v56  ;;  %v1950_v29 = vmax.f32 %v1949_v18, %v1833_v61 }
 0x2a8   : > { %v1888_v30 = vmax.f32 %v1887_v26, %v1838_v16  ;;  %v1930_v31 = vmax.f32 %v1929_v57, %v1840_v20  ;;  %v1839_v33 = vmax.f32 %v1389_v9, 0.0  ;;  %v1841_v34 = vmax.f32 %v1502_v27, 0.0 }
 0x2aa   : > { %v1909_v36 = vmax.f32 %v1908_v28, %v1839_v33  ;;  %v1951_v37 = vmax.f32 %v1950_v29, %v1841_v34 }
 0x2b8   : > { %v1392_v41 = vpop.f32.mrf.mxu1  ;;  %v1505_v44 = vpop.f32.mrf.mxu0 }
 0x2b9   : > { %v1393_v48 = vadd.f32 %v1392_v41, %v2947_v63  ;;  %v1506_v50 = vadd.f32 %v1505_v44, %v2950_v1 }
 0x2ba   : > { %v1394_v51 = vpop.f32.mrf.mxu1  ;;  %v1507_v52 = vpop.f32.mrf.mxu0 }
 0x2bb   : > { %v1846_v32 = vmax.f32 %v1393_v48, 0.0  ;;  %v1848_v35 = vmax.f32 %v1506_v50, 0.0  ;;  %v1395_v54 = vadd.f32 %v1394_v51, %v2953_v11  ;;  %v1508_v55 = vadd.f32 %v1507_v52, %v2956_v42 }
 0x2bc   : > { %v1396_v58 = vpop.f32.mrf.mxu1  ;;  %v1509_v23 = vpop.f32.mrf.mxu0 }
 0x2bd   : > { %v1889_v46 = vmax.f32 %v1888_v30, %v1846_v32  ;;  %v1931_v59 = vmax.f32 %v1930_v31, %v1848_v35  ;;  %v1847_v60 = vmax.f32 %v1395_v54, 0.0  ;;  %v1849_v62 = vmax.f32 %v1508_v55, 0.0 }
 0x2be   : > { %v1397_v0 = vadd.f32 %v1396_v58, %v2947_v63  ;;  %v1510_v38 = vadd.f32 %v1509_v23, %v2950_v1  ;;  %v1398_v3 = vpop.f32.mrf.mxu1  ;;  %v1511_v4 = vpop.f32.mrf.mxu0 }
 0x2bf   : > { %v1910_v5 = vmax.f32 %v1909_v36, %v1847_v60  ;;  %v1952_v6 = vmax.f32 %v1951_v37, %v1849_v62  ;;  %v1399_v8 = vadd.f32 %v1398_v3, %v2953_v11  ;;  %v1512_v10 = vadd.f32 %v1511_v4, %v2956_v42 }
 0x2c0   : > { %v1854_v12 = vmax.f32 %v1397_v0, 0.0  ;;  %v1856_v13 = vmax.f32 %v1510_v38, 0.0  ;;  %v1402_v14 = vpop.f32.mrf.mxu1  ;;  %v1515_v15 = vpop.f32.mrf.mxu0  ;;  %v2530_v60 = vmov 1966171168  }
 0x2c1   : > { %v1855_v43 = vmax.f32 %v1399_v8, 0.0  ;;  %v1857_v45 = vmax.f32 %v1512_v10, 0.0  ;;  %v1403_v17 = vadd.f32 %v1402_v14, %v2947_v63  ;;  %v1516_v18 = vadd.f32 %v1515_v15, %v2950_v1 }
 0x2c2   : > { %v1890_v19 = vmax.f32 %v1889_v46, %v1854_v12  ;;  %v1932_v49 = vmax.f32 %v1931_v59, %v1856_v13  ;;  %v1404_v21 = vpop.f32.mrf.mxu1  ;;  %v1517_v22 = vpop.f32.mrf.mxu0  ;;  %v2063_v62 = vunpack.c.l.s4 %v2530_v60 }
 0x2c3   : > { %v1911_v24 = vmax.f32 %v1910_v5, %v1855_v43  ;;  %v1953_v25 = vmax.f32 %v1952_v6, %v1857_v45  ;;  %v1862_v26 = vmax.f32 %v1403_v17, 0.0  ;;  %v1864_v57 = vmax.f32 %v1516_v18, 0.0 }
 0x2c4   : > { %v1405_v40 = vadd.f32 %v1404_v21, %v2953_v11  ;;  %v1518_v47 = vadd.f32 %v1517_v22, %v2956_v42  ;;  %v1406_v56 = vpop.f32.mrf.mxu1  ;;  %v1519_v61 = vpop.f32.mrf.mxu0  ;;  %v2064_v43 = vunpack.c.0.s8 %v2063_v62 }
 0x2c5   : > { %v1891_v2 = vmax.f32 %v1890_v19, %v1862_v26  ;;  %v1933_v7 = vmax.f32 %v1932_v49, %v1864_v57  ;;  %v1407_v16 = vadd.f32 %v1406_v56, %v2947_v63  ;;  %v1520_v20 = vadd.f32 %v1519_v61, %v2950_v1 }
 0x2c6   : > { %v1863_v9 = vmax.f32 %v1405_v40, 0.0  ;;  %v1865_v27 = vmax.f32 %v1518_v47, 0.0  ;;  %v1408_v28 = vpop.f32.mrf.mxu1  ;;  %v1521_v29 = vpop.f32.mrf.mxu0  ;;  %v3031_v57 = vsub.s32 %v2064_v43, %v2935_v39  ;;  %v956_v40 = vsub.s32 4, %v2935_v39 }
 0x2c7   : > { %v1870_v30 = vmax.f32 %v1407_v16, 0.0  ;;  %v1872_v31 = vmax.f32 %v1520_v20, 0.0  ;;  %v1409_v33 = vadd.f32 %v1408_v28, %v2953_v11  ;;  %v1522_v34 = vadd.f32 %v1521_v29, %v2956_v42 }
 0x2c8   : > { %v1912_v36 = vmax.f32 %v1911_v24, %v1863_v9  ;;  %v1954_v37 = vmax.f32 %v1953_v25, %v1865_v27  ;;  %v3022_v41 = vpop.f32.mrf.mxu1  ;;  %v3024_v44 = vpop.f32.mrf.mxu0  ;;  %v964_v20 = vsub.s32 6, %v2935_v39 }
 0x2c9   : > { %v1892_v48 = vmax.f32 %v1891_v2, %v1870_v30  ;;  %v1934_v63 = vmax.f32 %v1933_v7, %v1872_v31  ;;  %v1871_v50 = vmax.f32 %v1409_v33, 0.0  ;;  %v1873_v1 = vmax.f32 %v1522_v34, 0.0 }
 0x2ca   : > { %v3026_v51 = vpop.f32.mrf.mxu1  ;;  %v3028_v52 = vpop.f32.mrf.mxu0  ;;  %v960_v30 = vsub.s32 5, %v2935_v39  ;;  %v968_v31 = vsub.s32 7, %v2935_v39 }
 0x2cb   : > { %v1893_v32 = vrot.slane %v1892_v48, 4  ;;  %v1935_v35 = vrot.slane %v1934_v63, 4  ;;  %v1913_v54 = vmax.f32 %v1912_v36, %v1871_v50  ;;  %v1955_v11 = vmax.f32 %v1954_v37, %v1873_v1 }
 0x2cc   : > { %v1562_v55 = vpop.f32.mrf.mxu1  ;;  %v1675_v42 = vpop.f32.mrf.mxu0 }
 0x2cd   : > { %v1894_v58 = vmax.f32 %v1892_v48, %v1893_v32  ;;  %v1936_v23 = vmax.f32 %v1934_v63, %v1935_v35  ;;  %v1914_v46 = vrot.slane %v1913_v54, 4  ;;  %v1956_v59 = vrot.slane %v1955_v11, 4 }
 0x2ce   : > { %v1564_v0 = vpop.f32.mrf.mxu1  ;;  %v1677_v38 = vpop.f32.mrf.mxu0  ;;  %v3046_v48 = vrot.slane %v2942_v53, %v956_v40  ;;  %v3049_v63 = vrot.slane %v2942_v53, %v964_v20  ;;  %v3056_v32 = vrot.slane %v2942_v53, %v960_v30  ;;  %v3059_v35 = vrot.slane %v2942_v53, %v968_v31 }
 0x2cf   : > { %v1895_v3 = vrot.slane %v1894_v58, 2  ;;  %v1937_v4 = vrot.slane %v1936_v23, 2  ;;  %v1915_v5 = vmax.f32 %v1913_v54, %v1914_v46  ;;  %v1957_v6 = vmax.f32 %v1955_v11, %v1956_v59 }
 0x2d0   : > { %v1568_v8 = vpop.f32.mrf.mxu1  ;;  %v1681_v10 = vpop.f32.mrf.mxu0  ;;  %v1563_v54 = vadd.f32 %v1562_v55, %v3046_v48  ;;  %v1676_v46 = vadd.f32 %v1675_v42, %v3049_v63  ;;  %v1565_v59 = vadd.f32 %v1564_v0, %v3056_v32  ;;  %v1672_v60 = vadd.f32 %v3024_v44, %v3049_v63 }
 0x2d1   : > { %v1896_v12 = vmax.f32 %v1894_v58, %v1895_v3  ;;  %v1938_v13 = vmax.f32 %v1936_v23, %v1937_v4  ;;  %v1916_v14 = vrot.slane %v1915_v5, 2  ;;  %v1958_v15 = vrot.slane %v1957_v6, 2 }
 0x2d2   : > { %v1570_v45 = vpop.f32.mrf.mxu1  ;;  %v1683_v17 = vpop.f32.mrf.mxu0  ;;  %v1559_v23 = vadd.f32 %v3022_v41, %v3046_v48  ;;  %v1678_v62 = vadd.f32 %v1677_v38, %v3059_v35  ;;  %v1569_v3 = vadd.f32 %v1568_v8, %v3046_v48  ;;  %v1561_v55 = vadd.f32 %v3026_v51, %v3056_v32 }
 0x2d3   : > { %v1897_v18 = vrot.slane %v1896_v12, 1  ;;  %v1939_v19 = vrot.slane %v1938_v13, 1  ;;  %v1917_v49 = vmax.f32 %v1915_v5, %v1916_v14  ;;  %v1959_v21 = vmax.f32 %v1957_v6, %v1958_v15 }
 0x2d4   : > { %v1572_v22 = vpop.f32.mrf.mxu1  ;;  %v1685_v24 = vpop.f32.mrf.mxu0  ;;  %v1674_v5 = vadd.f32 %v3028_v52, %v3059_v35  ;;  %v1682_v41 = vadd.f32 %v1681_v10, %v3049_v63  ;;  %v1762_v42 = vmax.f32 %v1563_v54, 0.0  ;;  %v1571_v0 = vadd.f32 %v1570_v45, %v3056_v32 }
 0x2d5   : > { %v1918_v25 = vrot.slane %v1917_v49, 1  ;;  %v1960_v26 = vrot.slane %v1959_v21, 1  ;;  %v1898_v61 = vmax.f32 %v1896_v12, %v1897_v18  ;;  %v1940_v2 = vmax.f32 %v1938_v13, %v1939_v19 }
 0x2d6   : > { %v1574_v47 = vpop.f32.mrf.mxu1  ;;  %v3034_v56 = vpop.f32.mrf.mxu0  ;;  %v1684_v6 = vadd.f32 %v1683_v17, %v3059_v35  ;;  %v1754_v38 = vmax.f32 %v1559_v23, 0.0  ;;  %v1764_v13 = vmax.f32 %v1676_v46, 0.0  ;;  %v1763_v8 = vmax.f32 %v1565_v59, 0.0 }
 0x2d7   : > { %v1919_v7 = vmax.f32 %v1917_v49, %v1918_v25  ;;  %v1961_v16 = vmax.f32 %v1959_v21, %v1960_v26  ;;  %v1756_v14 = vmax.f32 %v1672_v60, 0.0  ;;  %v1765_v15 = vmax.f32 %v1678_v62, 0.0 }
 0x2d8   : > { %v1578_v9 = vpop.f32.mrf.mxu1  ;;  %v1691_v27 = vpop.f32.mrf.mxu0  ;;  %v1770_v43 = vmax.f32 %v1569_v3, 0.0  ;;  %v1573_v51 = vadd.f32 %v1572_v22, %v3046_v48  ;;  %v1755_v52 = vmax.f32 %v1561_v55, 0.0  ;;  %v1757_v10 = vmax.f32 %v1674_v5, 0.0 }
 0x2d9   : > { %v2058_v28 = vcombine.low %v1898_v61, %v1919_v7  ;;  %v2059_v29 = vcombine.low %v1940_v2, %v1961_v16  ;;  %v1772_v49 = vmax.f32 %v1682_v41, 0.0  ;;  %v1686_v45 = vadd.f32 %v1685_v24, %v3049_v63 }
 0x2da   : > { %v1580_v33 = vpop.f32.mrf.mxu1  ;;  %v1693_v34 = vpop.f32.mrf.mxu0  ;;  %v1962_v21 = vmax.f32 %v1754_v38, %v1762_v42  ;;  %v1771_v17 = vmax.f32 %v1571_v0, 0.0  ;;  %v1773_v25 = vmax.f32 %v1684_v6, 0.0  ;;  %v1575_v26 = vadd.f32 %v1574_v47, %v3056_v32 }
 0x2db   : > { %v3040_v36 = vrot.slane %v2058_v28, %v3031_v57  ;;  %v3043_v37 = vrot.slane %v2059_v29, %v3031_v57  ;;  %v2004_v2 = vmax.f32 %v1756_v14, %v1764_v13  ;;  %v1983_v7 = vmax.f32 %v1755_v52, %v1763_v8 }
 0x2dc   : > { %v1582_v50 = vpop.f32.mrf.mxu1  ;;  %v3051_v1 = vpop.f32.mrf.mxu0  ;;  %v1688_v22 = vadd.f32 %v3034_v56, %v3059_v35  ;;  %v1579_v16 = vadd.f32 %v1578_v9, %v3046_v48  ;;  %v2025_v20 = vmax.f32 %v1757_v10, %v1765_v15  ;;  %v1963_v28 = vmax.f32 %v1962_v21, %v1770_v43 }
 0x2dd   : > { %v2090_v39 = vcombine.low %v3040_v36, %v3043_v37  ;;  %v1778_v29 = vmax.f32 %v1573_v51, 0.0  ;;  %v1692_v24 = vadd.f32 %v1691_v27, %v3049_v63  ;;  %v2005_v54 = vmax.f32 %v2004_v2, %v1772_v49 }
 0x2de   : > { %v1584_v11 = vpop.f32.mrf.mxu1  ;;  %v1697_v58 = vpop.f32.mrf.mxu0  ;;  %v1780_v47 = vmax.f32 %v1686_v45, 0.0  ;;  %v1581_v23 = vadd.f32 %v1580_v33, %v3056_v32  ;;  %v1694_v46 = vadd.f32 %v1693_v34, %v3059_v35  ;;  %v1984_v59 = vmax.f32 %v1983_v7, %v1771_v17 }
 0x2df   : > { %v2026_v60 = vmax.f32 %v2025_v20, %v1773_v25  ;;  %v1779_v62 = vmax.f32 %v1575_v26, 0.0  ;;  %v1583_v56 = vadd.f32 %v1582_v50, %v3046_v48  ;;  %v1781_v55 = vmax.f32 %v1688_v22, 0.0 }
 0x2e0   : > { %v1588_v53 = vpop.f32.mrf.mxu1  ;;  %v1701_v4 = vpop.f32.mrf.mxu0  ;;  %v1786_v5 = vmax.f32 %v1579_v16, 0.0  ;;  %v1696_v27 = vadd.f32 %v3051_v1, %v3049_v63  ;;  %v1585_v41 = vadd.f32 %v1584_v11, %v3056_v32  ;;  %v1964_v42 = vmax.f32 %v1963_v28, %v1778_v29 }
 0x2e1   : > { %v1788_v0 = vmax.f32 %v1692_v24, 0.0  ;;  %v1698_v33 = vadd.f32 %v1697_v58, %v3059_v35  ;;  %v1589_v34 = vadd.f32 %v1588_v53, %v3046_v48  ;;  %v2006_v13 = vmax.f32 %v2005_v54, %v1780_v47 }
 0x2e2   : > { %v1590_v44 = vpop.f32.mrf.mxu1  ;;  %v1703_v12 = vpop.f32.mrf.mxu0  ;;  %v1787_v50 = vmax.f32 %v1581_v23, 0.0  ;;  %v1789_v8 = vmax.f32 %v1694_v46, 0.0  ;;  %v1702_v14 = vadd.f32 %v1701_v4, %v3049_v63  ;;  %v1985_v15 = vmax.f32 %v1984_v59, %v1779_v62 }
 0x2e3   : > { %v1794_v43 = vmax.f32 %v1583_v56, 0.0  ;;  %v1591_v51 = vadd.f32 %v1590_v44, %v3056_v32  ;;  %v1704_v1 = vadd.f32 %v1703_v12, %v3059_v35  ;;  %v2027_v10 = vmax.f32 %v2026_v60, %v1781_v55 }
 0x2e4   : > { %v1592_v18 = vpop.f32.mrf.mxu1  ;;  %v3078_v19 = vpop.f32.mrf.mxu0  ;;  %v1965_v49 = vmax.f32 %v1964_v42, %v1786_v5  ;;  %v1796_v58 = vmax.f32 %v1696_v27, 0.0  ;;  %v1795_v45 = vmax.f32 %v1585_v41, 0.0  ;;  %v2007_v53 = vmax.f32 %v2006_v13, %v1788_v0 }
 0x2e5   : > { %v1797_v21 = vmax.f32 %v1698_v33, 0.0  ;;  %v1802_v17 = vmax.f32 %v1589_v34, 0.0  ;;  %v1593_v25 = vadd.f32 %v1592_v18, %v3046_v48  ;;  %v1986_v4 = vmax.f32 %v1985_v15, %v1787_v50 }
 0x2e6   : > { %v1594_v40 = vpop.f32.mrf.mxu1  ;;  %v3082_v61 = vpop.f32.mrf.mxu0  ;;  %v2028_v7 = vmax.f32 %v2027_v10, %v1789_v8  ;;  %v1804_v22 = vmax.f32 %v1702_v14, 0.0  ;;  %v1706_v44 = vadd.f32 %v3078_v19, %v3049_v63  ;;  %v1966_v12 = vmax.f32 %v1965_v49, %v1794_v43 }
 0x2e7   : > { %v1803_v16 = vmax.f32 %v1591_v51, 0.0  ;;  %v1805_v20 = vmax.f32 %v1704_v1, 0.0  ;;  %v1595_v28 = vadd.f32 %v1594_v40, %v3056_v32  ;;  %v2008_v54 = vmax.f32 %v2007_v53, %v1796_v58 }
 0x2e8   : > { %v1598_v30 = vpop.f32.mrf.mxu1  ;;  %v3088_v31 = vpop.f32.mrf.mxu0  ;;  %v1987_v47 = vmax.f32 %v1986_v4, %v1795_v45  ;;  %v1708_v18 = vadd.f32 %v3082_v61, %v3059_v35  ;;  %v2029_v46 = vmax.f32 %v2028_v7, %v1797_v21  ;;  %v1967_v59 = vmax.f32 %v1966_v12, %v1802_v17 }
 0x2e9   : > { %v1599_v23 = vadd.f32 %v1598_v30, %v3046_v48  ;;  %v1810_v60 = vmax.f32 %v1593_v25, 0.0  ;;  %v2009_v55 = vmax.f32 %v2008_v54, %v1804_v22  ;;  %v1812_v40 = vmax.f32 %v1706_v44, 0.0 }
 0x2ea   : > { %v1600_v9 = vpop.f32.mrf.mxu1  ;;  %v3093_v3 = vpop.f32.mrf.mxu0  ;;  %v1712_v5 = vadd.f32 %v3088_v31, %v3049_v63  ;;  %v1988_v41 = vmax.f32 %v1987_v47, %v1803_v16  ;;  %v2030_v42 = vmax.f32 %v2029_v46, %v1805_v20  ;;  %v1811_v61 = vmax.f32 %v1595_v28, 0.0 }
 0x2eb   : > { %v1601_v19 = vadd.f32 %v1600_v9, %v3056_v32  ;;  %v1813_v34 = vmax.f32 %v1708_v18, 0.0  ;;  %v1818_v13 = vmax.f32 %v1599_v23, 0.0  ;;  %v1714_v9 = vadd.f32 %v3093_v3, %v3059_v35 }
 0x2ec   : > { %v1602_v6 = vpop.f32.mrf.mxu1  ;;  %v1715_v38 = vpop.f32.mrf.mxu0  ;;  %v1968_v8 = vmax.f32 %v1967_v59, %v1810_v60  ;;  %v2010_v51 = vmax.f32 %v2009_v55, %v1812_v40  ;;  %v1820_v1 = vmax.f32 %v1712_v5, 0.0  ;;  %v1989_v49 = vmax.f32 %v1988_v41, %v1811_v61 }
 0x2ed   : > { %v1603_v27 = vadd.f32 %v1602_v6, %v3046_v48  ;;  %v1819_v14 = vmax.f32 %v1601_v19, 0.0  ;;  %v1716_v31 = vadd.f32 %v1715_v38, %v3049_v63  ;;  %v1821_v17 = vmax.f32 %v1714_v9, 0.0 }
 0x2ee   : > { %v1604_v11 = vpop.f32.mrf.mxu1  ;;  %v1717_v52 = vpop.f32.mrf.mxu0  ;;  %v1969_v21 = vmax.f32 %v1968_v8, %v1818_v13  ;;  %v2031_v4 = vmax.f32 %v2030_v42, %v1813_v34  ;;  %v2011_v16 = vmax.f32 %v2010_v51, %v1820_v1 }
 0x2ef   : > { %v1605_v30 = vadd.f32 %v1604_v11, %v3056_v32  ;;  %v1826_v11 = vmax.f32 %v1603_v27, 0.0  ;;  %v1718_v45 = vadd.f32 %v1717_v52, %v3059_v35  ;;  %v1990_v7 = vmax.f32 %v1989_v49, %v1819_v14 }
 0x2f0   : > { %v1608_v26 = vpop.f32.mrf.mxu1  ;;  %v3104_v2 = vpop.f32.mrf.mxu0  ;;  %v1828_v22 = vmax.f32 %v1716_v31, 0.0  ;;  %v2032_v46 = vmax.f32 %v2031_v4, %v1821_v17 }
 0x2f1   : > { %v1609_v50 = vadd.f32 %v1608_v26, %v3046_v48  ;;  %v1827_v58 = vmax.f32 %v1605_v30, 0.0  ;;  %v1970_v20 = vmax.f32 %v1969_v21, %v1826_v11  ;;  %v1829_v54 = vmax.f32 %v1718_v45, 0.0 }
 0x2f2   : > { %v1610_v29 = vpop.f32.mrf.mxu1  ;;  %v3109_v24 = vpop.f32.mrf.mxu0  ;;  %v2012_v55 = vmax.f32 %v2011_v16, %v1828_v22  ;;  %v1722_v40 = vadd.f32 %v3104_v2, %v3049_v63 }
 0x2f3   : > { %v1611_v6 = vadd.f32 %v1610_v29, %v3056_v32  ;;  %v1834_v25 = vmax.f32 %v1609_v50, 0.0  ;;  %v1991_v52 = vmax.f32 %v1990_v7, %v1827_v58  ;;  %v1724_v27 = vadd.f32 %v3109_v24, %v3059_v35 }
 0x2f4   : > { %v1612_v62 = vpop.f32.mrf.mxu1  ;;  %v3115_v56 = vpop.f32.mrf.mxu0  ;;  %v2033_v34 = vmax.f32 %v2032_v46, %v1829_v54 }
 0x2f5   : > { %v1613_v10 = vadd.f32 %v1612_v62, %v3046_v48  ;;  %v1835_v44 = vmax.f32 %v1611_v6, 0.0  ;;  %v1971_v59 = vmax.f32 %v1970_v20, %v1834_v25  ;;  %v1726_v13 = vadd.f32 %v3115_v56, %v3049_v63 }
 0x2f6   : > { %v1614_v0 = vpop.f32.mrf.mxu1  ;;  %v1727_v33 = vpop.f32.mrf.mxu0  ;;  %v1837_v51 = vmax.f32 %v1724_v27, 0.0 }
 0x2f7   : > { %v1615_v3 = vadd.f32 %v1614_v0, %v3056_v32  ;;  %v1842_v28 = vmax.f32 %v1613_v10, 0.0  ;;  %v1992_v5 = vmax.f32 %v1991_v52, %v1835_v44  ;;  %v1728_v50 = vadd.f32 %v1727_v33, %v3059_v35 }
 0x2f8   : > { %v1618_v15 = vpop.f32.mrf.mxu1  ;;  %v1731_v43 = vpop.f32.mrf.mxu0  ;;  %v1844_v33 = vmax.f32 %v1726_v13, 0.0 }
 0x2f9   : > { %v1619_v38 = vadd.f32 %v1618_v15, %v3046_v48  ;;  %v1843_v47 = vmax.f32 %v1615_v3, 0.0  ;;  %v1972_v42 = vmax.f32 %v1971_v59, %v1842_v28  ;;  %v1836_v15 = vmax.f32 %v1722_v40, 0.0 }
 0x2fa   : > { %v1620_v53 = vpop.f32.mrf.mxu1  ;;  %v1733_v26 = vpop.f32.mrf.mxu0  ;;  %v1732_v1 = vadd.f32 %v1731_v43, %v3049_v63  ;;  %v1845_v3 = vmax.f32 %v1728_v50, 0.0 }
 0x2fb   : > { %v1621_v29 = vadd.f32 %v1620_v53, %v3056_v32  ;;  %v1850_v60 = vmax.f32 %v1619_v38, 0.0  ;;  %v1993_v9 = vmax.f32 %v1992_v5, %v1843_v47  ;;  %v1734_v11 = vadd.f32 %v1733_v26, %v3059_v35 }
 0x2fc   : > { %v1622_v12 = vpop.f32.mrf.mxu1  ;;  %v1735_v19 = vpop.f32.mrf.mxu0  ;;  %v2013_v7 = vmax.f32 %v2012_v55, %v1836_v15  ;;  %v2034_v26 = vmax.f32 %v2033_v34, %v1837_v51  ;;  %v1852_v22 = vmax.f32 %v1732_v1, 0.0 }
 0x2fd   : > { %v1623_v18 = vadd.f32 %v1622_v12, %v3046_v48  ;;  %v1851_v61 = vmax.f32 %v1621_v29, 0.0  ;;  %v1973_v14 = vmax.f32 %v1972_v42, %v1850_v60  ;;  %v1736_v53 = vadd.f32 %v1735_v19, %v3049_v63 }
 0x2fe   : > { %v1624_v23 = vpop.f32.mrf.mxu1  ;;  %v1737_v31 = vpop.f32.mrf.mxu0  ;;  %v1853_v44 = vmax.f32 %v1734_v11, 0.0  ;;  %v2014_v29 = vmax.f32 %v2013_v7, %v1844_v33  ;;  %v2035_v52 = vmax.f32 %v2034_v26, %v1845_v3  ;;  %v2098_v26 = vrot.slane %v2090_v39, %v3031_v57 }
 0x2ff   : > { %v1625_v62 = vadd.f32 %v1624_v23, %v3056_v32  ;;  %v1858_v30 = vmax.f32 %v1623_v18, 0.0  ;;  %v1994_v49 = vmax.f32 %v1993_v9, %v1851_v61  ;;  %v1738_v21 = vadd.f32 %v1737_v31, %v3059_v35 }
 0x300   : > { %v1628_v41 = vpop.f32.mrf.mxu1  ;;  %v1860_v54 = vmax.f32 %v1736_v53, 0.0 }
 0x301   : > { %v1629_v0 = vadd.f32 %v1628_v41, %v3046_v48  ;;  %v1859_v2 = vmax.f32 %v1625_v62, 0.0  ;;  %v1974_v58 = vmax.f32 %v1973_v14, %v1858_v30  ;;  %v1861_v18 = vmax.f32 %v1738_v21, 0.0 }
 0x302   : > { %v1630_v8 = vpop.f32.mrf.mxu1  ;;  %v2036_v62 = vmax.f32 %v2035_v52, %v1853_v44 }
 0x303   : > { %v1866_v6 = vmax.f32 %v1629_v0, 0.0  ;;  %v1631_v24 = vadd.f32 %v1630_v8, %v3056_v32  ;;  %v1995_v25 = vmax.f32 %v1994_v49, %v1859_v2 }
 0x304   : > { %v1632_v10 = vpop.f32.mrf.mxu1  ;;  %v2037_v61 = vmax.f32 %v2036_v62, %v1861_v18 }
 0x305   : > { %v1867_v56 = vmax.f32 %v1631_v24, 0.0  ;;  %v1633_v45 = vadd.f32 %v1632_v10, %v3046_v48  ;;  %v1975_v38 = vmax.f32 %v1974_v58, %v1866_v6 }
 0x306   : > { %v1634_v17 = vpop.f32.mrf.mxu1 }
 0x307   : > { %v1874_v4 = vmax.f32 %v1633_v45, 0.0  ;;  %v1635_v43 = vadd.f32 %v1634_v17, %v3056_v32  ;;  %v1996_v16 = vmax.f32 %v1995_v25, %v1867_v56  ;;  %v2015_v32 = vmax.f32 %v2014_v29, %v1852_v22 }
 0x308   : > { %v1741_v12 = vpop.f32.mrf.mxu1 }
 0x309   : > { %v1976_v20 = vmax.f32 %v1975_v38, %v1874_v4  ;;  %v1875_v48 = vmax.f32 %v1635_v43, 0.0  ;;  %v1742_v28 = vadd.f32 %v1741_v12, %v3049_v63  ;;  %v2016_v27 = vmax.f32 %v2015_v32, %v1860_v54 }
 0x30a   : > { %v1743_v47 = vpop.f32.mrf.mxu1 }
 0x30b   : > { %v1977_v23 = vrot.slane %v1976_v20, 4  ;;  %v1997_v46 = vmax.f32 %v1996_v16, %v1875_v48  ;;  %v1744_v59 = vadd.f32 %v1743_v47, %v3059_v35  ;;  %v1868_v60 = vmax.f32 %v1742_v28, 0.0 }
 0x30c   : > { %v1745_v19 = vpop.f32.mrf.mxu1 }
 0x30d   : > { %v1978_v55 = vmax.f32 %v1976_v20, %v1977_v23  ;;  %v1998_v40 = vrot.slane %v1997_v46, 4  ;;  %v1869_v5 = vmax.f32 %v1744_v59, 0.0  ;;  %v1746_v41 = vadd.f32 %v1745_v19, %v3049_v63 }
 0x30e   : > { %v1747_v42 = vpop.f32.mrf.mxu1  ;;  %v2017_v34 = vmax.f32 %v2016_v27, %v1868_v60 }
 0x30f   : > { %v1999_v30 = vmax.f32 %v1997_v46, %v1998_v40  ;;  %v1748_v0 = vadd.f32 %v1747_v42, %v3059_v35  ;;  %v1876_v13 = vmax.f32 %v1746_v41, 0.0  ;;  %v1979_v9 = vrot.slane %v1978_v55, 2 }
 0x310   : > { %v2038_v8 = vmax.f32 %v2037_v61, %v1869_v5 }
 0x311   : > { %v2000_v50 = vrot.slane %v1999_v30, 2  ;;  %v1877_v14 = vmax.f32 %v1748_v0, 0.0  ;;  %v2018_v2 = vmax.f32 %v2017_v34, %v1876_v13  ;;  %v1980_v15 = vmax.f32 %v1978_v55, %v1979_v9 }
 0x313   : > { %v2001_v31 = vmax.f32 %v1999_v30, %v2000_v50  ;;  %v2039_v6 = vmax.f32 %v2038_v8, %v1877_v14  ;;  %v2019_v24 = vrot.slane %v2018_v2, 4  ;;  %v1981_v49 = vrot.slane %v1980_v15, 1 }
 0x315   : > { %v2040_v51 = vrot.slane %v2039_v6, 4  ;;  %v2020_v1 = vmax.f32 %v2018_v2, %v2019_v24  ;;  %v2002_v11 = vrot.slane %v2001_v31, 1  ;;  %v1982_v3 = vmax.f32 %v1980_v15, %v1981_v49 }
 0x317   : > { %v2041_v63 = vmax.f32 %v2039_v6, %v2040_v51  ;;  %v2021_v10 = vrot.slane %v2020_v1, 2  ;;  %v2003_v56 = vmax.f32 %v2001_v31, %v2002_v11 }
 0x319   : > { %v2042_v58 = vrot.slane %v2041_v63, 2  ;;  %v2022_v35 = vmax.f32 %v2020_v1, %v2021_v10  ;;  %v2060_v21 = vcombine.low %v1982_v3, %v2003_v56 }
 0x31b   : > { %v2043_v45 = vmax.f32 %v2041_v63, %v2042_v58  ;;  %v2023_v33 = vrot.slane %v2022_v35, 1  ;;  %v2082_v4 = vrot.slane %v2060_v21, %v3031_v57 }
 0x31d   : > { %v2044_v53 = vrot.slane %v2043_v45, 1  ;;  %v2024_v17 = vmax.f32 %v2022_v35, %v2023_v33 }
 0x31f   : > { %v2045_v25 = vmax.f32 %v2043_v45, %v2044_v53 }
 0x321   : > { %v2061_v38 = vcombine.low %v2024_v17, %v2045_v25 }
 0x323   : > { %v2089_v43 = vrot.slane %v2061_v38, %v3031_v57 }
 0x325   : > { %v2091_v7 = vcombine.low %v2082_v4, %v2089_v43 }
 0x327   : > { %v2105_v22 = vrot.slane %v2091_v7, %v3031_v57 }
 0x329   : > { %v2106_v44 = vcombine.low %v2098_v26, %v2105_v22 }
 0x32b   : > { %2108 = vst [vmem:[%s319_s23] sm:$0xff] %v2106_v44 }
 0x32c PF: > { %s18_s26 = sadd.s32 1, %s2522_s26   ;;  %s3182_s24 = smov %s2518_s25 }
 0x32d   : > { %p15_p2 = scmp.ge.s32.totalorder %s18_s26, 4   ;;  %s3183_s25 = smov %s3185_s28 }
 0x32f   :  { %17 = sbr.rel (!%p15_p2) target bundleno = 2 (0x2), region = 91 }
 0x334   :  { %2193 = vsyncpa [#allocation3], 1 }
 0x335   :  { %2195 = vsyncpa [#allocation3 + $0x1], 1 }

// kernel: pploc3d_forward.5
= control target key start
LH: loop header
LB: loop body
LE: loop exit
PB: predicated region body
PF: predicated region fallthrough
CT: control target
= control target key end

     0   :  { %12 = vsyncpa [#allocation3], 0  ;;  %s3644_s24 = smov [#allocation2]   ;;  %s4066_s0 = inlined_call_operand.vmem [shape: f32[2,1,1024], index: 0, kind: input, shape index: {}]   ;;  %s4067_s1 = inlined_call_operand.hbm [shape: bf16[1024,512], index: 1, kind: input, shape index: {}]   ;;  %s4068_s2 = inlined_call_operand.vmem [shape: f32[1,512], index: 2, kind: input, shape index: {}]   ;;  %s4069_s3 = inlined_call_operand.vmem [shape: bf16[512,256], index: 3, kind: input, shape index: {}]   ;;  %s4070_s4 = inlined_call_operand.vmem [shape: f32[1,256], index: 4, kind: input, shape index: {}]   ;;  %s4071_s5 = inlined_call_operand.vmem [shape: bf16[256,9], index: 5, kind: input, shape index: {}]   ;;  %s4072_s6 = inlined_call_operand.vmem [shape: f32[1,9], index: 6, kind: input, shape index: {}]   ;;  %s4073_s7 = inlined_call_operand.vmem [shape: f32[2,9], index: 7, kind: output, shape index: {}]  }
   0x1   :  { %s20_s25 = sshll.u32 %s3644_s24, 4  ;;  %s21_s25 = int_to_ptr.vmem [resolvable:$true] %s20_s25 }
   0x2   :  { %s3630_s26 = scalar_lea.vmem %s21_s25, 32768  ;;  %p3635_p1 = scmp.lt.s32.totalorder %s21_s25, %s21_s25 }
   0x3   :  { %p3631_p0 = scmp.ne.s32.totalorder %s21_s25, %s3630_s26  ;;  %p3636_p2 = scmp.lt.s32.totalorder %s3630_s26, %s3630_s26 }
   0x5   :  { %p3637_p3 = por %p3636_p2, %p3635_p1 }
   0x7   :  { %p3638_p4 = pnand %p3637_p3, %p3631_p0 }
   0x9   :  { %3641 = shalt.err (!%p3638_p4)
}
   0xa   :  { %s3645_s27 = smov 256   ;;  %s3646_s28 = smov 16  }
   0xb   :  { %26 = dma.hbm_to_vmem [thread:$0]  %s4067_s1, 32768, %s21_s25, [#allocation3], %s3645_s27, %s3645_s27, %s3646_s28  }
   0xc   :  { %3642 = dma.done.wait [#allocation3], 32768  }
   0xd   :  { %3643 = vsyncadd [#allocation3], 4294934528  ;;  %v3126_v0 = vld [vmem:[#allocation2 + $0xe4] ss:$16 sps:$4 sm:$0xff]   ;;  %v3130_v2 = vld [vmem:[#allocation2 + $0xe0] ss:$16 sps:$4 sm:$0xff]   ;;  %v45_v36 = vlaneseq }
   0xe   :  { %v3128_v1 = vld [vmem:[#allocation2 + $0x2e4] ss:$16 sps:$4 sm:$0xff]   ;;  %1764 = vmatprep.subr.bf16.mxu0 %v3126_v0  ;;  %v3131_v3 = vld [vmem:[#allocation2 + $0x2e0] ss:$16 sps:$4 sm:$0xff]   ;;  %v3712_v53 = vld [vmem:[%s4066_s0 + $0x8] sm:$0xff]  ;;  %vm452_vm0 = vcmask 1041409  }
   0xf   :  { %1805 = vmatprep.subr.bf16.mxu1 %v3128_v1  ;;  %v3132_v4 = vld [vmem:[#allocation2 + $0xc4] ss:$16 sps:$4 sm:$0xff]   ;;  %1765 = vmatpush1.bf16.msra.mxu0 %v3130_v2  ;;  %v3136_v6 = vld [vmem:[#allocation2 + $0xc0] ss:$16 sps:$4 sm:$0xff]   ;;  %v3690_v40 = vshrl.u32 %v45_v36, 7  ;;  %vm2757_vm1 = vcmask 66560  }
  0x10   :  { %1806 = vmatpush1.bf16.msra.mxu1 %v3131_v3  ;;  %v3134_v5 = vld [vmem:[#allocation2 + $0x2c4] ss:$16 sps:$4 sm:$0xff]   ;;  %1766 = vmatprep.subr.bf16.mxu0 %v3132_v4  ;;  %v3137_v7 = vld [vmem:[#allocation2 + $0x2c0] ss:$16 sps:$4 sm:$0xff]  }
  0x11   :  { %1807 = vmatprep.subr.bf16.mxu1 %v3134_v5  ;;  %v3138_v8 = vld [vmem:[#allocation2 + $0xa4] ss:$16 sps:$4 sm:$0xff]   ;;  %v3142_v10 = vld [vmem:[#allocation2 + $0xa0] ss:$16 sps:$4 sm:$0xff]   ;;  %v3693_v46 = vsub.s32 1, %v3690_v40  ;;  %v3696_v48 = vsub.s32 3, %v3690_v40 }
  0x12   :  { %v3140_v9 = vld [vmem:[#allocation2 + $0x2a4] ss:$16 sps:$4 sm:$0xff]   ;;  %v3143_v11 = vld [vmem:[#allocation2 + $0x2a0] ss:$16 sps:$4 sm:$0xff]   ;;  %v3699_v49 = vsub.s32 0, %v3690_v40  ;;  %v3707_v52 = vsub.s32 2, %v3690_v40 }
  0x13   :  { %1767 = vmatpush1.bf16.msra.mxu0 %v3136_v6  ;;  %v3144_v12 = vld [vmem:[#allocation2 + $0x84] ss:$16 sps:$4 sm:$0xff]   ;;  %v3148_v14 = vld [vmem:[#allocation2 + $0x80] ss:$16 sps:$4 sm:$0xff]   ;;  %v84_v58 = vrot.slane %v3712_v53, %v3693_v46  ;;  %v92_v59 = vrot.slane %v3712_v53, %v3696_v48  ;;  %v67_v2 = vsub.s32 5, %v3690_v40 }
  0x14   :  { %1808 = vmatpush1.bf16.msra.mxu1 %v3137_v7  ;;  %1768 = vmatprep.subr.bf16.mxu0 %v3138_v8  ;;  %v3146_v13 = vld [vmem:[#allocation2 + $0x284] ss:$16 sps:$4 sm:$0xff]   ;;  %v3149_v15 = vld [vmem:[#allocation2 + $0x280] ss:$16 sps:$4 sm:$0xff]   ;;  %v80_v60 = vrot.slane %v3712_v53, %v3699_v49  ;;  %v88_v6 = vrot.slane %v3712_v53, %v3707_v52 }
  0x15   :  { %1809 = vmatprep.subr.bf16.mxu1 %v3140_v9  ;;  %v3150_v16 = vld [vmem:[#allocation2 + $0x64] ss:$16 sps:$4 sm:$0xff]   ;;  %v3154_v18 = vld [vmem:[#allocation2 + $0x60] ss:$16 sps:$4 sm:$0xff]   ;;  %v134_v3 = vpack.c.bf16 %v84_v58, %v84_v58  ;;  %v136_v4 = vpack.c.bf16 %v92_v59, %v92_v59  ;;  %v75_v9 = vsub.s32 7, %v3690_v40 }
  0x16   :  { %v3152_v17 = vld [vmem:[#allocation2 + $0x264] ss:$16 sps:$4 sm:$0xff]   ;;  %v3155_v19 = vld [vmem:[#allocation2 + $0x260] ss:$16 sps:$4 sm:$0xff]   ;;  %v133_v5 = vpack.c.bf16 %v80_v60, %v80_v60 }
  0x17   :  { %1769 = vmatpush1.bf16.msra.mxu0 %v3142_v10  ;;  %v3156_v20 = vld [vmem:[#allocation2 + $0x44] ss:$16 sps:$4 sm:$0xff]   ;;  %v3160_v22 = vld [vmem:[#allocation2 + $0x40] ss:$16 sps:$4 sm:$0xff]  }
  0x18   :  { %1810 = vmatpush1.bf16.msra.mxu1 %v3143_v11  ;;  %1770 = vmatprep.subr.bf16.mxu0 %v3144_v12  ;;  %v3158_v21 = vld [vmem:[#allocation2 + $0x244] ss:$16 sps:$4 sm:$0xff]   ;;  %v3161_v23 = vld [vmem:[#allocation2 + $0x240] ss:$16 sps:$4 sm:$0xff]   ;;  %v444_v12 = vunpack.c.l.b16 %v134_v3 }
  0x19   :  { %1811 = vmatprep.subr.bf16.mxu1 %v3146_v13  ;;  %v3162_v24 = vld [vmem:[#allocation2 + $0x24] ss:$16 sps:$4 sm:$0xff]   ;;  %v3166_v26 = vld [vmem:[#allocation2 + $0x20] ss:$16 sps:$4 sm:$0xff]  }
  0x1a   :  { %v3164_v25 = vld [vmem:[#allocation2 + $0x224] ss:$16 sps:$4 sm:$0xff]   ;;  %v3167_v27 = vld [vmem:[#allocation2 + $0x220] ss:$16 sps:$4 sm:$0xff]  }
  0x1b   :  { %1771 = vmatpush1.bf16.msra.mxu0 %v3148_v14  ;;  %v3168_v28 = vld [vmem:[#allocation2 + $0x4] ss:$16 sps:$4 sm:$0xff]   ;;  %v3172_v30 = vld [vmem:[#allocation2] ss:$16 sps:$4 sm:$0xff]   ;;  %v446_v14 = vunpack.c.l.b16 %v136_v4 }
  0x1c   :  { %1812 = vmatpush1.bf16.msra.mxu1 %v3149_v15  ;;  %1772 = vmatprep.subr.bf16.mxu0 %v3150_v16  ;;  %v3170_v29 = vld [vmem:[#allocation2 + $0x204] ss:$16 sps:$4 sm:$0xff]   ;;  %v3173_v31 = vld [vmem:[#allocation2 + $0x200] ss:$16 sps:$4 sm:$0xff]   ;;  %v135_v15 = vpack.c.bf16 %v88_v6, %v88_v6 }
  0x1d   :  { %1813 = vmatprep.subr.bf16.mxu1 %v3152_v17  ;;  %v3174_v32 = vld [vmem:[#allocation2 + $0x1e4] ss:$16 sps:$4 sm:$0xff]   ;;  %v3178_v34 = vld [vmem:[#allocation2 + $0x1e0] ss:$16 sps:$4 sm:$0xff]  }
  0x1e   :  { %v3176_v33 = vld [vmem:[#allocation2 + $0x3e4] ss:$16 sps:$4 sm:$0xff]   ;;  %v3179_v35 = vld [vmem:[#allocation2 + $0x3e0] ss:$16 sps:$4 sm:$0xff]  }
  0x1f   :  { %1773 = vmatpush1.bf16.msra.mxu0 %v3154_v18  ;;  %v3180_v37 = vld [vmem:[#allocation2 + $0x1c4] ss:$16 sps:$4 sm:$0xff]   ;;  %v3184_v39 = vld [vmem:[#allocation2 + $0x1c0] ss:$16 sps:$4 sm:$0xff]  }
  0x20   :  { %1814 = vmatpush1.bf16.msra.mxu1 %v3155_v19  ;;  %1774 = vmatprep.subr.bf16.mxu0 %v3156_v20  ;;  %v3182_v38 = vld [vmem:[#allocation2 + $0x3c4] ss:$16 sps:$4 sm:$0xff]   ;;  %v3185_v41 = vld [vmem:[#allocation2 + $0x3c0] ss:$16 sps:$4 sm:$0xff]   ;;  %v443_v19 = vunpack.c.l.b16 %v133_v5  ;;  %v100_v20 = vrot.slane %v3712_v53, %v67_v2 }
  0x21   :  { %1815 = vmatprep.subr.bf16.mxu1 %v3158_v21  ;;  %v3186_v42 = vld [vmem:[#allocation2 + $0x1a4] ss:$16 sps:$4 sm:$0xff]   ;;  %v3190_v44 = vld [vmem:[#allocation2 + $0x1a0] ss:$16 sps:$4 sm:$0xff]   ;;  %v454_v21 = vrot.slane %v444_v12, 7 }
  0x22   :  { %v3188_v43 = vld [vmem:[#allocation2 + $0x3a4] ss:$16 sps:$4 sm:$0xff]   ;;  %v3191_v45 = vld [vmem:[#allocation2 + $0x3a0] ss:$16 sps:$4 sm:$0xff]  }
  0x23   :  { %1775 = vmatpush1.bf16.msra.mxu0 %v3160_v22  ;;  %v3192_v47 = vld [vmem:[#allocation2 + $0x184] ss:$16 sps:$4 sm:$0xff]   ;;  %v3196_v56 = vld [vmem:[#allocation2 + $0x180] ss:$16 sps:$4 sm:$0xff]   ;;  %v458_v22 = vrot.slane %v446_v14, 7 }
  0x24   :  { %1816 = vmatpush1.bf16.msra.mxu1 %v3161_v23  ;;  %1776 = vmatprep.subr.bf16.mxu0 %v3162_v24  ;;  %v3194_v50 = vld [vmem:[#allocation2 + $0x384] ss:$16 sps:$4 sm:$0xff]   ;;  %v3197_v57 = vld [vmem:[#allocation2 + $0x380] ss:$16 sps:$4 sm:$0xff]  }
  0x25   :  { %1817 = vmatprep.subr.bf16.mxu1 %v3164_v25  ;;  %v3704_v51 = vld [vmem:[%s4066_s0] sm:$0xff] }
  0x26   :  { %v52_v54 = vrot.slane %v3704_v51, %v3693_v46  ;;  %v60_v55 = vrot.slane %v3704_v51, %v3696_v48  ;;  %v3198_v61 = vld [vmem:[#allocation2 + $0x164] ss:$16 sps:$4 sm:$0xff]   ;;  %v48_v1 = vrot.slane %v3704_v51, %v3699_v49  ;;  %v56_v8 = vrot.slane %v3704_v51, %v3707_v52  ;;  %v3202_v10 = vld [vmem:[#allocation2 + $0x160] ss:$16 sps:$4 sm:$0xff]  }
  0x27   :  { %1777 = vmatpush1.bf16.msra.mxu0 %v3166_v26  ;;  %v3200_v62 = vld [vmem:[#allocation2 + $0x364] ss:$16 sps:$4 sm:$0xff]   ;;  %v3203_v11 = vld [vmem:[#allocation2 + $0x360] ss:$16 sps:$4 sm:$0xff]   ;;  %v68_v23 = vrot.slane %v3704_v51, %v67_v2  ;;  %v76_v24 = vrot.slane %v3704_v51, %v75_v9  ;;  %v138_v26 = vpack.c.bf16 %v100_v20, %v100_v20 }
  0x28   :  { %1818 = vmatpush1.bf16.msra.mxu1 %v3167_v27  ;;  %1778 = vmatprep.subr.bf16.mxu0 %v3168_v28  ;;  %v126_v63 = vpack.c.bf16 %v52_v54, %v52_v54  ;;  %v128_v0 = vpack.c.bf16 %v60_v55, %v60_v55  ;;  %v3204_v16 = vld [vmem:[#allocation2 + $0x144] ss:$16 sps:$4 sm:$0xff]   ;;  %v125_v18 = vpack.c.bf16 %v48_v1, %v48_v1  ;;  %v63_v28 = vsub.s32 4, %v3690_v40  ;;  %v3214_v54 = vld [vmem:[#allocation2 + $0x120] ss:$16 sps:$4 sm:$0xff]  }
  0x29   :  { %1819 = vmatprep.subr.bf16.mxu1 %v3170_v29  ;;  %v3206_v17 = vld [vmem:[#allocation2 + $0x344] ss:$16 sps:$4 sm:$0xff]   ;;  %v127_v25 = vpack.c.bf16 %v56_v8, %v56_v8  ;;  %v108_v27 = vrot.slane %v3712_v53, %v75_v9  ;;  %v3208_v29 = vld [vmem:[#allocation2 + $0x140] ss:$16 sps:$4 sm:$0xff]  }
  0x2a   :  { %v436_v7 = vunpack.c.l.b16 %v126_v63  ;;  %v438_v13 = vunpack.c.l.b16 %v128_v0  ;;  %v3212_v36 = vld [vmem:[#allocation2 + $0x324] ss:$16 sps:$4 sm:$0xff]   ;;  %v3215_v55 = vld [vmem:[#allocation2 + $0x320] ss:$16 sps:$4 sm:$0xff]  }
  0x2b   :  { %1779 = vmatpush1.bf16.msra.mxu0 %v3172_v30  ;;  %v3209_v30 = vld [vmem:[#allocation2 + $0x340] ss:$16 sps:$4 sm:$0xff]   ;;  %v3216_v60 = vld [vmem:[#allocation2 + $0x104] ss:$16 sps:$4 sm:$0xff]  }
  0x2c   :  { %1820 = vmatpush1.bf16.msra.mxu1 %v3173_v31  ;;  %1780 = vmatprep.subr.bf16.mxu0 %v3174_v32  ;;  %v455_v31 = vsel %vm452_vm0, %v454_v21, %v436_v7  ;;  %v459_v32 = vsel %vm452_vm0, %v458_v22, %v438_v13  ;;  %v3224_v12 = vld [vmem:[#allocation2 + $0x4e4] ss:$16 sps:$4 sm:$0xff]   ;;  %v3222_v21 = vld [vmem:[#allocation2 + $0x4e0] ss:$16 sps:$4 sm:$0xff]  }
  0x2d   :  { %1821 = vmatprep.subr.bf16.mxu1 %v3176_v33  ;;  %v445_v33 = vunpack.c.l.b16 %v135_v15  ;;  %v3227_v13 = vld [vmem:[#allocation2 + $0x6e4] ss:$16 sps:$4 sm:$0xff]   ;;  %v3225_v22 = vld [vmem:[#allocation2 + $0x6e0] ss:$16 sps:$4 sm:$0xff]  }
  0x2f   :  { %1781 = vmatpush2.bf16.msra.mxu0 %v3178_v34  ;;  %v71_v34 = vsub.s32 6, %v3690_v40  ;;  %v64_v40 = vrot.slane %v3704_v51, %v63_v28 }
  0x30   :  { %1822 = vmatpush2.bf16.msra.mxu1 %v3179_v35  ;;  %1782 = vmatprep.subr.bf16.mxu0 %v3180_v37  ;;  %v3210_v35 = vld [vmem:[#allocation2 + $0x124] ss:$16 sps:$4 sm:$0xff]   ;;  %v3740_v37 = vpack.c.b16 %v455_v31, %v455_v31 }
  0x31   :  { %1823 = vmatprep.subr.bf16.mxu1 %v3182_v38  ;;  %v3742_v38 = vpack.c.b16 %v459_v32, %v459_v32  ;;  %v72_v58 = vrot.slane %v3704_v51, %v71_v34  ;;  %v104_v59 = vrot.slane %v3712_v53, %v71_v34  ;;  %v129_v63 = vpack.c.bf16 %v64_v40, %v64_v40  ;;  %v3220_v51 = vld [vmem:[#allocation2 + $0x100] ss:$16 sps:$4 sm:$0xff]   ;;  %v3239_v31 = vld [vmem:[#allocation2 + $0x6a4] ss:$16 sps:$4 sm:$0xff]  }
  0x32   :  { %1796 = vmatprep.mubr.bf16.mxu0 %v3740_v37  ;;  %v3234_v32 = vld [vmem:[#allocation2 + $0x4a0] ss:$16 sps:$4 sm:$0xff]   ;;  %v3242_v34 = vld [vmem:[#allocation2 + $0x484] ss:$16 sps:$4 sm:$0xff]  }
  0x33   :  { %1783 = vmatpush2.bf16.msra.mxu0 %v3184_v39  ;;  %v435_v39 = vunpack.c.l.b16 %v125_v18  ;;  %1837 = vmatprep.mubr.bf16.mxu1 %v3742_v38  ;;  %v131_v3 = vpack.c.bf16 %v72_v58, %v72_v58  ;;  %v139_v4 = vpack.c.bf16 %v104_v59, %v104_v59  ;;  %v439_v7 = vunpack.c.l.b16 %v129_v63  ;;  %v3252_v40 = vld [vmem:[#allocation2 + $0x440] ss:$16 sps:$4 sm:$0xff]   ;;  %v3266_v58 = vld [vmem:[#allocation2 + $0x404] ss:$16 sps:$4 sm:$0xff]  }
  0x34   :  { %1824 = vmatpush2.bf16.msra.mxu1 %v3185_v41  ;;  %1784 = vmatprep.subr.bf16.mxu0 %v3186_v42  ;;  %v451_v41 = vrot.slane %v443_v19, 7  ;;  %v130_v42 = vpack.c.bf16 %v68_v23, %v68_v23  ;;  %v3269_v59 = vld [vmem:[#allocation2 + $0x604] ss:$16 sps:$4 sm:$0xff]  }
  0x35   :  { %1825 = vmatprep.subr.bf16.mxu1 %v3188_v43  ;;  %v132_v43 = vpack.c.bf16 %v76_v24, %v76_v24  ;;  %v3230_v24 = vld [vmem:[#allocation2 + $0x4c4] ss:$16 sps:$4 sm:$0xff]  }
  0x36   :  { %v440_v1 = vunpack.c.l.b16 %v130_v42  ;;  %v3251_v42 = vld [vmem:[#allocation2 + $0x664] ss:$16 sps:$4 sm:$0xff]  }
  0x37   :  { %1785 = vmatpush2.bf16.msra.mxu0 %v3190_v44  ;;  %v140_v44 = vpack.c.bf16 %v108_v27, %v108_v27  ;;  %v442_v2 = vunpack.c.l.b16 %v132_v43  ;;  %v3246_v43 = vld [vmem:[#allocation2 + $0x460] ss:$16 sps:$4 sm:$0xff]   ;;  %v3275_v63 = vld [vmem:[#allocation2 + $0x7e4] ss:$16 sps:$4 sm:$0xff]  }
  0x38   :  { %1826 = vmatpush2.bf16.msra.mxu1 %v3191_v45  ;;  %1786 = vmatprep.subr.bf16.mxu0 %v3192_v47  ;;  %v437_v45 = vunpack.c.l.b16 %v127_v25  ;;  %v448_v47 = vunpack.c.l.b16 %v138_v26  ;;  %v3233_v25 = vld [vmem:[#allocation2 + $0x6c4] ss:$16 sps:$4 sm:$0xff]  }
  0x39   :  { %1827 = vmatprep.subr.bf16.mxu1 %v3194_v50  ;;  %v96_v50 = vrot.slane %v3712_v53, %v63_v28  ;;  %v3221_v53 = vld [vmem:[#allocation2 + $0x300] ss:$16 sps:$4 sm:$0xff]  }
  0x3a   :  { %v462_v5 = vrot.slane %v448_v47, 7  ;;  %v3228_v28 = vld [vmem:[#allocation2 + $0x4c0] ss:$16 sps:$4 sm:$0xff]   ;;  %v3257_v47 = vld [vmem:[#allocation2 + $0x644] ss:$16 sps:$4 sm:$0xff]  }
  0x3b   :  { %1787 = vmatpush2.bf16.msra.mxu0 %v3196_v56  ;;  %v456_v56 = vrot.slane %v445_v33, 7  ;;  %v137_v0 = vpack.c.bf16 %v96_v50, %v96_v50  ;;  %v3237_v33 = vld [vmem:[#allocation2 + $0x6a0] ss:$16 sps:$4 sm:$0xff]  }
  0x3c   :  { %1828 = vmatpush2.bf16.msra.mxu1 %v3197_v57  ;;  %1788 = vmatprep.subr.bf16.mxu0 %v3198_v61  ;;  %v450_v57 = vunpack.c.l.b16 %v140_v44  ;;  %v3218_v61 = vld [vmem:[#allocation2 + $0x304] ss:$16 sps:$4 sm:$0xff]   ;;  %v463_v18 = vsel %vm452_vm0, %v462_v5, %v440_v1  ;;  %v3249_v44 = vld [vmem:[#allocation2 + $0x660] ss:$16 sps:$4 sm:$0xff]  }
  0x3d   :  { %1829 = vmatprep.subr.bf16.mxu1 %v3200_v62  ;;  %v453_v62 = vsel %vm452_vm0, %v451_v41, %v435_v39  ;;  %v447_v8 = vunpack.c.l.b16 %v137_v0  ;;  %v457_v9 = vsel %vm452_vm0, %v456_v56, %v437_v45  ;;  %v3764_v26 = vpack.c.b16 %v463_v18, %v463_v18  ;;  %v3243_v39 = vld [vmem:[#allocation2 + $0x680] ss:$16 sps:$4 sm:$0xff]   ;;  %v3248_v41 = vld [vmem:[#allocation2 + $0x464] ss:$16 sps:$4 sm:$0xff]  }
  0x3e   :  { %v466_v6 = vrot.slane %v450_v57, 7  ;;  %v3752_v15 = vpack.c.b16 %v453_v62, %v453_v62  ;;  %v3254_v45 = vld [vmem:[#allocation2 + $0x444] ss:$16 sps:$4 sm:$0xff]   ;;  %v3255_v50 = vld [vmem:[#allocation2 + $0x640] ss:$16 sps:$4 sm:$0xff]  }
  0x3f   :  { %1789 = vmatpush2.bf16.msra.mxu0 %v3202_v10  ;;  %v441_v10 = vunpack.c.l.b16 %v131_v3  ;;  %v460_v14 = vrot.slane %v447_v8, 7  ;;  %v3258_v56 = vld [vmem:[#allocation2 + $0x420] ss:$16 sps:$4 sm:$0xff]   ;;  %v3272_v62 = vld [vmem:[#allocation2 + $0x5e4] ss:$16 sps:$4 sm:$0xff]  }
  0x40   :  { %1830 = vmatpush2.bf16.msra.mxu1 %v3203_v11  ;;  %1790 = vmatprep.subr.bf16.mxu0 %v3204_v16  ;;  %v449_v11 = vunpack.c.l.b16 %v139_v4  ;;  %v467_v19 = vsel %vm452_vm0, %v466_v6, %v442_v2  ;;  %v3261_v57 = vld [vmem:[#allocation2 + $0x620] ss:$16 sps:$4 sm:$0xff]   ;;  %v3278_v2 = vld [vmem:[#allocation2 + $0x5c4] ss:$16 sps:$4 sm:$0xff]  }
  0x41   :  { %1831 = vmatprep.subr.bf16.mxu1 %v3206_v17  ;;  %v3754_v17 = vpack.c.b16 %v457_v9, %v457_v9  ;;  %v3759_v20 = vsel %vm452_vm0, %v460_v14, %v439_v7  ;;  %v3766_v27 = vpack.c.b16 %v467_v19, %v467_v19  ;;  %v3270_v0 = vld [vmem:[#allocation2 + $0x5e0] ss:$16 sps:$4 sm:$0xff]   ;;  %v3281_v3 = vld [vmem:[#allocation2 + $0x7c4] ss:$16 sps:$4 sm:$0xff]  }
  0x42   :  { %v464_v16 = vrot.slane %v449_v11, 7  ;;  %v3273_v1 = vld [vmem:[#allocation2 + $0x7e0] ss:$16 sps:$4 sm:$0xff]   ;;  %v3284_v6 = vld [vmem:[#allocation2 + $0x5a4] ss:$16 sps:$4 sm:$0xff]  }
  0x43   :  { %1791 = vmatpush2.bf16.msra.mxu0 %v3208_v29  ;;  %v3231_v29 = vld [vmem:[#allocation2 + $0x6c0] ss:$16 sps:$4 sm:$0xff]   ;;  %v3287_v7 = vld [vmem:[#allocation2 + $0x7a4] ss:$16 sps:$4 sm:$0xff]  }
  0x44   :  { %1832 = vmatpush2.bf16.msra.mxu1 %v3209_v30  ;;  %1792 = vmatprep.subr.bf16.mxu0 %v3210_v35  ;;  %v3762_v23 = vsel %vm452_vm0, %v464_v16, %v441_v10  ;;  %v3236_v30 = vld [vmem:[#allocation2 + $0x4a4] ss:$16 sps:$4 sm:$0xff]   ;;  %v3276_v4 = vld [vmem:[#allocation2 + $0x5c0] ss:$16 sps:$4 sm:$0xff]  }
  0x45   :  { %1833 = vmatprep.subr.bf16.mxu1 %v3212_v36  ;;  %v3245_v35 = vld [vmem:[#allocation2 + $0x684] ss:$16 sps:$4 sm:$0xff]   ;;  %v3240_v36 = vld [vmem:[#allocation2 + $0x480] ss:$16 sps:$4 sm:$0xff]  }
  0x46   :  { %v3279_v5 = vld [vmem:[#allocation2 + $0x7c0] ss:$16 sps:$4 sm:$0xff]   ;;  %v3293_v9 = vld [vmem:[#allocation2 + $0x784] ss:$16 sps:$4 sm:$0xff]  }
  0x47   :  { %1793 = vmatpush2.bf16.msra.mxu0 %v3214_v54  ;;  %v3260_v54 = vld [vmem:[#allocation2 + $0x424] ss:$16 sps:$4 sm:$0xff]   ;;  %v3282_v8 = vld [vmem:[#allocation2 + $0x5a0] ss:$16 sps:$4 sm:$0xff]  }
  0x48   :  { %1834 = vmatpush2.bf16.msra.mxu1 %v3215_v55  ;;  %1794 = vmatprep.subr.bf16.mxu0 %v3216_v60  ;;  %v3263_v55 = vld [vmem:[#allocation2 + $0x624] ss:$16 sps:$4 sm:$0xff]   ;;  %v3264_v60 = vld [vmem:[#allocation2 + $0x400] ss:$16 sps:$4 sm:$0xff]  }
  0x49   :  { %1835 = vmatprep.subr.bf16.mxu1 %v3218_v61  ;;  %v3267_v61 = vld [vmem:[#allocation2 + $0x600] ss:$16 sps:$4 sm:$0xff]   ;;  %v3302_v18 = vld [vmem:[#allocation2 + $0x544] ss:$16 sps:$4 sm:$0xff]  }
  0x4a   :  { %v3288_v10 = vld [vmem:[#allocation2 + $0x580] ss:$16 sps:$4 sm:$0xff]   ;;  %v3305_v19 = vld [vmem:[#allocation2 + $0x744] ss:$16 sps:$4 sm:$0xff]  }
  0x4b   :  { %1795 = vmatpush2.bf16.msra.mxu0 %v3220_v51  ;;  %v3285_v51 = vld [vmem:[#allocation2 + $0x7a0] ss:$16 sps:$4 sm:$0xff]  }
  0x4c   :  { %1836 = vmatpush2.bf16.msra.mxu1 %v3221_v53  ;;  %1846 = vmatprep.subr.bf16.mxu0 %v3224_v12  ;;  %v3290_v53 = vld [vmem:[#allocation2 + $0x584] ss:$16 sps:$4 sm:$0xff]   ;;  %v3291_v11 = vld [vmem:[#allocation2 + $0x780] ss:$16 sps:$4 sm:$0xff]  }
  0x4d   :  { %1887 = vmatprep.subr.bf16.mxu1 %v3227_v13  ;;  %v3296_v12 = vld [vmem:[#allocation2 + $0x564] ss:$16 sps:$4 sm:$0xff]   ;;  %v3294_v14 = vld [vmem:[#allocation2 + $0x560] ss:$16 sps:$4 sm:$0xff]  }
  0x4e   :  { %1797 = vmatmul.mubr.bf16.vlgmr.msra.gmra.mxu0 %v3752_v15  ;;  %v3299_v13 = vld [vmem:[#allocation2 + $0x764] ss:$16 sps:$4 sm:$0xff]   ;;  %v3297_v16 = vld [vmem:[#allocation2 + $0x760] ss:$16 sps:$4 sm:$0xff]  }
  0x4f   :  { %1838 = vmatmul.mubr.bf16.vlgmr.msra.gmra.mxu1 %v3754_v17  ;;  %1847 = vmatpush1.bf16.msra.mxu0 %v3222_v21  ;;  %v3300_v21 = vld [vmem:[#allocation2 + $0x540] ss:$16 sps:$4 sm:$0xff]  }
  0x50   :  { %1888 = vmatpush1.bf16.msra.mxu1 %v3225_v22  ;;  %1848 = vmatprep.subr.bf16.mxu0 %v3230_v24  ;;  %v3303_v22 = vld [vmem:[#allocation2 + $0x740] ss:$16 sps:$4 sm:$0xff]   ;;  %v3308_v24 = vld [vmem:[#allocation2 + $0x524] ss:$16 sps:$4 sm:$0xff]  }
  0x51   :  { %1889 = vmatprep.subr.bf16.mxu1 %v3233_v25  ;;  %1878 = vmatprep.mubr.bf16.mxu0 %v3764_v26  ;;  %v3311_v25 = vld [vmem:[#allocation2 + $0x724] ss:$16 sps:$4 sm:$0xff]  }
  0x52   :  { %1919 = vmatprep.mubr.bf16.mxu1 %v3766_v27 }
  0x53   :  { %1849 = vmatpush1.bf16.msra.mxu0 %v3228_v28  ;;  %v3306_v28 = vld [vmem:[#allocation2 + $0x520] ss:$16 sps:$4 sm:$0xff]  }
  0x54   :  { %1890 = vmatpush1.bf16.msra.mxu1 %v3231_v29  ;;  %1850 = vmatprep.subr.bf16.mxu0 %v3236_v30  ;;  %v3309_v29 = vld [vmem:[#allocation2 + $0x720] ss:$16 sps:$4 sm:$0xff]   ;;  %v3314_v30 = vld [vmem:[#allocation2 + $0x504] ss:$16 sps:$4 sm:$0xff]  }
  0x55   :  { %1891 = vmatprep.subr.bf16.mxu1 %v3239_v31  ;;  %v3317_v31 = vld [vmem:[#allocation2 + $0x704] ss:$16 sps:$4 sm:$0xff]  }
  0x57   :  { %1851 = vmatpush1.bf16.msra.mxu0 %v3234_v32  ;;  %v3312_v32 = vld [vmem:[#allocation2 + $0x500] ss:$16 sps:$4 sm:$0xff]  }
  0x58   :  { %1892 = vmatpush1.bf16.msra.mxu1 %v3237_v33  ;;  %1852 = vmatprep.subr.bf16.mxu0 %v3242_v34  ;;  %v3315_v33 = vld [vmem:[#allocation2 + $0x700] ss:$16 sps:$4 sm:$0xff]   ;;  %v3320_v34 = vld [vmem:[#allocation2 + $0xec] ss:$16 sps:$4 sm:$0xff]  }
  0x59   :  { %1893 = vmatprep.subr.bf16.mxu1 %v3245_v35  ;;  %v3323_v35 = vld [vmem:[#allocation2 + $0x2ec] ss:$16 sps:$4 sm:$0xff]  }
  0x5b   :  { %1853 = vmatpush1.bf16.msra.mxu0 %v3240_v36  ;;  %v3774_v36 = vpack.c.b16 %v3759_v20, %v3759_v20  ;;  %v3324_v20 = vld [vmem:[#allocation2 + $0xc8] ss:$16 sps:$4 sm:$0xff]  }
  0x5c   :  { %1894 = vmatpush1.bf16.msra.mxu1 %v3243_v39  ;;  %1854 = vmatprep.subr.bf16.mxu0 %v3248_v41  ;;  %v3778_v39 = vpack.c.b16 %v3762_v23, %v3762_v23  ;;  %v3318_v41 = vld [vmem:[#allocation2 + $0xe8] ss:$16 sps:$4 sm:$0xff]   ;;  %v3332_v23 = vld [vmem:[#allocation2 + $0xac] ss:$16 sps:$4 sm:$0xff]  }
  0x5d   :  { %1895 = vmatprep.subr.bf16.mxu1 %v3251_v42  ;;  %v3321_v42 = vld [vmem:[#allocation2 + $0x2e8] ss:$16 sps:$4 sm:$0xff]  }
  0x5f   :  { %1855 = vmatpush1.bf16.msra.mxu0 %v3246_v43  ;;  %v3326_v43 = vld [vmem:[#allocation2 + $0xcc] ss:$16 sps:$4 sm:$0xff]  }
  0x60   :  { %1896 = vmatpush1.bf16.msra.mxu1 %v3249_v44  ;;  %1856 = vmatprep.subr.bf16.mxu0 %v3254_v45  ;;  %v3329_v44 = vld [vmem:[#allocation2 + $0x2cc] ss:$16 sps:$4 sm:$0xff]   ;;  %v3327_v45 = vld [vmem:[#allocation2 + $0x2c8] ss:$16 sps:$4 sm:$0xff]  }
  0x61   :  { %1897 = vmatprep.subr.bf16.mxu1 %v3257_v47  ;;  %v3335_v47 = vld [vmem:[#allocation2 + $0x2ac] ss:$16 sps:$4 sm:$0xff]  }
  0x63   :  { %1857 = vmatpush1.bf16.msra.mxu0 %v3252_v40  ;;  %v3330_v40 = vld [vmem:[#allocation2 + $0xa8] ss:$16 sps:$4 sm:$0xff]  }
  0x64   :  { %1898 = vmatpush1.bf16.msra.mxu1 %v3255_v50  ;;  %1858 = vmatprep.subr.bf16.mxu0 %v3260_v54  ;;  %v3333_v50 = vld [vmem:[#allocation2 + $0x2a8] ss:$16 sps:$4 sm:$0xff]   ;;  %v3338_v54 = vld [vmem:[#allocation2 + $0x8c] ss:$16 sps:$4 sm:$0xff]  }
  0x65   :  { %1899 = vmatprep.subr.bf16.mxu1 %v3263_v55  ;;  %v3341_v55 = vld [vmem:[#allocation2 + $0x28c] ss:$16 sps:$4 sm:$0xff]  }
  0x67   :  { %1859 = vmatpush1.bf16.msra.mxu0 %v3258_v56  ;;  %v3336_v56 = vld [vmem:[#allocation2 + $0x88] ss:$16 sps:$4 sm:$0xff]  }
  0x68   :  { %1900 = vmatpush1.bf16.msra.mxu1 %v3261_v57  ;;  %1860 = vmatprep.subr.bf16.mxu0 %v3266_v58  ;;  %v3339_v57 = vld [vmem:[#allocation2 + $0x288] ss:$16 sps:$4 sm:$0xff]   ;;  %v3344_v58 = vld [vmem:[#allocation2 + $0x6c] ss:$16 sps:$4 sm:$0xff]  }
  0x69   :  { %1901 = vmatprep.subr.bf16.mxu1 %v3269_v59  ;;  %v3347_v59 = vld [vmem:[#allocation2 + $0x26c] ss:$16 sps:$4 sm:$0xff]  }
  0x6b   :  { %1861 = vmatpush1.bf16.msra.mxu0 %v3264_v60  ;;  %v3350_v60 = vld [vmem:[#allocation2 + $0x4c] ss:$16 sps:$4 sm:$0xff]  }
  0x6c   :  { %1902 = vmatpush1.bf16.msra.mxu1 %v3267_v61  ;;  %1862 = vmatprep.subr.bf16.mxu0 %v3272_v62  ;;  %v3353_v61 = vld [vmem:[#allocation2 + $0x24c] ss:$16 sps:$4 sm:$0xff]   ;;  %v3348_v62 = vld [vmem:[#allocation2 + $0x48] ss:$16 sps:$4 sm:$0xff]  }
  0x6d   :  { %1903 = vmatprep.subr.bf16.mxu1 %v3275_v63  ;;  %v3351_v63 = vld [vmem:[#allocation2 + $0x248] ss:$16 sps:$4 sm:$0xff]  }
  0x6f   :  { %1863 = vmatpush2.bf16.msra.mxu0 %v3270_v0  ;;  %v3356_v0 = vld [vmem:[#allocation2 + $0x2c] ss:$16 sps:$4 sm:$0xff]  }
  0x70   :  { %1904 = vmatpush2.bf16.msra.mxu1 %v3273_v1  ;;  %1864 = vmatprep.subr.bf16.mxu0 %v3278_v2  ;;  %v3359_v1 = vld [vmem:[#allocation2 + $0x22c] ss:$16 sps:$4 sm:$0xff]   ;;  %v3354_v2 = vld [vmem:[#allocation2 + $0x28] ss:$16 sps:$4 sm:$0xff]  }
  0x71   :  { %1905 = vmatprep.subr.bf16.mxu1 %v3281_v3  ;;  %v3357_v3 = vld [vmem:[#allocation2 + $0x228] ss:$16 sps:$4 sm:$0xff]  }
  0x73   :  { %1865 = vmatpush2.bf16.msra.mxu0 %v3276_v4  ;;  %v3362_v4 = vld [vmem:[#allocation2 + $0xc] ss:$16 sps:$4 sm:$0xff]  }
  0x74   :  { %1906 = vmatpush2.bf16.msra.mxu1 %v3279_v5  ;;  %1866 = vmatprep.subr.bf16.mxu0 %v3284_v6  ;;  %v3365_v5 = vld [vmem:[#allocation2 + $0x20c] ss:$16 sps:$4 sm:$0xff]   ;;  %v3360_v6 = vld [vmem:[#allocation2 + $0x8] ss:$16 sps:$4 sm:$0xff]  }
  0x75   :  { %1907 = vmatprep.subr.bf16.mxu1 %v3287_v7  ;;  %v3363_v7 = vld [vmem:[#allocation2 + $0x208] ss:$16 sps:$4 sm:$0xff]  }
  0x77   :  { %1867 = vmatpush2.bf16.msra.mxu0 %v3282_v8  ;;  %v3368_v8 = vld [vmem:[#allocation2 + $0x1ec] ss:$16 sps:$4 sm:$0xff]  }
  0x78   :  { %1908 = vmatpush2.bf16.msra.mxu1 %v3285_v51  ;;  %1868 = vmatprep.subr.bf16.mxu0 %v3290_v53  ;;  %v3371_v51 = vld [vmem:[#allocation2 + $0x3ec] ss:$16 sps:$4 sm:$0xff]   ;;  %v3366_v53 = vld [vmem:[#allocation2 + $0x1e8] ss:$16 sps:$4 sm:$0xff]  }
  0x79   :  { %1909 = vmatprep.subr.bf16.mxu1 %v3293_v9  ;;  %v3369_v9 = vld [vmem:[#allocation2 + $0x3e8] ss:$16 sps:$4 sm:$0xff]  }
  0x7b   :  { %1869 = vmatpush2.bf16.msra.mxu0 %v3288_v10  ;;  %v3374_v10 = vld [vmem:[#allocation2 + $0x1cc] ss:$16 sps:$4 sm:$0xff]  }
  0x7c   :  { %1910 = vmatpush2.bf16.msra.mxu1 %v3291_v11  ;;  %1870 = vmatprep.subr.bf16.mxu0 %v3296_v12  ;;  %v3377_v11 = vld [vmem:[#allocation2 + $0x3cc] ss:$16 sps:$4 sm:$0xff]   ;;  %v3372_v12 = vld [vmem:[#allocation2 + $0x1c8] ss:$16 sps:$4 sm:$0xff]  }
  0x7d   :  { %1911 = vmatprep.subr.bf16.mxu1 %v3299_v13  ;;  %v3375_v13 = vld [vmem:[#allocation2 + $0x3c8] ss:$16 sps:$4 sm:$0xff]  }
  0x7f   :  { %1871 = vmatpush2.bf16.msra.mxu0 %v3294_v14  ;;  %v3380_v14 = vld [vmem:[#allocation2 + $0x1ac] ss:$16 sps:$4 sm:$0xff]  }
  0x80   :  { %1912 = vmatpush2.bf16.msra.mxu1 %v3297_v16  ;;  %1872 = vmatprep.subr.bf16.mxu0 %v3302_v18  ;;  %v3383_v16 = vld [vmem:[#allocation2 + $0x3ac] ss:$16 sps:$4 sm:$0xff]   ;;  %v3378_v18 = vld [vmem:[#allocation2 + $0x1a8] ss:$16 sps:$4 sm:$0xff]  }
  0x81   :  { %1913 = vmatprep.subr.bf16.mxu1 %v3305_v19  ;;  %v3381_v19 = vld [vmem:[#allocation2 + $0x3a8] ss:$16 sps:$4 sm:$0xff]  }
  0x83   :  { %1873 = vmatpush2.bf16.msra.mxu0 %v3300_v21  ;;  %v3386_v21 = vld [vmem:[#allocation2 + $0x18c] ss:$16 sps:$4 sm:$0xff]  }
  0x84   :  { %1914 = vmatpush2.bf16.msra.mxu1 %v3303_v22  ;;  %1874 = vmatprep.subr.bf16.mxu0 %v3308_v24  ;;  %v3389_v22 = vld [vmem:[#allocation2 + $0x38c] ss:$16 sps:$4 sm:$0xff]   ;;  %v3384_v24 = vld [vmem:[#allocation2 + $0x188] ss:$16 sps:$4 sm:$0xff]  }
  0x85   :  { %1915 = vmatprep.subr.bf16.mxu1 %v3311_v25  ;;  %v3387_v25 = vld [vmem:[#allocation2 + $0x388] ss:$16 sps:$4 sm:$0xff]  }
  0x87   :  { %1875 = vmatpush2.bf16.msra.mxu0 %v3306_v28  ;;  %v3392_v28 = vld [vmem:[#allocation2 + $0x16c] ss:$16 sps:$4 sm:$0xff]  }
  0x88   :  { %1916 = vmatpush2.bf16.msra.mxu1 %v3309_v29  ;;  %1876 = vmatprep.subr.bf16.mxu0 %v3314_v30  ;;  %v3395_v29 = vld [vmem:[#allocation2 + $0x36c] ss:$16 sps:$4 sm:$0xff]   ;;  %v3390_v30 = vld [vmem:[#allocation2 + $0x168] ss:$16 sps:$4 sm:$0xff]  }
  0x89   :  { %1917 = vmatprep.subr.bf16.mxu1 %v3317_v31  ;;  %v3393_v31 = vld [vmem:[#allocation2 + $0x368] ss:$16 sps:$4 sm:$0xff]  }
  0x8b   :  { %1877 = vmatpush2.bf16.msra.mxu0 %v3312_v32  ;;  %v3398_v32 = vld [vmem:[#allocation2 + $0x14c] ss:$16 sps:$4 sm:$0xff]  }
  0x8c   :  { %1918 = vmatpush2.bf16.msra.mxu1 %v3315_v33  ;;  %1928 = vmatprep.subr.bf16.mxu0 %v3320_v34  ;;  %v3401_v33 = vld [vmem:[#allocation2 + $0x34c] ss:$16 sps:$4 sm:$0xff]   ;;  %v3396_v34 = vld [vmem:[#allocation2 + $0x148] ss:$16 sps:$4 sm:$0xff]  }
  0x8d   :  { %1969 = vmatprep.subr.bf16.mxu1 %v3323_v35  ;;  %v3399_v35 = vld [vmem:[#allocation2 + $0x348] ss:$16 sps:$4 sm:$0xff]  }
  0x8e   :  { %1879 = vmatmul.mubr.bf16.vlgmr.msra.gmra.mxu0 %v3774_v36 }
  0x8f   :  { %1920 = vmatmul.mubr.bf16.vlgmr.msra.gmra.mxu1 %v3778_v39  ;;  %1929 = vmatpush1.bf16.msra.mxu0 %v3318_v41  ;;  %v3404_v41 = vld [vmem:[#allocation2 + $0x12c] ss:$16 sps:$4 sm:$0xff]  }
  0x90   :  { %1970 = vmatpush1.bf16.msra.mxu1 %v3321_v42  ;;  %1930 = vmatprep.subr.bf16.mxu0 %v3326_v43  ;;  %v3407_v42 = vld [vmem:[#allocation2 + $0x32c] ss:$16 sps:$4 sm:$0xff]   ;;  %v3402_v43 = vld [vmem:[#allocation2 + $0x128] ss:$16 sps:$4 sm:$0xff]  }
  0x91   :  { %1971 = vmatprep.subr.bf16.mxu1 %v3329_v44  ;;  %1960 = vmatprep.mubr.bf16.mxu0 %v3740_v37  ;;  %v3342_v37 = vld [vmem:[#allocation2 + $0x68] ss:$16 sps:$4 sm:$0xff]  }
  0x92   :  { %2001 = vmatprep.mubr.bf16.mxu1 %v3742_v38  ;;  %v3345_v38 = vld [vmem:[#allocation2 + $0x268] ss:$16 sps:$4 sm:$0xff]  }
  0x93   :  { %1931 = vmatpush1.bf16.msra.mxu0 %v3324_v20  ;;  %v3405_v44 = vld [vmem:[#allocation2 + $0x328] ss:$16 sps:$4 sm:$0xff]   ;;  %v3410_v20 = vld [vmem:[#allocation2 + $0x10c] ss:$16 sps:$4 sm:$0xff]  }
  0x94   :  { %1972 = vmatpush1.bf16.msra.mxu1 %v3327_v45  ;;  %1932 = vmatprep.subr.bf16.mxu0 %v3332_v23  ;;  %v3413_v45 = vld [vmem:[#allocation2 + $0x30c] ss:$16 sps:$4 sm:$0xff]   ;;  %v3408_v23 = vld [vmem:[#allocation2 + $0x108] ss:$16 sps:$4 sm:$0xff]  }
  0x95   :  { %1973 = vmatprep.subr.bf16.mxu1 %v3335_v47  ;;  %v3411_v47 = vld [vmem:[#allocation2 + $0x308] ss:$16 sps:$4 sm:$0xff]  }
  0x97   :  { %1933 = vmatpush1.bf16.msra.mxu0 %v3330_v40  ;;  %v3416_v40 = vld [vmem:[#allocation2 + $0x4ec] ss:$16 sps:$4 sm:$0xff]  }
  0x98   :  { %1974 = vmatpush1.bf16.msra.mxu1 %v3333_v50  ;;  %1934 = vmatprep.subr.bf16.mxu0 %v3338_v54  ;;  %v3419_v50 = vld [vmem:[#allocation2 + $0x6ec] ss:$16 sps:$4 sm:$0xff]   ;;  %v3414_v54 = vld [vmem:[#allocation2 + $0x4e8] ss:$16 sps:$4 sm:$0xff]  }
  0x99   :  { %1975 = vmatprep.subr.bf16.mxu1 %v3341_v55  ;;  %v3417_v55 = vld [vmem:[#allocation2 + $0x6e8] ss:$16 sps:$4 sm:$0xff]  }
  0x9b   :  { %1935 = vmatpush1.bf16.msra.mxu0 %v3336_v56  ;;  %v3422_v56 = vld [vmem:[#allocation2 + $0x4cc] ss:$16 sps:$4 sm:$0xff]  }
  0x9c   :  { %1976 = vmatpush1.bf16.msra.mxu1 %v3339_v57  ;;  %1936 = vmatprep.subr.bf16.mxu0 %v3344_v58  ;;  %v3425_v57 = vld [vmem:[#allocation2 + $0x6cc] ss:$16 sps:$4 sm:$0xff]   ;;  %v3420_v58 = vld [vmem:[#allocation2 + $0x4c8] ss:$16 sps:$4 sm:$0xff]  }
  0x9d   :  { %1977 = vmatprep.subr.bf16.mxu1 %v3347_v59  ;;  %v3423_v59 = vld [vmem:[#allocation2 + $0x6c8] ss:$16 sps:$4 sm:$0xff]  }
  0x9f   :  { %1937 = vmatpush1.bf16.msra.mxu0 %v3342_v37  ;;  %v3428_v37 = vld [vmem:[#allocation2 + $0x4ac] ss:$16 sps:$4 sm:$0xff]  }
  0xa0   :  { %1978 = vmatpush1.bf16.msra.mxu1 %v3345_v38  ;;  %1938 = vmatprep.subr.bf16.mxu0 %v3350_v60  ;;  %v3431_v38 = vld [vmem:[#allocation2 + $0x6ac] ss:$16 sps:$4 sm:$0xff]   ;;  %v3426_v60 = vld [vmem:[#allocation2 + $0x4a8] ss:$16 sps:$4 sm:$0xff]  }
  0xa1   :  { %1979 = vmatprep.subr.bf16.mxu1 %v3353_v61  ;;  %v3429_v61 = vld [vmem:[#allocation2 + $0x6a8] ss:$16 sps:$4 sm:$0xff]  }
  0xa3   :  { %1939 = vmatpush1.bf16.msra.mxu0 %v3348_v62  ;;  %v3434_v62 = vld [vmem:[#allocation2 + $0x48c] ss:$16 sps:$4 sm:$0xff]  }
  0xa4   :  { %1980 = vmatpush1.bf16.msra.mxu1 %v3351_v63  ;;  %1940 = vmatprep.subr.bf16.mxu0 %v3356_v0  ;;  %v3432_v63 = vld [vmem:[#allocation2 + $0x488] ss:$16 sps:$4 sm:$0xff]   ;;  %v3440_v0 = vld [vmem:[#allocation2 + $0x46c] ss:$16 sps:$4 sm:$0xff]  }
  0xa5   :  { %1981 = vmatprep.subr.bf16.mxu1 %v3359_v1  ;;  %v3443_v1 = vld [vmem:[#allocation2 + $0x66c] ss:$16 sps:$4 sm:$0xff]  }
  0xa7   :  { %1941 = vmatpush1.bf16.msra.mxu0 %v3354_v2  ;;  %v3438_v2 = vld [vmem:[#allocation2 + $0x468] ss:$16 sps:$4 sm:$0xff]  }
  0xa8   :  { %1982 = vmatpush1.bf16.msra.mxu1 %v3357_v3  ;;  %1942 = vmatprep.subr.bf16.mxu0 %v3362_v4  ;;  %v3441_v3 = vld [vmem:[#allocation2 + $0x668] ss:$16 sps:$4 sm:$0xff]   ;;  %v3446_v4 = vld [vmem:[#allocation2 + $0x44c] ss:$16 sps:$4 sm:$0xff]  }
  0xa9   :  { %1983 = vmatprep.subr.bf16.mxu1 %v3365_v5  ;;  %v3447_v5 = vld [vmem:[#allocation2 + $0x648] ss:$16 sps:$4 sm:$0xff]  }
  0xab   :  { %1943 = vmatpush1.bf16.msra.mxu0 %v3360_v6  ;;  %v3452_v6 = vld [vmem:[#allocation2 + $0x42c] ss:$16 sps:$4 sm:$0xff]  }
  0xac   :  { %1984 = vmatpush1.bf16.msra.mxu1 %v3363_v7  ;;  %1944 = vmatprep.subr.bf16.mxu0 %v3368_v8  ;;  %v3455_v7 = vld [vmem:[#allocation2 + $0x62c] ss:$16 sps:$4 sm:$0xff]   ;;  %v3450_v8 = vld [vmem:[#allocation2 + $0x428] ss:$16 sps:$4 sm:$0xff]  }
  0xad   :  { %1985 = vmatprep.subr.bf16.mxu1 %v3371_v51  ;;  %v3453_v51 = vld [vmem:[#allocation2 + $0x628] ss:$16 sps:$4 sm:$0xff]  }
  0xaf   :  { %1945 = vmatpush2.bf16.msra.mxu0 %v3366_v53  ;;  %v3458_v53 = vld [vmem:[#allocation2 + $0x40c] ss:$16 sps:$4 sm:$0xff]  }
  0xb0   :  { %1986 = vmatpush2.bf16.msra.mxu1 %v3369_v9  ;;  %1946 = vmatprep.subr.bf16.mxu0 %v3374_v10  ;;  %v3461_v9 = vld [vmem:[#allocation2 + $0x60c] ss:$16 sps:$4 sm:$0xff]   ;;  %v3456_v10 = vld [vmem:[#allocation2 + $0x408] ss:$16 sps:$4 sm:$0xff]  }
  0xb1   :  { %1987 = vmatprep.subr.bf16.mxu1 %v3377_v11  ;;  %v3459_v11 = vld [vmem:[#allocation2 + $0x608] ss:$16 sps:$4 sm:$0xff]  }
  0xb3   :  { %1947 = vmatpush2.bf16.msra.mxu0 %v3372_v12  ;;  %v3464_v12 = vld [vmem:[#allocation2 + $0x5ec] ss:$16 sps:$4 sm:$0xff]  }
  0xb4   :  { %1988 = vmatpush2.bf16.msra.mxu1 %v3375_v13  ;;  %1948 = vmatprep.subr.bf16.mxu0 %v3380_v14  ;;  %v3467_v13 = vld [vmem:[#allocation2 + $0x7ec] ss:$16 sps:$4 sm:$0xff]   ;;  %v3462_v14 = vld [vmem:[#allocation2 + $0x5e8] ss:$16 sps:$4 sm:$0xff]  }
  0xb5   :  { %1989 = vmatprep.subr.bf16.mxu1 %v3383_v16  ;;  %v3465_v16 = vld [vmem:[#allocation2 + $0x7e8] ss:$16 sps:$4 sm:$0xff]  }
  0xb7   :  { %1949 = vmatpush2.bf16.msra.mxu0 %v3378_v18  ;;  %v3470_v18 = vld [vmem:[#allocation2 + $0x5cc] ss:$16 sps:$4 sm:$0xff]  }
  0xb8   :  { %1990 = vmatpush2.bf16.msra.mxu1 %v3381_v19  ;;  %1950 = vmatprep.subr.bf16.mxu0 %v3386_v21  ;;  %v3473_v19 = vld [vmem:[#allocation2 + $0x7cc] ss:$16 sps:$4 sm:$0xff]   ;;  %v3468_v21 = vld [vmem:[#allocation2 + $0x5c8] ss:$16 sps:$4 sm:$0xff]  }
  0xb9   :  { %1991 = vmatprep.subr.bf16.mxu1 %v3389_v22  ;;  %v3471_v22 = vld [vmem:[#allocation2 + $0x7c8] ss:$16 sps:$4 sm:$0xff]  }
  0xbb   :  { %1951 = vmatpush2.bf16.msra.mxu0 %v3384_v24  ;;  %v3476_v24 = vld [vmem:[#allocation2 + $0x5ac] ss:$16 sps:$4 sm:$0xff]  }
  0xbc   :  { %1992 = vmatpush2.bf16.msra.mxu1 %v3387_v25  ;;  %1952 = vmatprep.subr.bf16.mxu0 %v3392_v28  ;;  %v3479_v25 = vld [vmem:[#allocation2 + $0x7ac] ss:$16 sps:$4 sm:$0xff]   ;;  %v3474_v28 = vld [vmem:[#allocation2 + $0x5a8] ss:$16 sps:$4 sm:$0xff]  }
  0xbd   :  { %1993 = vmatprep.subr.bf16.mxu1 %v3395_v29  ;;  %v3477_v29 = vld [vmem:[#allocation2 + $0x7a8] ss:$16 sps:$4 sm:$0xff]  }
  0xbf   :  { %1953 = vmatpush2.bf16.msra.mxu0 %v3390_v30  ;;  %v3482_v30 = vld [vmem:[#allocation2 + $0x58c] ss:$16 sps:$4 sm:$0xff]  }
  0xc0   :  { %1994 = vmatpush2.bf16.msra.mxu1 %v3393_v31  ;;  %1954 = vmatprep.subr.bf16.mxu0 %v3398_v32  ;;  %v3485_v31 = vld [vmem:[#allocation2 + $0x78c] ss:$16 sps:$4 sm:$0xff]   ;;  %v3480_v32 = vld [vmem:[#allocation2 + $0x588] ss:$16 sps:$4 sm:$0xff]  }
  0xc1   :  { %1995 = vmatprep.subr.bf16.mxu1 %v3401_v33  ;;  %v3483_v33 = vld [vmem:[#allocation2 + $0x788] ss:$16 sps:$4 sm:$0xff]  }
  0xc3   :  { %1955 = vmatpush2.bf16.msra.mxu0 %v3396_v34  ;;  %v3488_v34 = vld [vmem:[#allocation2 + $0x56c] ss:$16 sps:$4 sm:$0xff]  }
  0xc4   :  { %1996 = vmatpush2.bf16.msra.mxu1 %v3399_v35  ;;  %1956 = vmatprep.subr.bf16.mxu0 %v3404_v41  ;;  %v3491_v35 = vld [vmem:[#allocation2 + $0x76c] ss:$16 sps:$4 sm:$0xff]   ;;  %v3486_v41 = vld [vmem:[#allocation2 + $0x568] ss:$16 sps:$4 sm:$0xff]  }
  0xc5   :  { %1997 = vmatprep.subr.bf16.mxu1 %v3407_v42  ;;  %v3489_v42 = vld [vmem:[#allocation2 + $0x768] ss:$16 sps:$4 sm:$0xff]  }
  0xc7   :  { %1957 = vmatpush2.bf16.msra.mxu0 %v3402_v43  ;;  %v3494_v43 = vld [vmem:[#allocation2 + $0x54c] ss:$16 sps:$4 sm:$0xff]  }
  0xc8   :  { %1998 = vmatpush2.bf16.msra.mxu1 %v3405_v44  ;;  %1958 = vmatprep.subr.bf16.mxu0 %v3410_v20  ;;  %v3497_v44 = vld [vmem:[#allocation2 + $0x74c] ss:$16 sps:$4 sm:$0xff]   ;;  %v3492_v20 = vld [vmem:[#allocation2 + $0x548] ss:$16 sps:$4 sm:$0xff]  }
  0xc9   :  { %1999 = vmatprep.subr.bf16.mxu1 %v3413_v45  ;;  %v3495_v45 = vld [vmem:[#allocation2 + $0x748] ss:$16 sps:$4 sm:$0xff]  }
  0xcb   :  { %1959 = vmatpush2.bf16.msra.mxu0 %v3408_v23  ;;  %v3500_v23 = vld [vmem:[#allocation2 + $0x52c] ss:$16 sps:$4 sm:$0xff]  }
  0xcc   :  { %2000 = vmatpush2.bf16.msra.mxu1 %v3411_v47  ;;  %2010 = vmatprep.subr.bf16.mxu0 %v3416_v40  ;;  %v3503_v47 = vld [vmem:[#allocation2 + $0x72c] ss:$16 sps:$4 sm:$0xff]   ;;  %v3498_v40 = vld [vmem:[#allocation2 + $0x528] ss:$16 sps:$4 sm:$0xff]  }
  0xcd   :  { %2051 = vmatprep.subr.bf16.mxu1 %v3419_v50  ;;  %v3501_v50 = vld [vmem:[#allocation2 + $0x728] ss:$16 sps:$4 sm:$0xff]  }
  0xce   :  { %1961 = vmatmul.mubr.bf16.vlgmr.msra.gmra.mxu0 %v3752_v15  ;;  %v3437_v15 = vld [vmem:[#allocation2 + $0x68c] ss:$16 sps:$4 sm:$0xff]  }
  0xcf   :  { %2002 = vmatmul.mubr.bf16.vlgmr.msra.gmra.mxu1 %v3754_v17  ;;  %2011 = vmatpush1.bf16.msra.mxu0 %v3414_v54  ;;  %v3435_v17 = vld [vmem:[#allocation2 + $0x688] ss:$16 sps:$4 sm:$0xff]   ;;  %v3506_v54 = vld [vmem:[#allocation2 + $0x50c] ss:$16 sps:$4 sm:$0xff]  }
  0xd0   :  { %2052 = vmatpush1.bf16.msra.mxu1 %v3417_v55  ;;  %2012 = vmatprep.subr.bf16.mxu0 %v3422_v56  ;;  %v3509_v55 = vld [vmem:[#allocation2 + $0x70c] ss:$16 sps:$4 sm:$0xff]   ;;  %v3504_v56 = vld [vmem:[#allocation2 + $0x508] ss:$16 sps:$4 sm:$0xff]  }
  0xd1   :  { %2053 = vmatprep.subr.bf16.mxu1 %v3425_v57  ;;  %2042 = vmatprep.mubr.bf16.mxu0 %v3764_v26  ;;  %v3449_v26 = vld [vmem:[#allocation2 + $0x64c] ss:$16 sps:$4 sm:$0xff]   ;;  %v3507_v57 = vld [vmem:[#allocation2 + $0x708] ss:$16 sps:$4 sm:$0xff]  }
  0xd2   :  { %2083 = vmatprep.mubr.bf16.mxu1 %v3766_v27  ;;  %v3444_v27 = vld [vmem:[#allocation2 + $0x448] ss:$16 sps:$4 sm:$0xff]  }
  0xd3   :  { %2013 = vmatpush1.bf16.msra.mxu0 %v3420_v58  ;;  %v3512_v58 = vld [vmem:[%s4069_s3 + $0x74] ss:$8 sps:$4 sm:$0xff]  }
  0xd4   :  { %2054 = vmatpush1.bf16.msra.mxu1 %v3423_v59  ;;  %2014 = vmatprep.subr.bf16.mxu0 %v3428_v37  ;;  %v3510_v59 = vld [vmem:[%s4069_s3 + $0x70] ss:$8 sps:$4 sm:$0xff]   ;;  %v3515_v37 = vld [vmem:[%s4069_s3 + $0x64] ss:$8 sps:$4 sm:$0xff]  }
  0xd5   :  { %2055 = vmatprep.subr.bf16.mxu1 %v3431_v38 }
  0xd7   :  { %2015 = vmatpush1.bf16.msra.mxu0 %v3426_v60 }
  0xd8   :  { %2056 = vmatpush1.bf16.msra.mxu1 %v3429_v61  ;;  %2016 = vmatprep.subr.bf16.mxu0 %v3434_v62  ;;  %v3513_v61 = vld [vmem:[%s4069_s3 + $0x60] ss:$8 sps:$4 sm:$0xff]  }
  0xd9   :  { %2057 = vmatprep.subr.bf16.mxu1 %v3437_v15 }
  0xdb   :  { %2017 = vmatpush1.bf16.msra.mxu0 %v3432_v63  ;;  %v3518_v63 = vld [vmem:[%s4069_s3 + $0x54] ss:$8 sps:$4 sm:$0xff]  }
  0xdc   :  { %2058 = vmatpush1.bf16.msra.mxu1 %v3435_v17  ;;  %2018 = vmatprep.subr.bf16.mxu0 %v3440_v0 }
  0xdd   :  { %2059 = vmatprep.subr.bf16.mxu1 %v3443_v1 }
  0xdf   :  { %2019 = vmatpush1.bf16.msra.mxu0 %v3438_v2  ;;  %v3521_v2 = vld [vmem:[%s4069_s3 + $0x44] ss:$8 sps:$4 sm:$0xff]  }
  0xe0   :  { %2060 = vmatpush1.bf16.msra.mxu1 %v3441_v3  ;;  %2020 = vmatprep.subr.bf16.mxu0 %v3446_v4  ;;  %v3558_v3 = vld [vmem:[%s4069_s3 + $0x170] ss:$8 sps:$4 sm:$0xff]   ;;  %v3560_v4 = vld [vmem:[%s4069_s3 + $0x174] ss:$8 sps:$4 sm:$0xff]  }
  0xe1   :  { %2061 = vmatprep.subr.bf16.mxu1 %v3449_v26  ;;  %v3563_v26 = vld [vmem:[%s4069_s3 + $0x164] ss:$8 sps:$4 sm:$0xff]  }
  0xe3   :  { %2021 = vmatpush1.bf16.msra.mxu0 %v3444_v27  ;;  %v3519_v27 = vld [vmem:[%s4069_s3 + $0x40] ss:$8 sps:$4 sm:$0xff]  }
  0xe4   :  { %2062 = vmatpush1.bf16.msra.mxu1 %v3447_v5  ;;  %2022 = vmatprep.subr.bf16.mxu0 %v3452_v6  ;;  %v3561_v5 = vld [vmem:[%s4069_s3 + $0x160] ss:$8 sps:$4 sm:$0xff]   ;;  %v3524_v6 = vld [vmem:[%s4069_s3 + $0x34] ss:$8 sps:$4 sm:$0xff]  }
  0xe5   :  { %2063 = vmatprep.subr.bf16.mxu1 %v3455_v7  ;;  %v3566_v7 = vld [vmem:[%s4069_s3 + $0x154] ss:$8 sps:$4 sm:$0xff]  }
  0xe7   :  { %2023 = vmatpush1.bf16.msra.mxu0 %v3450_v8  ;;  %v3522_v8 = vld [vmem:[%s4069_s3 + $0x30] ss:$8 sps:$4 sm:$0xff]  }
  0xe8   :  { %2064 = vmatpush1.bf16.msra.mxu1 %v3453_v51  ;;  %2024 = vmatprep.subr.bf16.mxu0 %v3458_v53  ;;  %v3564_v51 = vld [vmem:[%s4069_s3 + $0x150] ss:$8 sps:$4 sm:$0xff]   ;;  %v3527_v53 = vld [vmem:[%s4069_s3 + $0x24] ss:$8 sps:$4 sm:$0xff]  }
  0xe9   :  { %2065 = vmatprep.subr.bf16.mxu1 %v3461_v9  ;;  %v3569_v9 = vld [vmem:[%s4069_s3 + $0x144] ss:$8 sps:$4 sm:$0xff]  }
  0xeb   :  { %2025 = vmatpush1.bf16.msra.mxu0 %v3456_v10  ;;  %v3525_v10 = vld [vmem:[%s4069_s3 + $0x20] ss:$8 sps:$4 sm:$0xff]  }
  0xec   :  { %2066 = vmatpush1.bf16.msra.mxu1 %v3459_v11  ;;  %2026 = vmatprep.subr.bf16.mxu0 %v3464_v12  ;;  %v3567_v11 = vld [vmem:[%s4069_s3 + $0x140] ss:$8 sps:$4 sm:$0xff]   ;;  %v3530_v12 = vld [vmem:[%s4069_s3 + $0x14] ss:$8 sps:$4 sm:$0xff]  }
  0xed   :  { %2067 = vmatprep.subr.bf16.mxu1 %v3467_v13  ;;  %v3572_v13 = vld [vmem:[%s4069_s3 + $0x134] ss:$8 sps:$4 sm:$0xff]  }
  0xef   :  { %2027 = vmatpush2.bf16.msra.mxu0 %v3462_v14  ;;  %v3528_v14 = vld [vmem:[%s4069_s3 + $0x10] ss:$8 sps:$4 sm:$0xff]  }
  0xf0   :  { %2068 = vmatpush2.bf16.msra.mxu1 %v3465_v16  ;;  %2028 = vmatprep.subr.bf16.mxu0 %v3470_v18  ;;  %v3570_v16 = vld [vmem:[%s4069_s3 + $0x130] ss:$8 sps:$4 sm:$0xff]   ;;  %v3533_v18 = vld [vmem:[%s4069_s3 + $0x4] ss:$8 sps:$4 sm:$0xff]  }
  0xf1   :  { %2069 = vmatprep.subr.bf16.mxu1 %v3473_v19  ;;  %v3575_v19 = vld [vmem:[%s4069_s3 + $0x124] ss:$8 sps:$4 sm:$0xff]  }
  0xf3   :  { %2029 = vmatpush2.bf16.msra.mxu0 %v3468_v21  ;;  %v3531_v21 = vld [vmem:[%s4069_s3] ss:$8 sps:$4 sm:$0xff]  }
  0xf4   :  { %2070 = vmatpush2.bf16.msra.mxu1 %v3471_v22  ;;  %2030 = vmatprep.subr.bf16.mxu0 %v3476_v24  ;;  %v3573_v22 = vld [vmem:[%s4069_s3 + $0x120] ss:$8 sps:$4 sm:$0xff]   ;;  %v3536_v24 = vld [vmem:[%s4069_s3 + $0xf4] ss:$8 sps:$4 sm:$0xff]  }
  0xf5   :  { %2071 = vmatprep.subr.bf16.mxu1 %v3479_v25  ;;  %v3578_v25 = vld [vmem:[%s4069_s3 + $0x114] ss:$8 sps:$4 sm:$0xff]  }
  0xf7   :  { %2031 = vmatpush2.bf16.msra.mxu0 %v3474_v28  ;;  %v3534_v28 = vld [vmem:[%s4069_s3 + $0xf0] ss:$8 sps:$4 sm:$0xff]  }
  0xf8   :  { %2072 = vmatpush2.bf16.msra.mxu1 %v3477_v29  ;;  %2032 = vmatprep.subr.bf16.mxu0 %v3482_v30  ;;  %v3576_v29 = vld [vmem:[%s4069_s3 + $0x110] ss:$8 sps:$4 sm:$0xff]   ;;  %v3539_v30 = vld [vmem:[%s4069_s3 + $0xe4] ss:$8 sps:$4 sm:$0xff]  }
  0xf9   :  { %2073 = vmatprep.subr.bf16.mxu1 %v3485_v31  ;;  %v3581_v31 = vld [vmem:[%s4069_s3 + $0x104] ss:$8 sps:$4 sm:$0xff]  }
  0xfb   :  { %2033 = vmatpush2.bf16.msra.mxu0 %v3480_v32  ;;  %v3537_v32 = vld [vmem:[%s4069_s3 + $0xe0] ss:$8 sps:$4 sm:$0xff]  }
  0xfc   :  { %2074 = vmatpush2.bf16.msra.mxu1 %v3483_v33  ;;  %2034 = vmatprep.subr.bf16.mxu0 %v3488_v34  ;;  %v3579_v33 = vld [vmem:[%s4069_s3 + $0x100] ss:$8 sps:$4 sm:$0xff]   ;;  %v3542_v34 = vld [vmem:[%s4069_s3 + $0xd4] ss:$8 sps:$4 sm:$0xff]  }
  0xfd   :  { %2075 = vmatprep.subr.bf16.mxu1 %v3491_v35  ;;  %v3584_v35 = vld [vmem:[%s4069_s3 + $0x1f4] ss:$8 sps:$4 sm:$0xff]  }
  0xff   :  { %2035 = vmatpush2.bf16.msra.mxu0 %v3486_v41  ;;  %v3540_v41 = vld [vmem:[%s4069_s3 + $0xd0] ss:$8 sps:$4 sm:$0xff]  }
 0x100   :  { %2076 = vmatpush2.bf16.msra.mxu1 %v3489_v42  ;;  %2036 = vmatprep.subr.bf16.mxu0 %v3494_v43  ;;  %v3582_v42 = vld [vmem:[%s4069_s3 + $0x1f0] ss:$8 sps:$4 sm:$0xff]   ;;  %v3545_v43 = vld [vmem:[%s4069_s3 + $0xc4] ss:$8 sps:$4 sm:$0xff]  }
 0x101   :  { %2077 = vmatprep.subr.bf16.mxu1 %v3497_v44  ;;  %v3587_v44 = vld [vmem:[%s4069_s3 + $0x1e4] ss:$8 sps:$4 sm:$0xff]  }
 0x103   :  { %2037 = vmatpush2.bf16.msra.mxu0 %v3492_v20  ;;  %v3543_v20 = vld [vmem:[%s4069_s3 + $0xc0] ss:$8 sps:$4 sm:$0xff]  }
 0x104   :  { %2078 = vmatpush2.bf16.msra.mxu1 %v3495_v45  ;;  %2038 = vmatprep.subr.bf16.mxu0 %v3500_v23  ;;  %v3585_v45 = vld [vmem:[%s4069_s3 + $0x1e0] ss:$8 sps:$4 sm:$0xff]   ;;  %v3548_v23 = vld [vmem:[%s4069_s3 + $0xb4] ss:$8 sps:$4 sm:$0xff]  }
 0x105   :  { %2079 = vmatprep.subr.bf16.mxu1 %v3503_v47  ;;  %v3590_v47 = vld [vmem:[%s4069_s3 + $0x1d4] ss:$8 sps:$4 sm:$0xff]  }
 0x107   :  { %2039 = vmatpush2.bf16.msra.mxu0 %v3498_v40  ;;  %v3546_v40 = vld [vmem:[%s4069_s3 + $0xb0] ss:$8 sps:$4 sm:$0xff]  }
 0x108   :  { %2080 = vmatpush2.bf16.msra.mxu1 %v3501_v50  ;;  %2040 = vmatprep.subr.bf16.mxu0 %v3506_v54  ;;  %v3588_v50 = vld [vmem:[%s4069_s3 + $0x1d0] ss:$8 sps:$4 sm:$0xff]   ;;  %v3551_v54 = vld [vmem:[%s4069_s3 + $0xa4] ss:$8 sps:$4 sm:$0xff]  }
 0x109   :  { %2081 = vmatprep.subr.bf16.mxu1 %v3509_v55  ;;  %v3593_v55 = vld [vmem:[%s4069_s3 + $0x1c4] ss:$8 sps:$4 sm:$0xff]  }
 0x10b   :  { %2041 = vmatpush2.bf16.msra.mxu0 %v3504_v56  ;;  %v3549_v56 = vld [vmem:[%s4069_s3 + $0xa0] ss:$8 sps:$4 sm:$0xff]  }
 0x10c   :  { %2082 = vmatpush2.bf16.msra.mxu1 %v3507_v57  ;;  %2496 = vmatprep.subr.bf16.mxu0 %v3512_v58  ;;  %v3591_v57 = vld [vmem:[%s4069_s3 + $0x1c0] ss:$8 sps:$4 sm:$0xff]   ;;  %v3554_v58 = vld [vmem:[%s4069_s3 + $0x94] ss:$8 sps:$4 sm:$0xff]  }
 0x10d   :  { %2537 = vmatprep.subr.bf16.mxu1 %v3560_v4 }
 0x10e   :  { %v3797_v38 = vpop.f32.mrf.mxu0  ;;  %2043 = vmatmul.mubr.bf16.vlgmr.msra.gmra.mxu0 %v3774_v36  ;;  %v3516_v36 = vld [vmem:[%s4069_s3 + $0x50] ss:$8 sps:$4 sm:$0xff]  }
 0x10f   :  { %v3799_v60 = vpop.f32.mrf.mxu1  ;;  %2084 = vmatmul.mubr.bf16.vlgmr.msra.gmra.mxu1 %v3778_v39  ;;  %2497 = vmatpush1.bf16.msra.mxu0 %v3510_v59  ;;  %v3596_v59 = vld [vmem:[%s4069_s3 + $0x1b4] ss:$8 sps:$4 sm:$0xff]  }
 0x110   :  { %v3806_v62 = vpop.f32.mrf.mxu0  ;;  %2498 = vmatprep.subr.bf16.mxu0 %v3515_v37  ;;  %2538 = vmatpush1.bf16.msra.mxu1 %v3558_v3  ;;  %v3963_v37 = vld [vmem:[%s4068_s2] sm:$0xf]  ;;  %v3599_v3 = vld [vmem:[%s4069_s3 + $0x1a4] ss:$8 sps:$4 sm:$0xff]  }
 0x111   :  { %v3808_v15 = vpop.f32.mrf.mxu1  ;;  %2539 = vmatprep.subr.bf16.mxu1 %v3563_v26  ;;  %v3597_v26 = vld [vmem:[%s4069_s3 + $0x1a0] ss:$8 sps:$4 sm:$0xff]  }
 0x112   :  { %v1802_v17 = vpop.f32.mrf.mxu0 }
 0x113   :  { %v1843_v0 = vpop.f32.mrf.mxu1  ;;  %2499 = vmatpush1.bf16.msra.mxu0 %v3513_v61  ;;  %v3552_v61 = vld [vmem:[%s4069_s3 + $0x90] ss:$8 sps:$4 sm:$0xff]   ;;  %v3557_v17 = vld [vmem:[%s4069_s3 + $0x84] ss:$8 sps:$4 sm:$0xff]  }
 0x114   :  { %v1803_v39 = vpop.f32.mrf.mxu0  ;;  %2500 = vmatprep.subr.bf16.mxu0 %v3518_v63  ;;  %2540 = vmatpush1.bf16.msra.mxu1 %v3561_v5  ;;  %v3594_v63 = vld [vmem:[%s4069_s3 + $0x1b0] ss:$8 sps:$4 sm:$0xff]   ;;  %v402_v0 = vrot.slane %v3963_v37, %v3699_v49 }
 0x115   :  { %v1844_v1 = vpop.f32.mrf.mxu1  ;;  %2541 = vmatprep.subr.bf16.mxu1 %v3566_v7  ;;  %v3555_v39 = vld [vmem:[%s4069_s3 + $0x80] ss:$8 sps:$4 sm:$0xff]  }
 0x116   :  { %v1799_v1 = vadd.f32 %v3797_v38, %v402_v0 }
 0x117   :  { %2501 = vmatpush1.bf16.msra.mxu0 %v3516_v36  ;;  %v406_v36 = vrot.slane %v3963_v37, %v3693_v46 }
 0x118   :  { %2502 = vmatprep.subr.bf16.mxu0 %v3521_v2  ;;  %2542 = vmatpush1.bf16.msra.mxu1 %v3564_v51  ;;  %v1840_v4 = vadd.f32 %v3799_v60, %v1799_v1  ;;  %v3600_v60 = vld [vmem:[%s4069_s3 + $0x190] ss:$8 sps:$4 sm:$0xff]  }
 0x119   :  { %2543 = vmatprep.subr.bf16.mxu1 %v3569_v9  ;;  %v1801_v2 = vadd.f32 %v3806_v62, %v406_v36 }
 0x11b   :  { %2503 = vmatpush1.bf16.msra.mxu0 %v3519_v27 }
 0x11c   :  { %2504 = vmatprep.subr.bf16.mxu0 %v3524_v6  ;;  %2544 = vmatpush1.bf16.msra.mxu1 %v3567_v11  ;;  %v1842_v6 = vadd.f32 %v3808_v15, %v1801_v2 }
 0x11d   :  { %2545 = vmatprep.subr.bf16.mxu1 %v3572_v13 }
 0x11f   :  { %2505 = vmatpush1.bf16.msra.mxu0 %v3522_v8  ;;  %v3602_v8 = vld [vmem:[%s4069_s3 + $0x194] ss:$8 sps:$4 sm:$0xff]  }
 0x120   :  { %2506 = vmatprep.subr.bf16.mxu0 %v3527_v53  ;;  %2546 = vmatpush1.bf16.msra.mxu1 %v3570_v16 }
 0x121   :  { %2547 = vmatprep.subr.bf16.mxu1 %v3575_v19 }
 0x123   :  { %2507 = vmatpush1.bf16.msra.mxu0 %v3525_v10 }
 0x124   :  { %2508 = vmatprep.subr.bf16.mxu0 %v3530_v12  ;;  %2548 = vmatpush1.bf16.msra.mxu1 %v3573_v22 }
 0x125   :  { %2549 = vmatprep.subr.bf16.mxu1 %v3578_v25 }
 0x127   :  { %2509 = vmatpush1.bf16.msra.mxu0 %v3528_v14  ;;  %v3605_v14 = vld [vmem:[%s4069_s3 + $0x184] ss:$8 sps:$4 sm:$0xff]  }
 0x128   :  { %2510 = vmatprep.subr.bf16.mxu0 %v3533_v18  ;;  %2550 = vmatpush1.bf16.msra.mxu1 %v3576_v29  ;;  %v3603_v18 = vld [vmem:[%s4069_s3 + $0x180] ss:$8 sps:$4 sm:$0xff]  }
 0x129   :  { %2551 = vmatprep.subr.bf16.mxu1 %v3581_v31 }
 0x12b   :  { %2511 = vmatpush1.bf16.msra.mxu0 %v3531_v21 }
 0x12c   :  { %2512 = vmatprep.subr.bf16.mxu0 %v3536_v24  ;;  %2552 = vmatpush1.bf16.msra.mxu1 %v3579_v33  ;;  %v3606_v33 = vld [vmem:[%s4071_s5 + $0x78] sm:$0xff]  }
 0x12d   :  { %2553 = vmatprep.subr.bf16.mxu1 %v3584_v35  ;;  %v3608_v35 = vld [vmem:[%s4071_s5 + $0x70] sm:$0xff]  }
 0x12f   :  { %2513 = vmatpush2.bf16.msra.mxu0 %v3534_v28 }
 0x130   :  { %2514 = vmatprep.subr.bf16.mxu0 %v3539_v30  ;;  %2554 = vmatpush2.bf16.msra.mxu1 %v3582_v42  ;;  %v3610_v42 = vld [vmem:[%s4071_s5 + $0x68] sm:$0xff]  }
 0x131   :  { %2555 = vmatprep.subr.bf16.mxu1 %v3587_v44  ;;  %v3612_v44 = vld [vmem:[%s4071_s5 + $0x60] sm:$0xff]  }
 0x133   :  { %2515 = vmatpush2.bf16.msra.mxu0 %v3537_v32 }
 0x134   :  { %2516 = vmatprep.subr.bf16.mxu0 %v3542_v34  ;;  %2556 = vmatpush2.bf16.msra.mxu1 %v3585_v45  ;;  %v3607_v34 = vld [vmem:[%s4071_s5 + $0x38] sm:$0xff]  }
 0x135   :  { %2557 = vmatprep.subr.bf16.mxu1 %v3590_v47  ;;  %v3614_v45 = vld [vmem:[%s4071_s5 + $0x58] sm:$0xff]   ;;  %v3616_v47 = vld [vmem:[%s4071_s5 + $0x50] sm:$0xff]  }
 0x137   :  { %2517 = vmatpush2.bf16.msra.mxu0 %v3540_v41  ;;  %v3609_v41 = vld [vmem:[%s4071_s5 + $0x30] sm:$0xff]  }
 0x138   :  { %2518 = vmatprep.subr.bf16.mxu0 %v3545_v43  ;;  %2558 = vmatpush2.bf16.msra.mxu1 %v3588_v50  ;;  %v3611_v43 = vld [vmem:[%s4071_s5 + $0x28] sm:$0xff]   ;;  %v410_v50 = vrot.slane %v3963_v37, %v3707_v52 }
 0x139   :  { %2559 = vmatprep.subr.bf16.mxu1 %v3593_v55 }
 0x13b   :  { %2519 = vmatpush2.bf16.msra.mxu0 %v3543_v20  ;;  %v3613_v20 = vld [vmem:[%s4071_s5 + $0x20] sm:$0xff]  }
 0x13c   :  { %2520 = vmatprep.subr.bf16.mxu0 %v3548_v23  ;;  %2560 = vmatpush2.bf16.msra.mxu1 %v3591_v57  ;;  %v3615_v23 = vld [vmem:[%s4071_s5 + $0x18] sm:$0xff]  }
 0x13d   :  { %2561 = vmatprep.subr.bf16.mxu1 %v3596_v59 }
 0x13f   :  { %2521 = vmatpush2.bf16.msra.mxu0 %v3546_v40  ;;  %v3617_v40 = vld [vmem:[%s4071_s5 + $0x10] sm:$0xff]  }
 0x140   :  { %2522 = vmatprep.subr.bf16.mxu0 %v3551_v54  ;;  %2562 = vmatpush2.bf16.msra.mxu1 %v3594_v63  ;;  %v414_v54 = vrot.slane %v3963_v37, %v3696_v48 }
 0x141   :  { %2563 = vmatprep.subr.bf16.mxu1 %v3599_v3 }
 0x143   :  { %2523 = vmatpush2.bf16.msra.mxu0 %v3549_v56 }
 0x144   :  { %2524 = vmatprep.subr.bf16.mxu0 %v3554_v58  ;;  %2564 = vmatpush2.bf16.msra.mxu1 %v3597_v26 }
 0x145   :  { %2565 = vmatprep.subr.bf16.mxu1 %v3602_v8  ;;  %v3620_v8 = vld [vmem:[%s4071_s5 + $0x40] sm:$0xff]  }
 0x147   :  { %2525 = vmatpush2.bf16.msra.mxu0 %v3552_v61 }
 0x148   :  { %2526 = vmatprep.subr.bf16.mxu0 %v3557_v17  ;;  %2566 = vmatpush2.bf16.msra.mxu1 %v3600_v60  ;;  %v2164_v60 = vld [vmem:[%s4070_s4] sm:$0x3] }
 0x149   :  { %2567 = vmatprep.subr.bf16.mxu1 %v3605_v14 }
 0x14b   :  { %2527 = vmatpush2.bf16.msra.mxu0 %v3555_v39 }
 0x14c   :  { %2568 = vmatpush2.bf16.msra.mxu1 %v3603_v18  ;;  %3101 = vmatprep.subr.bf16.mxu0 %v3606_v33 }
 0x14e   :  { %v1880_v27 = vpop.f32.mrf.mxu0 }
 0x14f   :  { %v1921_v5 = vpop.f32.mrf.mxu1  ;;  %v1881_v7 = vadd.f32 %v1880_v27, %v1840_v4 }
 0x150   :  { %v1882_v38 = vpop.f32.mrf.mxu0 }
 0x151   :  { %v1923_v62 = vpop.f32.mrf.mxu1  ;;  %v1922_v51 = vadd.f32 %v1921_v5, %v1881_v7  ;;  %v1883_v53 = vadd.f32 %v1882_v38, %v1842_v6  ;;  %v3618_v6 = vld [vmem:[%s4071_s5 + $0x48] sm:$0xff]  }
 0x152   :  { %v1884_v9 = vpop.f32.mrf.mxu0  ;;  %v3619_v7 = vld [vmem:[%s4071_s5 + $0x8] sm:$0xff]  }
 0x153   :  { %v1925_v10 = vpop.f32.mrf.mxu1  ;;  %v1924_v11 = vadd.f32 %v1923_v62, %v1883_v53  ;;  %v2092_v15 = vmax.f32 %v1922_v51, 0.0  ;;  %v3621_v51 = vld [vmem:[%s4071_s5] sm:$0xff]   ;;  %v2169_v9 = vrot.slane %v2164_v60, %v3699_v49 }
 0x154   :  { %v1885_v12 = vpop.f32.mrf.mxu0  ;;  %v2173_v10 = vrot.slane %v2164_v60, %v3693_v46  ;;  %v3084_v49 = vld [vmem:[%s4072_s6] ss:$0 sm:$0xff] }
 0x155   :  { %v1926_v13 = vpop.f32.mrf.mxu1  ;;  %v2093_v16 = vmax.f32 %v1924_v11, 0.0  ;;  %v2096_v21 = vpack.c.bf16 %v2092_v15, %v2092_v15 }
 0x157   :  { %v2097_v19 = vpack.c.bf16 %v2093_v16, %v2093_v16 }
 0x159   :  { %2528 = vmatprep.mubr.bf16.mxu0 %v2097_v19 }
 0x15a   :  { %2529 = vmatmul.mubr.bf16.vlgmr.msra.gmra.mxu0 %v2096_v21 }
 0x15b   :  { %3102 = vmatpush3.bf16.msra.mxu0 %v3607_v34 }
 0x15c   :  { %3103 = vmatprep.subr.bf16.mxu0 %v3608_v35 }
 0x15f   :  { %3104 = vmatpush3.bf16.msra.mxu0 %v3609_v41 }
 0x160   :  { %3105 = vmatprep.subr.bf16.mxu0 %v3610_v42 }
 0x163   :  { %3106 = vmatpush3.bf16.msra.mxu0 %v3611_v43 }
 0x164   :  { %3107 = vmatprep.subr.bf16.mxu0 %v3612_v44 }
 0x167   :  { %3108 = vmatpush3.bf16.msra.mxu0 %v3613_v20 }
 0x168   :  { %3109 = vmatprep.subr.bf16.mxu0 %v3614_v45 }
 0x16b   :  { %3110 = vmatpush3.bf16.msra.mxu0 %v3615_v23 }
 0x16c   :  { %3111 = vmatprep.subr.bf16.mxu0 %v3616_v47 }
 0x16f   :  { %3112 = vmatpush3.bf16.msra.mxu0 %v3617_v40 }
 0x170   :  { %3113 = vmatprep.subr.bf16.mxu0 %v3618_v6 }
 0x173   :  { %3114 = vmatpush3.bf16.msra.mxu0 %v3619_v7 }
 0x174   :  { %3115 = vmatprep.subr.bf16.mxu0 %v3620_v8 }
 0x177   :  { %3116 = vmatpush3.bf16.msra.mxu0 %v3621_v51 }
 0x18e   :  { %v1962_v22 = vpop.f32.mrf.mxu0 }
 0x18f   :  { %v2003_v24 = vpop.f32.mrf.mxu1  ;;  %v1963_v55 = vadd.f32 %v1962_v22, %v410_v50 }
 0x190   :  { %v1964_v25 = vpop.f32.mrf.mxu0 }
 0x191   :  { %v2005_v28 = vpop.f32.mrf.mxu1  ;;  %v1965_v56 = vadd.f32 %v1964_v25, %v414_v54  ;;  %v2004_v57 = vadd.f32 %v2003_v24, %v1963_v55 }
 0x192   :  { %v1966_v29 = vpop.f32.mrf.mxu0 }
 0x193   :  { %v2007_v30 = vpop.f32.mrf.mxu1  ;;  %v2006_v61 = vadd.f32 %v2005_v28, %v1965_v56 }
 0x194   :  { %v1967_v31 = vpop.f32.mrf.mxu0 }
 0x195   :  { %v2008_v32 = vpop.f32.mrf.mxu1 }
 0x1ce   :  { %v2044_v58 = vpop.f32.mrf.mxu0 }
 0x1cf   :  { %v2085_v59 = vpop.f32.mrf.mxu1  ;;  %v2045_v63 = vadd.f32 %v2044_v58, %v2004_v57 }
 0x1d0   :  { %v2046_v17 = vpop.f32.mrf.mxu0 }
 0x1d1   :  { %v2087_v0 = vpop.f32.mrf.mxu1  ;;  %v2086_v36 = vadd.f32 %v2085_v59, %v2045_v63  ;;  %v2047_v39 = vadd.f32 %v2046_v17, %v2006_v61 }
 0x1d2   :  { %v2048_v1 = vpop.f32.mrf.mxu0 }
 0x1d3   :  { %v2089_v2 = vpop.f32.mrf.mxu1  ;;  %v2088_v3 = vadd.f32 %v2087_v0, %v2047_v39  ;;  %v2094_v4 = vmax.f32 %v2086_v36, 0.0 }
 0x1d4   :  { %v2049_v26 = vpop.f32.mrf.mxu0 }
 0x1d5   :  { %v2090_v52 = vpop.f32.mrf.mxu1  ;;  %v2095_v27 = vmax.f32 %v2088_v3, 0.0  ;;  %v2098_v48 = vpack.c.bf16 %v2094_v4, %v2094_v4 }
 0x1d7   :  { %v2099_v5 = vpack.c.bf16 %v2095_v27, %v2095_v27 }
 0x1d9   :  { %2569 = vmatprep.mubr.bf16.mxu1 %v2099_v5 }
 0x1da   :  { %2570 = vmatmul.mubr.bf16.vlgmr.msra.gmra.mxu1 %v2098_v48 }
 0x21a   :  { %v2530_v37 = vpop.f32.mrf.mxu0 }
 0x21b   :  { %v2531_v11 = vadd.f32 %v2530_v37, %v2169_v9 }
 0x21c   :  { %v2532_v38 = vpop.f32.mrf.mxu0 }
 0x21d   :  { %v2533_v12 = vadd.f32 %v2532_v38, %v2173_v10 }
 0x21e   :  { %v2534_v62 = vpop.f32.mrf.mxu0 }
 0x220   :  { %v2535_v53 = vpop.f32.mrf.mxu0 }
 0x29a   :  { %v2571_v15 = vpop.f32.mrf.mxu1 }
 0x29b   :  { %v2572_v13 = vadd.f32 %v2571_v15, %v2531_v11 }
 0x29c   :  { %v2573_v14 = vpop.f32.mrf.mxu1 }
 0x29d   :  { %v2574_v16 = vadd.f32 %v2573_v14, %v2533_v12  ;;  %v2578_v18 = vmax.f32 %v2572_v13, 0.0 }
 0x29e   :  { %v2575_v19 = vpop.f32.mrf.mxu1 }
 0x29f   :  { %v2579_v21 = vmax.f32 %v2574_v16, 0.0  ;;  %v2580_v25 = vpack.c.bf16 %v2578_v18, %v2578_v18 }
 0x2a0   :  { %v2576_v22 = vpop.f32.mrf.mxu1 }
 0x2a1   :  { %v2581_v24 = vpack.c.bf16 %v2579_v21, %v2579_v21 }
 0x2a3   :  { %2749 = vmatprep.mubr.bf16.mxu0 %v2581_v24 }
 0x2a4   :  { %2750 = vmatmul.mubr.bf16.vlgmr.msra.gmra.mxu0 %v2580_v25 }
 0x364   :  { %v3117_v28 = vpop.f32.mrf.mxu0 }
 0x366   :  { %v3118_v46 = vpop.f32.mrf.mxu0 }
 0x367   :  { %v3119_v29 = vadd.f32 %v3118_v46, %v3117_v28 }
 0x368   :  { %v3120_v30 = vpop.f32.mrf.mxu0 }
 0x369   :  { %v2752_v31 = vadd.f32 %v3119_v29, %v3084_v49 }
 0x36a   :  { %v3121_v32 = vpop.f32.mrf.mxu0 }
 0x36b   :  { %2758 = vst.msk [vmem:[%s4073_s7] sm:$0x3] %vm2757_vm1, %v2752_v31 }
 0x36c   :  { %2763 = vsyncpa [#allocation3], 1 }

// kernel: pploc3d_forward.7
= control target key start
LH: loop header
LB: loop body
LE: loop exit
PB: predicated region body
PF: predicated region fallthrough
CT: control target
= control target key end

     0   :  { %s1181_s24 = smov 0   ;;  %s1183_s25 = smov 0   ;;  %s1296_s0 = inlined_call_operand.vmem [shape: bf16[8,32,64], index: 0, kind: input, shape index: {}]   ;;  %s1297_s1 = inlined_call_operand.vmem [shape: bf16[8,4,32,64], index: 1, kind: input, shape index: {}]   ;;  %s1298_s2 = inlined_call_operand.vmem [shape: bf16[64,128], index: 2, kind: input, shape index: {}]   ;;  %s1299_s3 = inlined_call_operand.vmem [shape: bf16[64,128], index: 3, kind: input, shape index: {}]   ;;  %s1300_s4 = inlined_call_operand.vmem [shape: f32[1,128], index: 4, kind: input, shape index: {}]   ;;  %s1301_s5 = inlined_call_operand.vmem [shape: bf16[128,32], index: 5, kind: input, shape index: {}]   ;;  %s1302_s6 = inlined_call_operand.vmem [shape: f32[1,32], index: 6, kind: input, shape index: {}]   ;;  %s1303_s7 = inlined_call_operand.vmem [shape: f32[8,32,32], index: 7, kind: output, shape index: {}]  }
   0x1   :  { %s1185_s26 = smov 0  }
   0x2 LB: > { %s29_s27 = sadd.s32 1, %s1135_s25  ;;  %p933_p0 = scmp.ge.s32.totalorder %s1139_s26, 1  ;;  %s1139_s26 = sphi %s1185_s26, %s17_s26   ;;  %s1135_s25 = sphi %s1183_s25, %s1305_s25   ;;  %s1131_s24 = sphi %s1181_s24, %s1304_s24  }
   0x3   : > { %p31_p1 = scmp.ge.s32.totalorder %s29_s27, 8  ;;  %p275_p2 = scmp.lt.s32.totalorder %s1139_s26, 9 }
   0x5   : > { %s1307_s27 = smov (%p31_p1, %s29_s27), 0  ;;  %p276_p3 = pnand %p933_p0, %p275_p2 }
   0x6   : > { %p325_p4 = scmp.lt.s32.totalorder (!%p276_p3), %s1131_s24, 7 }
   0x7   : > { %279 = sbr.rel (%p276_p3) target bundleno = 465 (0x1d1), region = 48 }
   0xc   : > { %v1091_v0 = vld [vmem:[%s1298_s2 + $0x18] sm:$0xff]   ;;  %v1092_v1 = vld [vmem:[%s1298_s2 + $0x10] sm:$0xff]   ;;  %s1309_s24 = smov (!%p325_p4, %s1131_s24), 7  ;;  %v1093_v2 = vld [vmem:[%s1298_s2 + $0x8] sm:$0xff]   ;;  %vm443_vm0 = vcmask 523264   ;;  %vm819_vm1 = vcmask 261120  }
   0xd   : > { %1011 = vmatprep.subr.bf16.mxu0 %v1091_v0  ;;  %s981_s11 = sshll.u32 %s1309_s24, 6  ;;  %v1097_v3 = vld [vmem:[%s1299_s3 + $0x18] sm:$0xff]   ;;  %v1098_v4 = vld [vmem:[%s1299_s3 + $0x10] sm:$0xff]   ;;  %v1094_v6 = vld [vmem:[%s1298_s2] sm:$0xff]   ;;  %s980_s21 = sshll.u32 %s1309_s24, 4 }
   0xe   : > { %1012 = vmatpush3.bf16.msra.mxu0 %v1091_v0  ;;  %s1217_s16 = scalar_lea.vmem %s1297_s1, %s981_s11  ;;  %1035 = vmatprep.subr.bf16.mxu1 %v1097_v3  ;;  %v1101_v7 = vld [vmem:[%s1299_s3 + $0x8] sm:$0xff]   ;;  %s332_s30 = scalar_lea.vmem %s1296_s0, %s980_s21  ;;  %v1102_v8 = vld [vmem:[%s1299_s3] sm:$0xff]   ;;  %v1109_v18 = vld [vmem:[%s1301_s5 + $0x38] sm:$0xff]  }
   0xf   : > { %1013 = vmatprep.subr.bf16.mxu0 %v1092_v1  ;;  %v1095_v5 = vld [vmem:[%s1217_s16] sm:$0xff]   ;;  %1036 = vmatpush3.bf16.msra.mxu1 %v1097_v3  ;;  %v1096_v9 = vld [vmem:[%s1217_s16 + $0x8] sm:$0xff]   ;;  %v1099_v11 = vld [vmem:[%s1217_s16 + $0x10] sm:$0xff]   ;;  %s982_s11 = sshll.u32 %s1309_s24, 5 }
  0x10   : > { %1019 = vmatprep.mubr.msk.bf16.mxu0 %vm443_vm0, %v1095_v5  ;;  %1037 = vmatprep.subr.bf16.mxu1 %v1098_v4  ;;  %v1105_v10 = vld [vmem:[%s332_s30] sm:$0xff]   ;;  %v1106_v12 = vld [vmem:[%s332_s30 + $0x8] sm:$0xff]   ;;  %v1100_v13 = vld [vmem:[%s1217_s16 + $0x18] sm:$0xff]   ;;  %s352_s14 = scalar_lea.vmem %s1303_s7, %s982_s11 }
  0x11   : > { %1043 = vmatprep.mubr.msk.bf16.mxu1 %vm443_vm0, %v1105_v10  ;;  %v1103_v14 = vld [vmem:[%s1217_s16 + $0x20] sm:$0xff]   ;;  %v1104_v15 = vld [vmem:[%s1217_s16 + $0x28] sm:$0xff]   ;;  %v1107_v16 = vld [vmem:[%s1217_s16 + $0x30] sm:$0xff]  }
  0x12   : > { %1014 = vmatpush3.bf16.msra.mxu0 %v1092_v1  ;;  %v1108_v17 = vld [vmem:[%s1217_s16 + $0x38] sm:$0xff]   ;;  %v1110_v19 = vld [vmem:[%s1301_s5 + $0x30] sm:$0xff]   ;;  %v1111_v20 = vld [vmem:[%s1301_s5 + $0x28] sm:$0xff]  }
  0x13   : > { %1015 = vmatprep.subr.bf16.mxu0 %v1093_v2  ;;  %1038 = vmatpush3.bf16.msra.mxu1 %v1098_v4  ;;  %v1112_v21 = vld [vmem:[%s1301_s5 + $0x20] sm:$0xff]   ;;  %v1113_v22 = vld [vmem:[%s1301_s5 + $0x18] sm:$0xff]   ;;  %v1114_v23 = vld [vmem:[%s1301_s5 + $0x10] sm:$0xff]  }
  0x14   : > { %1039 = vmatprep.subr.bf16.mxu1 %v1101_v7  ;;  %v1115_v24 = vld [vmem:[%s1301_s5 + $0x8] sm:$0xff]   ;;  %v1116_v25 = vld [vmem:[%s1301_s5] sm:$0xff]  }
  0x15   : > { %v960_v46 = vld [vmem:[%s1300_s4] ss:$0 sm:$0xff] }
  0x16   : > { %1016 = vmatpush3.bf16.msra.mxu0 %v1093_v2 }
  0x17   : > { %1017 = vmatprep.subr.bf16.mxu0 %v1094_v6  ;;  %1040 = vmatpush3.bf16.msra.mxu1 %v1101_v7 }
  0x18   : > { %1041 = vmatprep.subr.bf16.mxu1 %v1102_v8 }
  0x1a   : > { %1018 = vmatpush3.bf16.msra.mxu0 %v1094_v6 }
  0x1b   : > { %1042 = vmatpush3.bf16.msra.mxu1 %v1102_v8  ;;  %1047 = vmatprep.subr.bf16.mxu0 %v1109_v18 }
  0x1d   : > { %1020 = vmatmul.mubr.msk.bf16.vlgmr.msra.gmra.mxu0 %vm443_vm0, %v1096_v9  ;;  %v969_v9 = vld [vmem:[%s1302_s6] ss:$0 sm:$0xff] }
  0x1e   : > { %1023 = vmatprep.mubr.msk.bf16.mxu0 %vm443_vm0, %v1099_v11  ;;  %1044 = vmatmul.mubr.msk.bf16.vlgmr.msra.gmra.mxu1 %vm443_vm0, %v1106_v12 }
  0x1f   : > { %1048 = vmatpush3.bf16.msra.mxu0 %v1109_v18 }
  0x20   : > { %1049 = vmatprep.subr.bf16.mxu0 %v1110_v19 }
  0x23   : > { %1050 = vmatpush3.bf16.msra.mxu0 %v1110_v19 }
  0x24   : > { %1051 = vmatprep.subr.bf16.mxu0 %v1111_v20 }
  0x25   : > { %1024 = vmatmul.mubr.msk.bf16.gmra.mxu0 %vm443_vm0, %v1100_v13 }
  0x26   : > { %1027 = vmatprep.mubr.msk.bf16.mxu0 %vm443_vm0, %v1103_v14 }
  0x27   : > { %1052 = vmatpush3.bf16.msra.mxu0 %v1111_v20 }
  0x28   : > { %1053 = vmatprep.subr.bf16.mxu0 %v1112_v21 }
  0x2b   : > { %1054 = vmatpush3.bf16.msra.mxu0 %v1112_v21 }
  0x2c   : > { %1055 = vmatprep.subr.bf16.mxu0 %v1113_v22 }
  0x2d   : > { %1028 = vmatmul.mubr.msk.bf16.gmra.mxu0 %vm443_vm0, %v1104_v15 }
  0x2e   : > { %1031 = vmatprep.mubr.msk.bf16.mxu0 %vm443_vm0, %v1107_v16 }
  0x2f   : > { %1056 = vmatpush3.bf16.msra.mxu0 %v1113_v22 }
  0x30   : > { %1057 = vmatprep.subr.bf16.mxu0 %v1114_v23 }
  0x33   : > { %1058 = vmatpush3.bf16.msra.mxu0 %v1114_v23 }
  0x34   : > { %1059 = vmatprep.subr.bf16.mxu0 %v1115_v24 }
  0x35   : > { %1032 = vmatmul.mubr.msk.bf16.gmra.mxu0 %vm443_vm0, %v1108_v17 }
  0x37   : > { %1060 = vmatpush3.bf16.msra.mxu0 %v1115_v24 }
  0x38   : > { %1061 = vmatprep.subr.bf16.mxu0 %v1116_v25 }
  0x3b   : > { %1062 = vmatpush3.bf16.msra.mxu0 %v1116_v25 }
  0xdd   : > { %v1021_v26 = vpop.f32.mrf.mxu0 }
  0xde   : > { %v1045_v35 = vpop.f32.mrf.mxu1 }
  0xdf   : > { %v502_v27 = vpop.f32.mrf.mxu0  ;;  %v679_v52 = vadd.f32 %v1045_v35, %v960_v46 }
  0xe0   : > { %v670_v38 = vpop.f32.mrf.mxu1 }
  0xe1   : > { %v1022_v28 = vpop.f32.mrf.mxu0  ;;  %v671_v56 = vadd.f32 %v960_v46, %v670_v38 }
  0xe2   : > { %v1046_v42 = vpop.f32.mrf.mxu1 }
  0xe3   : > { %v505_v29 = vpop.f32.mrf.mxu0  ;;  %v682_v58 = vadd.f32 %v1046_v42, %v960_v46 }
  0xe4   : > { %v673_v54 = vpop.f32.mrf.mxu1 }
  0xe5   : > { %v1025_v30 = vpop.f32.mrf.mxu0  ;;  %v674_v61 = vadd.f32 %v960_v46, %v673_v54 }
  0xe6   : > { %v567_v41 = vmax.f32 %v1021_v26, %v1025_v30 }
  0xe7   : > { %v518_v31 = vpop.f32.mrf.mxu0 }
  0xe8   : > { %v565_v40 = vmax.f32 %v502_v27, %v518_v31 }
  0xe9   : > { %v1026_v32 = vpop.f32.mrf.mxu0 }
  0xea   : > { %v568_v44 = vmax.f32 %v1022_v28, %v1026_v32 }
  0xeb   : > { %v521_v33 = vpop.f32.mrf.mxu0 }
  0xec   : > { %v566_v49 = vmax.f32 %v505_v29, %v521_v33 }
  0xed   : > { %v1029_v34 = vpop.f32.mrf.mxu0 }
  0xee   : > { %v571_v47 = vmax.f32 %v567_v41, %v1029_v34 }
  0xef   : > { %v534_v36 = vpop.f32.mrf.mxu0 }
  0xf0   : > { %v569_v45 = vmax.f32 %v565_v40, %v534_v36 }
  0xf1   : > { %v1030_v37 = vpop.f32.mrf.mxu0 }
  0xf2   : > { %v572_v50 = vmax.f32 %v568_v44, %v1030_v37 }
  0xf3   : > { %v537_v39 = vpop.f32.mrf.mxu0 }
  0xf4   : > { %v570_v57 = vmax.f32 %v566_v49, %v537_v39 }
  0xf5   : > { %v1033_v43 = vpop.f32.mrf.mxu0 }
  0xf6   : > { %v575_v53 = vmax.f32 %v571_v47, %v1033_v43 }
  0xf7   : > { %v550_v48 = vpop.f32.mrf.mxu0 }
  0xf8   : > { %v573_v51 = vmax.f32 %v569_v45, %v550_v48  ;;  %v687_v1 = vadd.f32 %v679_v52, %v575_v53 }
  0xf9   : > { %v1034_v55 = vpop.f32.mrf.mxu0 }
  0xfa   : > { %v576_v59 = vmax.f32 %v572_v50, %v1034_v55  ;;  %v685_v62 = vadd.f32 %v671_v56, %v573_v51  ;;  %v691_v6 = vmax.f32 %v687_v1, 0.0 }
  0xfb   : > { %v553_v60 = vpop.f32.mrf.mxu0 }
  0xfc   : > { %v688_v63 = vadd.f32 %v682_v58, %v576_v59  ;;  %v574_v0 = vmax.f32 %v570_v57, %v553_v60  ;;  %v689_v4 = vmax.f32 %v685_v62, 0.0 }
  0xfe   : > { %v686_v2 = vadd.f32 %v674_v61, %v574_v0  ;;  %v692_v3 = vmax.f32 %v688_v63, 0.0 }
 0x100   : > { %v690_v5 = vmax.f32 %v686_v2, 0.0  ;;  %v694_v8 = vpack.c.bf16 %v692_v3, %v691_v6 }
 0x102   : > { %v693_v7 = vpack.c.bf16 %v690_v5, %v689_v4 }
 0x104   : > { %1063 = vmatprep.mubr.bf16.mxu0 %v693_v7 }
 0x105   : > { %1064 = vmatmul.mubr.bf16.vlgmr.msra.gmra.mxu0 %v694_v8 }
 0x1c5   : > { %v1065_v10 = vpop.f32.mrf.mxu0 }
 0x1c6   : > { %v809_v11 = vadd.f32 %v1065_v10, %v969_v9 }
 0x1c7   : > { %v800_v12 = vpop.f32.mrf.mxu0 }
 0x1c8   : > { %v817_v13 = vmax.f32 %v809_v11, 0.0  ;;  %v801_v14 = vadd.f32 %v969_v9, %v800_v12 }
 0x1c9   : > { %v1066_v15 = vpop.f32.mrf.mxu0 }
 0x1ca   : > { %822 = vst.msk [vmem:[%s352_s14 + $0x10] sm:$0xff] %vm819_vm1, %v817_v13  ;;  %v815_v16 = vmax.f32 %v801_v14, 0.0  ;;  %v812_v17 = vadd.f32 %v1066_v15, %v969_v9 }
 0x1cb   : > { %v803_v18 = vpop.f32.mrf.mxu0 }
 0x1cc   : > { %820 = vst.msk [vmem:[%s352_s14] sm:$0xff] %vm819_vm1, %v815_v16  ;;  %v818_v19 = vmax.f32 %v812_v17, 0.0  ;;  %v804_v20 = vadd.f32 %v969_v9, %v803_v18 }
 0x1ce   : > { %823 = vst.msk [vmem:[%s352_s14 + $0x18] sm:$0xff] %vm819_vm1, %v818_v19  ;;  %v816_v21 = vmax.f32 %v804_v20, 0.0 }
 0x1d0   : > { %821 = vst.msk [vmem:[%s352_s14 + $0x8] sm:$0xff] %vm819_vm1, %v816_v21 }
 0x1d1 PF: > { %s17_s26 = sadd.s32 1, %s1139_s26   ;;  %s1304_s24 = smov %s1135_s25 }
 0x1d2   : > { %p14_p5 = scmp.ge.s32.totalorder %s17_s26, 10   ;;  %s1305_s25 = smov %s1307_s27 }
 0x1d4   :  { %16 = sbr.rel (!%p14_p5) target bundleno = 2 (0x2), region = 81 }

</bundles_post_ra>
